<compile_context>
chip_gen: v7x
topology: tpu7x:2x2x1
jax: 0.10.0
libtpu: 0.0.40
codegen_flags: <defaults>
</compile_context>

<pallas_src>
import numpy as np
import jax
import jax.numpy as jnp
from jax.experimental import pallas as pl
from jax.experimental.pallas import tpu as pltpu

LATENT = 32          # scaled-down LATENT_DIM (orig 512)
B, T = 2, 4          # batch, rf sequence length
IMG_C, IMG_H, IMG_W = 3, 16, 16
C_MID, C_FEAT = 16, 32                       # backbone channels
ANO_H1, ANO_H2 = 4 * LATENT, 2 * LATENT      # anomaly MLP (scaled 1024, 512)
DEC_H1, DEC_H2 = 4 * LATENT, 8 * LATENT      # decoder MLP (scaled 1024, 2048)
DEC_OUT = 3 * IMG_H * IMG_W                  # scaled 3*224*224


def _full_spec(shape):
    nd = len(shape)
    return pl.BlockSpec(shape, lambda *_: (0,) * nd)


def _slab_spec(shape):
    # leading-dim slab select (grid axis 0 picks the slab), rest is full.
    nd = len(shape)
    return pl.BlockSpec((1,) + tuple(shape[1:]), lambda i: (i,) + (0,) * (nd - 1))


# ---------------------------------------------------------------------------
# Kernel 1: fused dual feature extractor.
# grid=(2,) ["parallel"] over extractor id (0 = RF weights, 1 = image weights).
# Body: 3 dense matmuls:  relu(x@W1) -> relu(.@W2) -> .@W_gapfc  (GAP folded in).
# ---------------------------------------------------------------------------
def _extractor_kernel(x_ref, w1_ref, b1_ref, w2_ref, b2_ref, wg_ref, bg_ref,
                      o_ref):
    x = x_ref[0].astype(jnp.bfloat16)                            # (N, H*W*C)
    y1 = jnp.dot(x, w1_ref[0], preferred_element_type=jnp.float32) + b1_ref[0]
    y1 = jnp.maximum(y1, 0.0)                                    # conv1 + ReLU
    y2 = jnp.dot(y1.astype(jnp.bfloat16), w2_ref[0],
                 preferred_element_type=jnp.float32) + b2_ref[0]
    y2 = jnp.maximum(y2, 0.0)                                    # conv2 + ReLU
    # GAP + fc folded into wg (pooling is linear, sits after the ReLU).
    o_ref[0] = jnp.dot(y2.astype(jnp.bfloat16), wg_ref[0],
                       preferred_element_type=jnp.float32) + bg_ref[0]


def pallas_dual_extractor(x_stacked, fe):
    """x_stacked: (2, N, H*W*C) f32.  Returns (2, N, LATENT) f32."""
    N = x_stacked.shape[1]
    args = [x_stacked, fe["W1"], fe["b1"], fe["W2"], fe["b2"], fe["Wg"], fe["bg"]]
    return pl.pallas_call(
        _extractor_kernel,
        out_shape=jax.ShapeDtypeStruct((2, N, LATENT), jnp.float32),
        grid=(2,),
        in_specs=[_slab_spec(a.shape) for a in args],
        out_specs=_slab_spec((2, N, LATENT)),
        compiler_params=pltpu.CompilerParams(
            dimension_semantics=("parallel",)),
    )(*args)


# ---------------------------------------------------------------------------
# Kernel 2: TemporalAnalysis (2-layer BiLSTM + temporal_fc) + feature fusion
# + anomaly detector + decoder, all fused.
#
# Weight packing (per LSTM layer), gate blocks of width 2H along the lanes:
#   columns = [ i_f i_b | f_f f_b | g_f g_b | o_f o_b ]      (8H = 256 lanes)
#   wih_both : (D_in, 8H)
#   whh_both : (2H, 8H)   block-diagonal: rows 0:H -> *_f cols, rows H:2H -> *_b
#   b_both   : (1, 8H)    (b_ih + b_hh combined)
# State h = [h_f | h_b] (B, 2H); one recurrent matmul per step covers both
# directions; fwd consumes x[t=s], bwd consumes x[t=T-1-s] in the same step.
# ---------------------------------------------------------------------------
def _temporal_heads_kernel(x_ref, img_ref,
                           wih0, whh0, b0, wih1, whh1, b1,
                           wfc, bfc,
                           wh1, bh1, aw2, ab2, aw3, ab3, dw2, db2, dw3, db3,
                           fused_ref, score_ref, recon_ref):
    Bn = img_ref.shape[0]
    Tn = x_ref.shape[0] // Bn
    H = bfc.shape[1]                       # hidden per direction (= LATENT)

    # lane mask selecting the forward half of every gate block (built once)
    cols = jax.lax.broadcasted_iota(jnp.int32, (Bn, 8 * H), 1)
    fwd_mask = (cols % (2 * H)) < H

    def bilstm_layer(x_cat, wih_ref, whh_ref, b_ref):
        # hoisted input projection, natural t order, both directions at once
        gx = jnp.dot(x_cat.astype(jnp.bfloat16), wih_ref[...],
                     preferred_element_type=jnp.float32)          # (T*B, 8H)
        h = jnp.zeros((Bn, 2 * H), jnp.float32)
        c = jnp.zeros((Bn, 2 * H), jnp.float32)
        hs = []
        for s in range(Tn):
            gxf = gx[s * Bn:(s + 1) * Bn]                # fwd time  t = s
            gxb = gx[(Tn - 1 - s) * Bn:(Tn - s) * Bn]    # bwd time  t = T-1-s
            rec = jnp.dot(h.astype(jnp.bfloat16), whh_ref[...],
                          preferred_element_type=jnp.float32)     # (B, 8H)
            gates = jnp.where(fwd_mask, gxf, gxb) + rec + b_ref[...]
            i_g = jax.nn.sigmoid(gates[:, 0 * 2 * H:1 * 2 * H])
            f_g = jax.nn.sigmoid(gates[:, 1 * 2 * H:2 * 2 * H])
            g_g = jnp.tanh(gates[:, 2 * 2 * H:3 * 2 * H])
            o_g = jax.nn.sigmoid(gates[:, 3 * 2 * H:4 * 2 * H])
            c = f_g * c + i_g * g_g
            h = o_g * jnp.tanh(c)
            hs.append(h)                   # hs[s] = [h_f(t=s) | h_b(t=T-1-s)]
        return hs

    # ---- layer 0 (bidirectional) ----
    xs0 = x_ref[...]                                        # (T*B, D)
    hs0 = bilstm_layer(xs0, wih0, whh0, b0)
    # layer-1 input per time step: [h0_f(t) | h0_b(t)]
    x1 = jnp.concatenate(
        [jnp.concatenate([hs0[t][:, :H], hs0[Tn - 1 - t][:, H:]], axis=1)
         for t in range(Tn)], axis=0)                       # (T*B, 2H)
    # inter-layer dropout(0.2): identity at inference
    # ---- layer 1 (bidirectional) ----
    hs1 = bilstm_layer(x1, wih1, whh1, b1)
    # lstm_out[:, -1, :] = [h1_f(t=T-1) | h1_b(t=T-1)]
    last = jnp.concatenate([hs1[Tn - 1][:, :H], hs1[0][:, H:]], axis=1)
    temporal = jnp.dot(last.astype(jnp.bfloat16), wfc[...],
                       preferred_element_type=jnp.float32) + bfc[...]

    # ---- feature fusion + heads ----
    fused = jnp.concatenate([temporal, img_ref[...]], axis=1)   # (B, 2*LATENT)
    fused_ref[...] = fused
    xb = fused.astype(jnp.bfloat16)
    # shared first layer of anomaly + decoder MLPs (split at 128-lane boundary)
    na = aw2.shape[0]
    h01 = jnp.maximum(jnp.dot(xb, wh1[...],
                              preferred_element_type=jnp.float32) + bh1[...], 0.0)
    h_a = h01[:, :na].astype(jnp.bfloat16)
    h_d = h01[:, na:].astype(jnp.bfloat16)
    # anomaly detector: Linear->ReLU->Linear->ReLU->Linear->Sigmoid (dropout=id)
    h_a2 = jnp.maximum(jnp.dot(h_a, aw2[...],
                               preferred_element_type=jnp.float32) + ab2[...], 0.0)
    score_ref[...] = jax.nn.sigmoid(
        jnp.dot(h_a2.astype(jnp.bfloat16), aw3[...],
                preferred_element_type=jnp.float32) + ab3[...])
    # decoder: Linear->ReLU->Linear->ReLU->Linear->Sigmoid (dropout=id)
    h_d2 = jnp.maximum(jnp.dot(h_d, dw2[...],
                               preferred_element_type=jnp.float32) + db2[...], 0.0)
    recon_ref[...] = jax.nn.sigmoid(
        jnp.dot(h_d2.astype(jnp.bfloat16), dw3[...],
                preferred_element_type=jnp.float32) + db3[...])


def pallas_temporal_heads(x_tbd, img_feat, tp, hp):
    """x_tbd: (T*B, LATENT) f32 (time-major), img_feat: (B, LATENT) f32."""
    Bn = img_feat.shape[0]
    args = [x_tbd, img_feat,
            tp["l0_wih"], tp["l0_whh"], tp["l0_b"],
            tp["l1_wih"], tp["l1_whh"], tp["l1_b"],
            tp["wfc"], tp["bfc"],
            hp["wh1"], hp["bh1"], hp["aw2"], hp["ab2"], hp["aw3"], hp["ab3"],
            hp["dw2"], hp["db2"], hp["dw3"], hp["db3"]]
    out_shape = (jax.ShapeDtypeStruct((Bn, 2 * LATENT), jnp.float32),
                 jax.ShapeDtypeStruct((Bn, 1), jnp.float32),
                 jax.ShapeDtypeStruct((Bn, DEC_OUT), jnp.float32))
    out_specs = (_full_spec((Bn, 2 * LATENT)),
                 _full_spec((Bn, 1)),
                 _full_spec((Bn, DEC_OUT)))
    return pl.pallas_call(
        _temporal_heads_kernel,
        out_shape=out_shape,
        grid=(1,),
        in_specs=[_full_spec(a.shape) for a in args],
        out_specs=out_specs,
    )(*args)


# ---------------------------------------------------------------------------
# Forward (thin XLA glue: flatten frames NHWC, pad the image branch, reshape)
# ---------------------------------------------------------------------------
def multimodal_forward(rf_sequence, img_single, params):
    Bn, Tn = rf_sequence.shape[0], rf_sequence.shape[1]
    flat_dim = IMG_H * IMG_W * IMG_C
    frames = rf_sequence.reshape(Bn * Tn, IMG_C, IMG_H, IMG_W)
    rf_flat = jnp.transpose(frames, (0, 2, 3, 1)).reshape(Bn * Tn, flat_dim)
    img_flat = jnp.transpose(img_single, (0, 2, 3, 1)).reshape(Bn, flat_dim)
    # pad image branch to the RF branch's row count so both slabs share a block
    img_pad = jnp.concatenate(
        [img_flat, jnp.zeros((Bn * Tn - Bn, flat_dim), img_flat.dtype)], axis=0)
    x_stacked = jnp.stack([rf_flat, img_pad], axis=0)        # (2, B*T, 768)

    feats = pallas_dual_extractor(x_stacked, params["fe"])   # (2, B*T, LATENT)
    rf_feats = feats[0]                                      # (B*T, L), b-major
    img_feat = feats[1, :Bn]                                 # (B, L)

    # time-major layout for the LSTM input projection
    x_tbd = rf_feats.reshape(Bn, Tn, LATENT).transpose(1, 0, 2).reshape(
        Tn * Bn, LATENT)
    fused, score, recon = pallas_temporal_heads(
        x_tbd, img_feat, params["temporal"], params["heads"])
    temporal = fused[:, :LATENT]
    recon = recon.reshape(-1, 3, IMG_H, IMG_W)
    return {"anomaly_score": score, "reconstruction": recon,
            "rf_features": temporal, "img_features": img_feat,
            "fused_features": fused}


# ---------------------------------------------------------------------------
# Deterministic parameter init.
# Conv weights are expanded once (numpy, init time) into dense Toeplitz
# matrices; LSTM gates/directions are packed into the fused lane layout.
# MXU-facing weights are bf16, biases f32.
# ---------------------------------------------------------------------------
def _np_normal(key, shape, scale=0.05):
    return np.asarray(jax.random.normal(key, shape, jnp.float32)) * scale


def expand_conv(w, H, W, Cin, stride, pad, k=3):
    """w: (k*k*Cin, Cout) im2col-layout 3x3 conv weight ->
    dense (H*W*Cin, Ho*Wo*Cout) Toeplitz matrix (NHWC-flattened input,
    position-major / channel-minor output)."""
    Cout = w.shape[1]
    Ho = (H + 2 * pad - k) // stride + 1
    Wo = (W + 2 * pad - k) // stride + 1
    big = np.zeros((H * W * Cin, Ho * Wo * Cout), np.float32)
    for oy in range(Ho):
        for ox in range(Wo):
            col = (oy * Wo + ox) * Cout
            for i in range(k):
                for j in range(k):
                    y = stride * oy - pad + i
                    x = stride * ox - pad + j
                    if 0 <= y < H and 0 <= x < W:
                        row = (y * W + x) * Cin
                        tap = (i * k + j) * Cin
                        big[row:row + Cin, col:col + Cout] = w[tap:tap + Cin, :]
    return big


def _fe_dense(key):
    ks = jax.random.split(key, 6)
    w1 = _np_normal(ks[0], (9 * IMG_C, C_MID))
    b1 = _np_normal(ks[1], (C_MID,))
    w2 = _np_normal(ks[2], (9 * C_MID, C_FEAT))
    b2 = _np_normal(ks[3], (C_FEAT,))
    wfc = _np_normal(ks[4], (C_FEAT, LATENT))
    bfc = _np_normal(ks[5], (LATENT,))
    H1, W1d = IMG_H, IMG_W
    H2, W2d = IMG_H // 2, IMG_W // 2
    H3, W3d = IMG_H // 4, IMG_W // 4
    Wb1 = expand_conv(w1, H1, W1d, IMG_C, 2, 1)            # (768, 1024)
    Wb2 = expand_conv(w2, H2, W2d, C_MID, 2, 1)            # (1024, 512)
    # GAP (mean over H3*W3 positions) folded into the fc weight
    Wg = np.tile(wfc, (H3 * W3d, 1)) / float(H3 * W3d)     # (512, LATENT)
    Bb1 = np.tile(b1, H2 * W2d)[None, :]                   # (1, 1024)
    Bb2 = np.tile(b2, H3 * W3d)[None, :]                   # (1, 512)
    return Wb1, Bb1, Wb2, Bb2, Wg, bfc[None, :]


def _dual_fe_params(k_rf, k_img):
    rf = _fe_dense(k_rf)
    im = _fe_dense(k_img)
    def stack(a, b, dt):
        return jnp.asarray(np.stack([a, b], axis=0), dt)
    return dict(
        W1=stack(rf[0], im[0], jnp.bfloat16), b1=stack(rf[1], im[1], jnp.float32),
        W2=stack(rf[2], im[2], jnp.bfloat16), b2=stack(rf[3], im[3], jnp.float32),
        Wg=stack(rf[4], im[4], jnp.bfloat16), bg=stack(rf[5], im[5], jnp.float32),
    )


def _lstm_layer_params(key, d_in, hidden):
    """Pack a bidirectional LSTM layer into fused lane layout
    [i_f i_b | f_f f_b | g_f g_b | o_f o_b]."""
    kf, kb = jax.random.split(key)

    def direction(k):
        k1, k2, k3 = jax.random.split(k, 3)
        return (_np_normal(k1, (4, d_in, hidden)),
                _np_normal(k2, (4, hidden, hidden)),
                _np_normal(k3, (4, hidden)))      # b = b_ih + b_hh combined

    wf, hf, bfv = direction(kf)
    wb, hb, bbv = direction(kb)
    G = 8 * hidden
    wih = np.zeros((d_in, G), np.float32)
    whh = np.zeros((2 * hidden, G), np.float32)   # block-diagonal
    bias = np.zeros((1, G), np.float32)
    for g in range(4):                            # gate order i, f, g, o
        cf = slice(g * 2 * hidden, g * 2 * hidden + hidden)
        cb = slice(g * 2 * hidden + hidden, (g + 1) * 2 * hidden)
        wih[:, cf] = wf[g]
        wih[:, cb] = wb[g]
        whh[:hidden, cf] = hf[g]
        whh[hidden:, cb] = hb[g]
        bias[0, cf] = bfv[g]
        bias[0, cb] = bbv[g]
    return (jnp.asarray(wih, jnp.bfloat16),
            jnp.asarray(whh, jnp.bfloat16),
            jnp.asarray(bias, jnp.float32))


def _lin(key, din, dout, scale=0.05):
    k1, k2 = jax.random.split(key)
    w = (jax.random.normal(k1, (din, dout), jnp.float32) * scale).astype(jnp.bfloat16)
    b = jax.random.normal(k2, (1, dout), jnp.float32) * scale
    return w, b


def init_params(key):
    ks = jax.random.split(key, 11)
    fe = _dual_fe_params(ks[0], ks[1])
    l0 = _lstm_layer_params(ks[2], LATENT, LATENT)
    l1 = _lstm_layer_params(ks[3], 2 * LATENT, LATENT)
    wfc, bfc = _lin(ks[4], 2 * LATENT, LATENT)
    aw1, ab1 = _lin(ks[5], 2 * LATENT, ANO_H1)
    aw2, ab2 = _lin(ks[6], ANO_H1, ANO_H2)
    aw3, ab3 = _lin(ks[7], ANO_H2, 1)
    dw1, db1 = _lin(ks[8], 2 * LATENT, DEC_H1)
    dw2, db2 = _lin(ks[9], DEC_H1, DEC_H2)
    dw3, db3 = _lin(ks[10], DEC_H2, DEC_OUT)
    # fuse the first layers of both heads along the lanes (split at 128)
    wh1 = jnp.concatenate([aw1, dw1], axis=1)   # (2*LATENT, ANO_H1+DEC_H1)
    bh1 = jnp.concatenate([ab1, db1], axis=1)
    return dict(
        fe=fe,
        temporal=dict(l0_wih=l0[0], l0_whh=l0[1], l0_b=l0[2],
                      l1_wih=l1[0], l1_whh=l1[1], l1_b=l1[2],
                      wfc=wfc, bfc=bfc),
        heads=dict(wh1=wh1, bh1=bh1, aw2=aw2, ab2=ab2, aw3=aw3, ab3=ab3,
                   dw2=dw2, db2=db2, dw3=dw3, db3=db3),
    )


if __name__ == "__main__":
    key = jax.random.PRNGKey(0)
    kp, k1, k2 = jax.random.split(key, 3)
    params = init_params(kp)
    rf_sequence = jax.random.normal(k1, (B, T, IMG_C, IMG_H, IMG_W), jnp.float32)
    img_single = jax.random.normal(k2, (B, IMG_C, IMG_H, IMG_W), jnp.float32)

    fwd = jax.jit(lambda a, b: multimodal_forward(a, b, params))
    out = fwd(rf_sequence, img_single)
    jax.block_until_ready(out)

    assert out["anomaly_score"].shape == (B, 1)
    assert out["reconstruction"].shape == (B, 3, IMG_H, IMG_W)
    assert out["rf_features"].shape == (B, LATENT)
    assert out["img_features"].shape == (B, LATENT)
    assert out["fused_features"].shape == (B, 2 * LATENT)
    assert bool(jnp.all(jnp.isfinite(out["anomaly_score"])))
    assert bool(jnp.all(jnp.isfinite(out["reconstruction"])))
    print("KERNEL_OK")
</pallas_src>

<mosaic_0001>
module attributes {stable_mosaic.version = 11 : i64} {
  func.func @_extractor_kernel(%arg0: i32, %arg1: memref<1x8x768xf32, #tpu.memory_space<vmem>>, %arg2: memref<1x768x1024xbf16, #tpu.memory_space<vmem>>, %arg3: memref<1x1x1024xf32, #tpu.memory_space<vmem>>, %arg4: memref<1x1024x512xbf16, #tpu.memory_space<vmem>>, %arg5: memref<1x1x512xf32, #tpu.memory_space<vmem>>, %arg6: memref<1x512x32xbf16, #tpu.memory_space<vmem>>, %arg7: memref<1x1x32xf32, #tpu.memory_space<vmem>>, %arg8: memref<1x8x32xf32, #tpu.memory_space<vmem>>) attributes {dimension_semantics = [#tpu.dimension_semantics<parallel>], iteration_bounds = array<i64: 2>, scalar_prefetch = 0 : i64, scratch_operands = 0 : i64, tpu.core_type = #tpu.core_type<tc>, window_params = [{transform_indices = @transform_0, window_bounds = array<i64: 1, 8, 768>}, {transform_indices = @transform_1, window_bounds = array<i64: 1, 768, 1024>}, {transform_indices = @transform_2, window_bounds = array<i64: 1, 1, 1024>}, {transform_indices = @transform_3, window_bounds = array<i64: 1, 1024, 512>}, {transform_indices = @transform_4, window_bounds = array<i64: 1, 1, 512>}, {transform_indices = @transform_5, window_bounds = array<i64: 1, 512, 32>}, {transform_indices = @transform_6, window_bounds = array<i64: 1, 1, 32>}, {transform_indices = @transform_7, window_bounds = array<i64: 1, 8, 32>}]} {
    %c0 = arith.constant 0 : index
    %c0_0 = arith.constant 0 : index
    %c0_1 = arith.constant 0 : index
    %0 = vector.load %arg1[%c0, %c0_0, %c0_1] : memref<1x8x768xf32, #tpu.memory_space<vmem>>, vector<1x8x768xf32>
    %1 = vector.shape_cast %0 : vector<1x8x768xf32> to vector<8x768xf32>
    %2 = arith.truncf %1 : vector<8x768xf32> to vector<8x768xbf16>
    %c0_2 = arith.constant 0 : index
    %c0_3 = arith.constant 0 : index
    %c0_4 = arith.constant 0 : index
    %3 = vector.load %arg2[%c0_2, %c0_3, %c0_4] : memref<1x768x1024xbf16, #tpu.memory_space<vmem>>, vector<1x768x1024xbf16>
    %4 = vector.shape_cast %3 : vector<1x768x1024xbf16> to vector<768x1024xbf16>
    %cst = arith.constant dense<0.000000e+00> : vector<8x1024xf32>
    %5 = tpu.matmul %2, %4, %cst {dimension_numbers = #tpu.dot_dimension_numbers<[1], [0], [0], [1], [0, 0, 1, 1], [], []>} : vector<8x768xbf16>, vector<768x1024xbf16>, vector<8x1024xf32> -> vector<8x1024xf32>
    %c0_5 = arith.constant 0 : index
    %c0_6 = arith.constant 0 : index
    %c0_7 = arith.constant 0 : index
    %6 = vector.load %arg3[%c0_5, %c0_6, %c0_7] : memref<1x1x1024xf32, #tpu.memory_space<vmem>>, vector<1x1x1024xf32>
    %7 = vector.shape_cast %6 : vector<1x1x1024xf32> to vector<1x1024xf32>
    %8 = vector.broadcast %7 : vector<1x1024xf32> to vector<8x1024xf32>
    %9 = arith.addf %5, %8 : vector<8x1024xf32>
    %cst_8 = arith.constant 0.000000e+00 : f32
    %10 = vector.broadcast %cst_8 : f32 to vector<8x1024xf32>
    %11 = arith.maximumf %9, %10 : vector<8x1024xf32>
    %12 = arith.truncf %11 : vector<8x1024xf32> to vector<8x1024xbf16>
    %c0_9 = arith.constant 0 : index
    %c0_10 = arith.constant 0 : index
    %c0_11 = arith.constant 0 : index
    %13 = vector.load %arg4[%c0_9, %c0_10, %c0_11] : memref<1x1024x512xbf16, #tpu.memory_space<vmem>>, vector<1x1024x512xbf16>
    %14 = vector.shape_cast %13 : vector<1x1024x512xbf16> to vector<1024x512xbf16>
    %cst_12 = arith.constant dense<0.000000e+00> : vector<8x512xf32>
    %15 = tpu.matmul %12, %14, %cst_12 {dimension_numbers = #tpu.dot_dimension_numbers<[1], [0], [0], [1], [0, 0, 1, 1], [], []>} : vector<8x1024xbf16>, vector<1024x512xbf16>, vector<8x512xf32> -> vector<8x512xf32>
    %c0_13 = arith.constant 0 : index
    %c0_14 = arith.constant 0 : index
    %c0_15 = arith.constant 0 : index
    %16 = vector.load %arg5[%c0_13, %c0_14, %c0_15] : memref<1x1x512xf32, #tpu.memory_space<vmem>>, vector<1x1x512xf32>
    %17 = vector.shape_cast %16 : vector<1x1x512xf32> to vector<1x512xf32>
    %18 = vector.broadcast %17 : vector<1x512xf32> to vector<8x512xf32>
    %19 = arith.addf %15, %18 : vector<8x512xf32>
    %cst_16 = arith.constant 0.000000e+00 : f32
    %20 = vector.broadcast %cst_16 : f32 to vector<8x512xf32>
    %21 = arith.maximumf %19, %20 : vector<8x512xf32>
    %22 = arith.truncf %21 : vector<8x512xf32> to vector<8x512xbf16>
    %c0_17 = arith.constant 0 : index
    %c0_18 = arith.constant 0 : index
    %c0_19 = arith.constant 0 : index
    %23 = vector.load %arg6[%c0_17, %c0_18, %c0_19] : memref<1x512x32xbf16, #tpu.memory_space<vmem>>, vector<1x512x32xbf16>
    %24 = vector.shape_cast %23 : vector<1x512x32xbf16> to vector<512x32xbf16>
    %cst_20 = arith.constant dense<0.000000e+00> : vector<8x32xf32>
    %25 = tpu.matmul %22, %24, %cst_20 {dimension_numbers = #tpu.dot_dimension_numbers<[1], [0], [0], [1], [0, 0, 1, 1], [], []>} : vector<8x512xbf16>, vector<512x32xbf16>, vector<8x32xf32> -> vector<8x32xf32>
    %c0_21 = arith.constant 0 : index
    %c0_22 = arith.constant 0 : index
    %c0_23 = arith.constant 0 : index
    %26 = vector.load %arg7[%c0_21, %c0_22, %c0_23] : memref<1x1x32xf32, #tpu.memory_space<vmem>>, vector<1x1x32xf32>
    %27 = vector.shape_cast %26 : vector<1x1x32xf32> to vector<1x32xf32>
    %28 = vector.broadcast %27 : vector<1x32xf32> to vector<8x32xf32>
    %29 = arith.addf %25, %28 : vector<8x32xf32>
    %c0_24 = arith.constant 0 : index
    %c0_25 = arith.constant 0 : index
    %c0_26 = arith.constant 0 : index
    %30 = vector.load %arg8[%c0_24, %c0_25, %c0_26] : memref<1x8x32xf32, #tpu.memory_space<vmem>>, vector<1x8x32xf32>
    %31 = vector.shape_cast %30 : vector<1x8x32xf32> to vector<8x32xf32>
    %32 = vector.shape_cast %29 : vector<8x32xf32> to vector<1x8x32xf32>
    tpu.vector_store %arg8[%c0_24, %c0_25, %c0_26], %32 {strides = array<i32>} : memref<1x8x32xf32, #tpu.memory_space<vmem>>, vector<1x8x32xf32>,
    return
  }
  func.func @transform_0(%arg0: i32) -> (i32, i32, i32) {
    %c0_i32 = arith.constant 0 : i32
    %c0_i32_0 = arith.constant 0 : i32
    %c0_i32_1 = arith.constant 0 : i32
    return %arg0, %c0_i32, %c0_i32_0 : i32, i32, i32
  }
  func.func @transform_1(%arg0: i32) -> (i32, i32, i32) {
    %c0_i32 = arith.constant 0 : i32
    %c0_i32_0 = arith.constant 0 : i32
    %c0_i32_1 = arith.constant 0 : i32
    return %arg0, %c0_i32, %c0_i32_0 : i32, i32, i32
  }
  func.func @transform_2(%arg0: i32) -> (i32, i32, i32) {
    %c0_i32 = arith.constant 0 : i32
    %c0_i32_0 = arith.constant 0 : i32
    %c0_i32_1 = arith.constant 0 : i32
    return %arg0, %c0_i32, %c0_i32_0 : i32, i32, i32
  }
  func.func @transform_3(%arg0: i32) -> (i32, i32, i32) {
    %c0_i32 = arith.constant 0 : i32
    %c0_i32_0 = arith.constant 0 : i32
    %c0_i32_1 = arith.constant 0 : i32
    return %arg0, %c0_i32, %c0_i32_0 : i32, i32, i32
  }
  func.func @transform_4(%arg0: i32) -> (i32, i32, i32) {
    %c0_i32 = arith.constant 0 : i32
    %c0_i32_0 = arith.constant 0 : i32
    %c0_i32_1 = arith.constant 0 : i32
    return %arg0, %c0_i32, %c0_i32_0 : i32, i32, i32
  }
  func.func @transform_5(%arg0: i32) -> (i32, i32, i32) {
    %c0_i32 = arith.constant 0 : i32
    %c0_i32_0 = arith.constant 0 : i32
    %c0_i32_1 = arith.constant 0 : i32
    return %arg0, %c0_i32, %c0_i32_0 : i32, i32, i32
  }
  func.func @transform_6(%arg0: i32) -> (i32, i32, i32) {
    %c0_i32 = arith.constant 0 : i32
    %c0_i32_0 = arith.constant 0 : i32
    %c0_i32_1 = arith.constant 0 : i32
    return %arg0, %c0_i32, %c0_i32_0 : i32, i32, i32
  }
  func.func @transform_7(%arg0: i32) -> (i32, i32, i32) {
    %c0_i32 = arith.constant 0 : i32
    %c0_i32_0 = arith.constant 0 : i32
    %c0_i32_1 = arith.constant 0 : i32
    return %arg0, %c0_i32, %c0_i32_0 : i32, i32, i32
  }
}

module attributes {stable_mosaic.version = 11 : i64} {
  func.func @_temporal_heads_kernel(%arg0: i32, %arg1: memref<8x32xf32, #tpu.memory_space<vmem>>, %arg2: memref<2x32xf32, #tpu.memory_space<vmem>>, %arg3: memref<32x256xbf16, #tpu.memory_space<vmem>>, %arg4: memref<64x256xbf16, #tpu.memory_space<vmem>>, %arg5: memref<1x256xf32, #tpu.memory_space<vmem>>, %arg6: memref<64x256xbf16, #tpu.memory_space<vmem>>, %arg7: memref<64x256xbf16, #tpu.memory_space<vmem>>, %arg8: memref<1x256xf32, #tpu.memory_space<vmem>>, %arg9: memref<64x32xbf16, #tpu.memory_space<vmem>>, %arg10: memref<1x32xf32, #tpu.memory_space<vmem>>, %arg11: memref<64x256xbf16, #tpu.memory_space<vmem>>, %arg12: memref<1x256xf32, #tpu.memory_space<vmem>>, %arg13: memref<128x64xbf16, #tpu.memory_space<vmem>>, %arg14: memref<1x64xf32, #tpu.memory_space<vmem>>, %arg15: memref<64x1xbf16, #tpu.memory_space<vmem>>, %arg16: memref<1x1xf32, #tpu.memory_space<vmem>>, %arg17: memref<128x256xbf16, #tpu.memory_space<vmem>>, %arg18: memref<1x256xf32, #tpu.memory_space<vmem>>, %arg19: memref<256x768xbf16, #tpu.memory_space<vmem>>, %arg20: memref<1x768xf32, #tpu.memory_space<vmem>>, %arg21: memref<2x64xf32, #tpu.memory_space<vmem>>, %arg22: memref<2x1xf32, #tpu.memory_space<vmem>>, %arg23: memref<2x768xf32, #tpu.memory_space<vmem>>) attributes {dimension_semantics = [#tpu.dimension_semantics<arbitrary>], iteration_bounds = array<i64: 1>, scalar_prefetch = 0 : i64, scratch_operands = 0 : i64, tpu.core_type = #tpu.core_type<tc>, window_params = [{pipeline_mode = #tpu.pipeline_mode<synchronous>, transform_indices = @transform_0, window_bounds = array<i64: 8, 32>}, {pipeline_mode = #tpu.pipeline_mode<synchronous>, transform_indices = @transform_1, window_bounds = array<i64: 2, 32>}, {pipeline_mode = #tpu.pipeline_mode<synchronous>, transform_indices = @transform_2, window_bounds = array<i64: 32, 256>}, {pipeline_mode = #tpu.pipeline_mode<synchronous>, transform_indices = @transform_3, window_bounds = array<i64: 64, 256>}, {pipeline_mode = #tpu.pipeline_mode<synchronous>, transform_indices = @transform_4, window_bounds = array<i64: 1, 256>}, {pipeline_mode = #tpu.pipeline_mode<synchronous>, transform_indices = @transform_5, window_bounds = array<i64: 64, 256>}, {pipeline_mode = #tpu.pipeline_mode<synchronous>, transform_indices = @transform_6, window_bounds = array<i64: 64, 256>}, {pipeline_mode = #tpu.pipeline_mode<synchronous>, transform_indices = @transform_7, window_bounds = array<i64: 1, 256>}, {pipeline_mode = #tpu.pipeline_mode<synchronous>, transform_indices = @transform_8, window_bounds = array<i64: 64, 32>}, {pipeline_mode = #tpu.pipeline_mode<synchronous>, transform_indices = @transform_9, window_bounds = array<i64: 1, 32>}, {pipeline_mode = #tpu.pipeline_mode<synchronous>, transform_indices = @transform_10, window_bounds = array<i64: 64, 256>}, {pipeline_mode = #tpu.pipeline_mode<synchronous>, transform_indices = @transform_11, window_bounds = array<i64: 1, 256>}, {pipeline_mode = #tpu.pipeline_mode<synchronous>, transform_indices = @transform_12, window_bounds = array<i64: 128, 64>}, {pipeline_mode = #tpu.pipeline_mode<synchronous>, transform_indices = @transform_13, window_bounds = array<i64: 1, 64>}, {pipeline_mode = #tpu.pipeline_mode<synchronous>, transform_indices = @transform_14, window_bounds = array<i64: 64, 1>}, {pipeline_mode = #tpu.pipeline_mode<synchronous>, transform_indices = @transform_15, window_bounds = array<i64: 1, 1>}, {pipeline_mode = #tpu.pipeline_mode<synchronous>, transform_indices = @transform_16, window_bounds = array<i64: 128, 256>}, {pipeline_mode = #tpu.pipeline_mode<synchronous>, transform_indices = @transform_17, window_bounds = array<i64: 1, 256>}, {pipeline_mode = #tpu.pipeline_mode<synchronous>, transform_indices = @transform_18, window_bounds = array<i64: 256, 768>}, {pipeline_mode = #tpu.pipeline_mode<synchronous>, transform_indices = @transform_19, window_bounds = array<i64: 1, 768>}, {pipeline_mode = #tpu.pipeline_mode<synchronous>, transform_indices = @transform_20, window_bounds = array<i64: 2, 64>}, {pipeline_mode = #tpu.pipeline_mode<synchronous>, transform_indices = @transform_21, window_bounds = array<i64: 2, 1>}, {pipeline_mode = #tpu.pipeline_mode<synchronous>, transform_indices = @transform_22, window_bounds = array<i64: 2, 768>}]} {
    %0 = tpu.iota {dimensions = array<i32: 1>} : vector<2x256xi32>
    %c64_i32 = arith.constant 64 : i32
    %c0_i32 = arith.constant 0 : i32
    %1 = arith.cmpi eq, %c64_i32, %c0_i32 : i32
    %c1_i32 = arith.constant 1 : i32
    %2 = arith.select %1, %c1_i32, %c64_i32 : i32
    %3 = vector.broadcast %2 : i32 to vector<2x256xi32>
    %4 = arith.remsi %0, %3 : vector<2x256xi32>
    %c0_i32_0 = arith.constant 0 : i32
    %5 = vector.broadcast %c0_i32_0 : i32 to vector<2x256xi32>
    %6 = arith.cmpi ne, %4, %5 : vector<2x256xi32>
    %c0_i32_1 = arith.constant 0 : i32
    %7 = vector.broadcast %c0_i32_1 : i32 to vector<2x256xi32>
    %8 = arith.cmpi slt, %4, %7 : vector<2x256xi32>
    %c0_i32_2 = arith.constant 0 : i32
    %9 = arith.cmpi slt, %2, %c0_i32_2 : i32
    %10 = vector.broadcast %9 : i1 to vector<2x256xi1>
    %11 = vector.broadcast %10 : vector<2x256xi1> to vector<2x256xi1>
    %12 = arith.xori %8, %11 : vector<2x256xi1>
    %13 = arith.andi %12, %6 : vector<2x256xi1>
    %14 = vector.broadcast %2 : i32 to vector<2x256xi32>
    %15 = arith.addi %4, %14 : vector<2x256xi32>
    %16 = arith.select %13, %15, %4 : vector<2x256xi1>, vector<2x256xi32>
    %c32_i32 = arith.constant 32 : i32
    %17 = vector.broadcast %c32_i32 : i32 to vector<2x256xi32>
    %18 = arith.cmpi slt, %16, %17 : vector<2x256xi32>
    %c0 = arith.constant 0 : index
    %c0_3 = arith.constant 0 : index
    %19 = vector.load %arg1[%c0, %c0_3] : memref<8x32xf32, #tpu.memory_space<vmem>>, vector<8x32xf32>
    %20 = arith.truncf %19 : vector<8x32xf32> to vector<8x32xbf16>
    %c0_4 = arith.constant 0 : index
    %c0_5 = arith.constant 0 : index
    %21 = vector.load %arg3[%c0_4, %c0_5] : memref<32x256xbf16, #tpu.memory_space<vmem>>, vector<32x256xbf16>
    %cst = arith.constant dense<0.000000e+00> : vector<8x256xf32>
    %22 = tpu.matmul %20, %21, %cst {dimension_numbers = #tpu.dot_dimension_numbers<[1], [0], [0], [1], [0, 0, 1, 1], [], []>} : vector<8x32xbf16>, vector<32x256xbf16>, vector<8x256xf32> -> vector<8x256xf32>
    %cst_6 = arith.constant 0.000000e+00 : f32
    %23 = vector.broadcast %cst_6 : f32 to vector<2x64xf32>
    %cst_7 = arith.constant 0.000000e+00 : f32
    %24 = vector.broadcast %cst_7 : f32 to vector<2x64xf32>
    %25 = vector.extract_strided_slice %22 {offsets = [0, 0], sizes = [2, 256], strides = [1, 1]} : vector<8x256xf32> to vector<2x256xf32>
    %26 = vector.extract_strided_slice %22 {offsets = [6, 0], sizes = [2, 256], strides = [1, 1]} : vector<8x256xf32> to vector<2x256xf32>
    %27 = arith.truncf %23 : vector<2x64xf32> to vector<2x64xbf16>
    %c0_8 = arith.constant 0 : index
    %c0_9 = arith.constant 0 : index
    %28 = vector.load %arg4[%c0_8, %c0_9] : memref<64x256xbf16, #tpu.memory_space<vmem>>, vector<64x256xbf16>
    %cst_10 = arith.constant dense<0.000000e+00> : vector<2x256xf32>
    %29 = tpu.matmul %27, %28, %cst_10 {dimension_numbers = #tpu.dot_dimension_numbers<[1], [0], [0], [1], [0, 0, 1, 1], [], []>} : vector<2x64xbf16>, vector<64x256xbf16>, vector<2x256xf32> -> vector<2x256xf32>
    %30 = arith.select %18, %25, %26 : vector<2x256xi1>, vector<2x256xf32>
    %31 = arith.addf %30, %29 : vector<2x256xf32>
    %c0_11 = arith.constant 0 : index
    %c0_12 = arith.constant 0 : index
    %32 = vector.load %arg5[%c0_11, %c0_12] : memref<1x256xf32, #tpu.memory_space<vmem>>, vector<1x256xf32>
    %33 = vector.broadcast %32 : vector<1x256xf32> to vector<2x256xf32>
    %34 = arith.addf %31, %33 : vector<2x256xf32>
    %35 = vector.extract_strided_slice %34 {offsets = [0, 0], sizes = [2, 64], strides = [1, 1]} : vector<2x256xf32> to vector<2x64xf32>
    %36 = arith.negf %35 : vector<2x64xf32>
    %37 = math.exp %36 : vector<2x64xf32>
    %cst_13 = arith.constant 1.000000e+00 : f32
    %38 = vector.broadcast %cst_13 : f32 to vector<2x64xf32>
    %39 = arith.addf %38, %37 : vector<2x64xf32>
    %40 = arith.divf %38, %39 : vector<2x64xf32>
    %41 = vector.extract_strided_slice %34 {offsets = [0, 64], sizes = [2, 64], strides = [1, 1]} : vector<2x256xf32> to vector<2x64xf32>
    %42 = arith.negf %41 : vector<2x64xf32>
    %43 = math.exp %42 : vector<2x64xf32>
    %cst_14 = arith.constant 1.000000e+00 : f32
    %44 = vector.broadcast %cst_14 : f32 to vector<2x64xf32>
    %45 = arith.addf %44, %43 : vector<2x64xf32>
    %46 = arith.divf %44, %45 : vector<2x64xf32>
    %47 = vector.extract_strided_slice %34 {offsets = [0, 128], sizes = [2, 64], strides = [1, 1]} : vector<2x256xf32> to vector<2x64xf32>
    %48 = math.tanh %47 : vector<2x64xf32>
    %49 = vector.extract_strided_slice %34 {offsets = [0, 192], sizes = [2, 64], strides = [1, 1]} : vector<2x256xf32> to vector<2x64xf32>
    %50 = arith.negf %49 : vector<2x64xf32>
    %51 = math.exp %50 : vector<2x64xf32>
    %cst_15 = arith.constant 1.000000e+00 : f32
    %52 = vector.broadcast %cst_15 : f32 to vector<2x64xf32>
    %53 = arith.addf %52, %51 : vector<2x64xf32>
    %54 = arith.divf %52, %53 : vector<2x64xf32>
    %55 = arith.mulf %46, %24 : vector<2x64xf32>
    %56 = arith.mulf %40, %48 : vector<2x64xf32>
    %57 = arith.addf %55, %56 : vector<2x64xf32>
    %58 = math.tanh %57 : vector<2x64xf32>
    %59 = arith.mulf %54, %58 : vector<2x64xf32>
    %60 = vector.extract_strided_slice %22 {offsets = [2, 0], sizes = [2, 256], strides = [1, 1]} : vector<8x256xf32> to vector<2x256xf32>
    %61 = vector.extract_strided_slice %22 {offsets = [4, 0], sizes = [2, 256], strides = [1, 1]} : vector<8x256xf32> to vector<2x256xf32>
    %62 = arith.truncf %59 : vector<2x64xf32> to vector<2x64xbf16>
    %c0_16 = arith.constant 0 : index
    %c0_17 = arith.constant 0 : index
    %63 = vector.load %arg4[%c0_16, %c0_17] : memref<64x256xbf16, #tpu.memory_space<vmem>>, vector<64x256xbf16>
    %cst_18 = arith.constant dense<0.000000e+00> : vector<2x256xf32>
    %64 = tpu.matmul %62, %63, %cst_18 {dimension_numbers = #tpu.dot_dimension_numbers<[1], [0], [0], [1], [0, 0, 1, 1], [], []>} : vector<2x64xbf16>, vector<64x256xbf16>, vector<2x256xf32> -> vector<2x256xf32>
    %65 = arith.select %18, %60, %61 : vector<2x256xi1>, vector<2x256xf32>
    %66 = arith.addf %65, %64 : vector<2x256xf32>
    %c0_19 = arith.constant 0 : index
    %c0_20 = arith.constant 0 : index
    %67 = vector.load %arg5[%c0_19, %c0_20] : memref<1x256xf32, #tpu.memory_space<vmem>>, vector<1x256xf32>
    %68 = vector.broadcast %67 : vector<1x256xf32> to vector<2x256xf32>
    %69 = arith.addf %66, %68 : vector<2x256xf32>
    %70 = vector.extract_strided_slice %69 {offsets = [0, 0], sizes = [2, 64], strides = [1, 1]} : vector<2x256xf32> to vector<2x64xf32>
    %71 = arith.negf %70 : vector<2x64xf32>
    %72 = math.exp %71 : vector<2x64xf32>
    %cst_21 = arith.constant 1.000000e+00 : f32
    %73 = vector.broadcast %cst_21 : f32 to vector<2x64xf32>
    %74 = arith.addf %73, %72 : vector<2x64xf32>
    %75 = arith.divf %73, %74 : vector<2x64xf32>
    %76 = vector.extract_strided_slice %69 {offsets = [0, 64], sizes = [2, 64], strides = [1, 1]} : vector<2x256xf32> to vector<2x64xf32>
    %77 = arith.negf %76 : vector<2x64xf32>
    %78 = math.exp %77 : vector<2x64xf32>
    %cst_22 = arith.constant 1.000000e+00 : f32
    %79 = vector.broadcast %cst_22 : f32 to vector<2x64xf32>
    %80 = arith.addf %79, %78 : vector<2x64xf32>
    %81 = arith.divf %79, %80 : vector<2x64xf32>
    %82 = vector.extract_strided_slice %69 {offsets = [0, 128], sizes = [2, 64], strides = [1, 1]} : vector<2x256xf32> to vector<2x64xf32>
    %83 = math.tanh %82 : vector<2x64xf32>
    %84 = vector.extract_strided_slice %69 {offsets = [0, 192], sizes = [2, 64], strides = [1, 1]} : vector<2x256xf32> to vector<2x64xf32>
    %85 = arith.negf %84 : vector<2x64xf32>
    %86 = math.exp %85 : vector<2x64xf32>
    %cst_23 = arith.constant 1.000000e+00 : f32
    %87 = vector.broadcast %cst_23 : f32 to vector<2x64xf32>
    %88 = arith.addf %87, %86 : vector<2x64xf32>
    %89 = arith.divf %87, %88 : vector<2x64xf32>
    %90 = arith.mulf %81, %57 : vector<2x64xf32>
    %91 = arith.mulf %75, %83 : vector<2x64xf32>
    %92 = arith.addf %90, %91 : vector<2x64xf32>
    %93 = math.tanh %92 : vector<2x64xf32>
    %94 = arith.mulf %89, %93 : vector<2x64xf32>
    %95 = vector.extract_strided_slice %22 {offsets = [4, 0], sizes = [2, 256], strides = [1, 1]} : vector<8x256xf32> to vector<2x256xf32>
    %96 = vector.extract_strided_slice %22 {offsets = [2, 0], sizes = [2, 256], strides = [1, 1]} : vector<8x256xf32> to vector<2x256xf32>
    %97 = arith.truncf %94 : vector<2x64xf32> to vector<2x64xbf16>
    %c0_24 = arith.constant 0 : index
    %c0_25 = arith.constant 0 : index
    %98 = vector.load %arg4[%c0_24, %c0_25] : memref<64x256xbf16, #tpu.memory_space<vmem>>, vector<64x256xbf16>
    %cst_26 = arith.constant dense<0.000000e+00> : vector<2x256xf32>
    %99 = tpu.matmul %97, %98, %cst_26 {dimension_numbers = #tpu.dot_dimension_numbers<[1], [0], [0], [1], [0, 0, 1, 1], [], []>} : vector<2x64xbf16>, vector<64x256xbf16>, vector<2x256xf32> -> vector<2x256xf32>
    %100 = arith.select %18, %95, %96 : vector<2x256xi1>, vector<2x256xf32>
    %101 = arith.addf %100, %99 : vector<2x256xf32>
    %c0_27 = arith.constant 0 : index
    %c0_28 = arith.constant 0 : index
    %102 = vector.load %arg5[%c0_27, %c0_28] : memref<1x256xf32, #tpu.memory_space<vmem>>, vector<1x256xf32>
    %103 = vector.broadcast %102 : vector<1x256xf32> to vector<2x256xf32>
    %104 = arith.addf %101, %103 : vector<2x256xf32>
    %105 = vector.extract_strided_slice %104 {offsets = [0, 0], sizes = [2, 64], strides = [1, 1]} : vector<2x256xf32> to vector<2x64xf32>
    %106 = arith.negf %105 : vector<2x64xf32>
    %107 = math.exp %106 : vector<2x64xf32>
    %cst_29 = arith.constant 1.000000e+00 : f32
    %108 = vector.broadcast %cst_29 : f32 to vector<2x64xf32>
    %109 = arith.addf %108, %107 : vector<2x64xf32>
    %110 = arith.divf %108, %109 : vector<2x64xf32>
    %111 = vector.extract_strided_slice %104 {offsets = [0, 64], sizes = [2, 64], strides = [1, 1]} : vector<2x256xf32> to vector<2x64xf32>
    %112 = arith.negf %111 : vector<2x64xf32>
    %113 = math.exp %112 : vector<2x64xf32>
    %cst_30 = arith.constant 1.000000e+00 : f32
    %114 = vector.broadcast %cst_30 : f32 to vector<2x64xf32>
    %115 = arith.addf %114, %113 : vector<2x64xf32>
    %116 = arith.divf %114, %115 : vector<2x64xf32>
    %117 = vector.extract_strided_slice %104 {offsets = [0, 128], sizes = [2, 64], strides = [1, 1]} : vector<2x256xf32> to vector<2x64xf32>
    %118 = math.tanh %117 : vector<2x64xf32>
    %119 = vector.extract_strided_slice %104 {offsets = [0, 192], sizes = [2, 64], strides = [1, 1]} : vector<2x256xf32> to vector<2x64xf32>
    %120 = arith.negf %119 : vector<2x64xf32>
    %121 = math.exp %120 : vector<2x64xf32>
    %cst_31 = arith.constant 1.000000e+00 : f32
    %122 = vector.broadcast %cst_31 : f32 to vector<2x64xf32>
    %123 = arith.addf %122, %121 : vector<2x64xf32>
    %124 = arith.divf %122, %123 : vector<2x64xf32>
    %125 = arith.mulf %116, %92 : vector<2x64xf32>
    %126 = arith.mulf %110, %118 : vector<2x64xf32>
    %127 = arith.addf %125, %126 : vector<2x64xf32>
    %128 = math.tanh %127 : vector<2x64xf32>
    %129 = arith.mulf %124, %128 : vector<2x64xf32>
    %130 = vector.extract_strided_slice %22 {offsets = [6, 0], sizes = [2, 256], strides = [1, 1]} : vector<8x256xf32> to vector<2x256xf32>
    %131 = vector.extract_strided_slice %22 {offsets = [0, 0], sizes = [2, 256], strides = [1, 1]} : vector<8x256xf32> to vector<2x256xf32>
    %132 = arith.truncf %129 : vector<2x64xf32> to vector<2x64xbf16>
    %c0_32 = arith.constant 0 : index
    %c0_33 = arith.constant 0 : index
    %133 = vector.load %arg4[%c0_32, %c0_33] : memref<64x256xbf16, #tpu.memory_space<vmem>>, vector<64x256xbf16>
    %cst_34 = arith.constant dense<0.000000e+00> : vector<2x256xf32>
    %134 = tpu.matmul %132, %133, %cst_34 {dimension_numbers = #tpu.dot_dimension_numbers<[1], [0], [0], [1], [0, 0, 1, 1], [], []>} : vector<2x64xbf16>, vector<64x256xbf16>, vector<2x256xf32> -> vector<2x256xf32>
    %135 = arith.select %18, %130, %131 : vector<2x256xi1>, vector<2x256xf32>
    %136 = arith.addf %135, %134 : vector<2x256xf32>
    %c0_35 = arith.constant 0 : index
    %c0_36 = arith.constant 0 : index
    %137 = vector.load %arg5[%c0_35, %c0_36] : memref<1x256xf32, #tpu.memory_space<vmem>>, vector<1x256xf32>
    %138 = vector.broadcast %137 : vector<1x256xf32> to vector<2x256xf32>
    %139 = arith.addf %136, %138 : vector<2x256xf32>
    %140 = vector.extract_strided_slice %139 {offsets = [0, 0], sizes = [2, 64], strides = [1, 1]} : vector<2x256xf32> to vector<2x64xf32>
    %141 = arith.negf %140 : vector<2x64xf32>
    %142 = math.exp %141 : vector<2x64xf32>
    %cst_37 = arith.constant 1.000000e+00 : f32
    %143 = vector.broadcast %cst_37 : f32 to vector<2x64xf32>
    %144 = arith.addf %143, %142 : vector<2x64xf32>
    %145 = arith.divf %143, %144 : vector<2x64xf32>
    %146 = vector.extract_strided_slice %139 {offsets = [0, 64], sizes = [2, 64], strides = [1, 1]} : vector<2x256xf32> to vector<2x64xf32>
    %147 = arith.negf %146 : vector<2x64xf32>
    %148 = math.exp %147 : vector<2x64xf32>
    %cst_38 = arith.constant 1.000000e+00 : f32
    %149 = vector.broadcast %cst_38 : f32 to vector<2x64xf32>
    %150 = arith.addf %149, %148 : vector<2x64xf32>
    %151 = arith.divf %149, %150 : vector<2x64xf32>
    %152 = vector.extract_strided_slice %139 {offsets = [0, 128], sizes = [2, 64], strides = [1, 1]} : vector<2x256xf32> to vector<2x64xf32>
    %153 = math.tanh %152 : vector<2x64xf32>
    %154 = vector.extract_strided_slice %139 {offsets = [0, 192], sizes = [2, 64], strides = [1, 1]} : vector<2x256xf32> to vector<2x64xf32>
    %155 = arith.negf %154 : vector<2x64xf32>
    %156 = math.exp %155 : vector<2x64xf32>
    %cst_39 = arith.constant 1.000000e+00 : f32
    %157 = vector.broadcast %cst_39 : f32 to vector<2x64xf32>
    %158 = arith.addf %157, %156 : vector<2x64xf32>
    %159 = arith.divf %157, %158 : vector<2x64xf32>
    %160 = arith.mulf %151, %127 : vector<2x64xf32>
    %161 = arith.mulf %145, %153 : vector<2x64xf32>
    %162 = arith.addf %160, %161 : vector<2x64xf32>
    %163 = math.tanh %162 : vector<2x64xf32>
    %164 = arith.mulf %159, %163 : vector<2x64xf32>
    %165 = vector.extract_strided_slice %59 {offsets = [0, 0], sizes = [2, 32], strides = [1, 1]} : vector<2x64xf32> to vector<2x32xf32>
    %166 = vector.extract_strided_slice %164 {offsets = [0, 32], sizes = [2, 32], strides = [1, 1]} : vector<2x64xf32> to vector<2x32xf32>
    %167 = tpu.concatenate %165, %166 in 1 : vector<2x32xf32>, vector<2x32xf32> -> vector<2x64xf32>
    %168 = vector.extract_strided_slice %94 {offsets = [0, 0], sizes = [2, 32], strides = [1, 1]} : vector<2x64xf32> to vector<2x32xf32>
    %169 = vector.extract_strided_slice %129 {offsets = [0, 32], sizes = [2, 32], strides = [1, 1]} : vector<2x64xf32> to vector<2x32xf32>
    %170 = tpu.concatenate %168, %169 in 1 : vector<2x32xf32>, vector<2x32xf32> -> vector<2x64xf32>
    %171 = vector.extract_strided_slice %129 {offsets = [0, 0], sizes = [2, 32], strides = [1, 1]} : vector<2x64xf32> to vector<2x32xf32>
    %172 = vector.extract_strided_slice %94 {offsets = [0, 32], sizes = [2, 32], strides = [1, 1]} : vector<2x64xf32> to vector<2x32xf32>
    %173 = tpu.concatenate %171, %172 in 1 : vector<2x32xf32>, vector<2x32xf32> -> vector<2x64xf32>
    %174 = vector.extract_strided_slice %164 {offsets = [0, 0], sizes = [2, 32], strides = [1, 1]} : vector<2x64xf32> to vector<2x32xf32>
    %175 = vector.extract_strided_slice %59 {offsets = [0, 32], sizes = [2, 32], strides = [1, 1]} : vector<2x64xf32> to vector<2x32xf32>
    %176 = tpu.concatenate %174, %175 in 1 : vector<2x32xf32>, vector<2x32xf32> -> vector<2x64xf32>
    %177 = tpu.concatenate %167, %170, %173, %176 in 0 : vector<2x64xf32>, vector<2x64xf32>, vector<2x64xf32>, vector<2x64xf32> -> vector<8x64xf32>
    %178 = arith.truncf %177 : vector<8x64xf32> to vector<8x64xbf16>
    %c0_40 = arith.constant 0 : index
    %c0_41 = arith.constant 0 : index
    %179 = vector.load %arg6[%c0_40, %c0_41] : memref<64x256xbf16, #tpu.memory_space<vmem>>, vector<64x256xbf16>
    %cst_42 = arith.constant dense<0.000000e+00> : vector<8x256xf32>
    %180 = tpu.matmul %178, %179, %cst_42 {dimension_numbers = #tpu.dot_dimension_numbers<[1], [0], [0], [1], [0, 0, 1, 1], [], []>} : vector<8x64xbf16>, vector<64x256xbf16>, vector<8x256xf32> -> vector<8x256xf32>
    %cst_43 = arith.constant 0.000000e+00 : f32
    %181 = vector.broadcast %cst_43 : f32 to vector<2x64xf32>
    %cst_44 = arith.constant 0.000000e+00 : f32
    %182 = vector.broadcast %cst_44 : f32 to vector<2x64xf32>
    %183 = vector.extract_strided_slice %180 {offsets = [0, 0], sizes = [2, 256], strides = [1, 1]} : vector<8x256xf32> to vector<2x256xf32>
    %184 = vector.extract_strided_slice %180 {offsets = [6, 0], sizes = [2, 256], strides = [1, 1]} : vector<8x256xf32> to vector<2x256xf32>
    %185 = arith.truncf %181 : vector<2x64xf32> to vector<2x64xbf16>
    %c0_45 = arith.constant 0 : index
    %c0_46 = arith.constant 0 : index
    %186 = vector.load %arg7[%c0_45, %c0_46] : memref<64x256xbf16, #tpu.memory_space<vmem>>, vector<64x256xbf16>
    %cst_47 = arith.constant dense<0.000000e+00> : vector<2x256xf32>
    %187 = tpu.matmul %185, %186, %cst_47 {dimension_numbers = #tpu.dot_dimension_numbers<[1], [0], [0], [1], [0, 0, 1, 1], [], []>} : vector<2x64xbf16>, vector<64x256xbf16>, vector<2x256xf32> -> vector<2x256xf32>
    %188 = arith.select %18, %183, %184 : vector<2x256xi1>, vector<2x256xf32>
    %189 = arith.addf %188, %187 : vector<2x256xf32>
    %c0_48 = arith.constant 0 : index
    %c0_49 = arith.constant 0 : index
    %190 = vector.load %arg8[%c0_48, %c0_49] : memref<1x256xf32, #tpu.memory_space<vmem>>, vector<1x256xf32>
    %191 = vector.broadcast %190 : vector<1x256xf32> to vector<2x256xf32>
    %192 = arith.addf %189, %191 : vector<2x256xf32>
    %193 = vector.extract_strided_slice %192 {offsets = [0, 0], sizes = [2, 64], strides = [1, 1]} : vector<2x256xf32> to vector<2x64xf32>
    %194 = arith.negf %193 : vector<2x64xf32>
    %195 = math.exp %194 : vector<2x64xf32>
    %cst_50 = arith.constant 1.000000e+00 : f32
    %196 = vector.broadcast %cst_50 : f32 to vector<2x64xf32>
    %197 = arith.addf %196, %195 : vector<2x64xf32>
    %198 = arith.divf %196, %197 : vector<2x64xf32>
    %199 = vector.extract_strided_slice %192 {offsets = [0, 64], sizes = [2, 64], strides = [1, 1]} : vector<2x256xf32> to vector<2x64xf32>
    %200 = arith.negf %199 : vector<2x64xf32>
    %201 = math.exp %200 : vector<2x64xf32>
    %cst_51 = arith.constant 1.000000e+00 : f32
    %202 = vector.broadcast %cst_51 : f32 to vector<2x64xf32>
    %203 = arith.addf %202, %201 : vector<2x64xf32>
    %204 = arith.divf %202, %203 : vector<2x64xf32>
    %205 = vector.extract_strided_slice %192 {offsets = [0, 128], sizes = [2, 64], strides = [1, 1]} : vector<2x256xf32> to vector<2x64xf32>
    %206 = math.tanh %205 : vector<2x64xf32>
    %207 = vector.extract_strided_slice %192 {offsets = [0, 192], sizes = [2, 64], strides = [1, 1]} : vector<2x256xf32> to vector<2x64xf32>
    %208 = arith.negf %207 : vector<2x64xf32>
    %209 = math.exp %208 : vector<2x64xf32>
    %cst_52 = arith.constant 1.000000e+00 : f32
    %210 = vector.broadcast %cst_52 : f32 to vector<2x64xf32>
    %211 = arith.addf %210, %209 : vector<2x64xf32>
    %212 = arith.divf %210, %211 : vector<2x64xf32>
    %213 = arith.mulf %204, %182 : vector<2x64xf32>
    %214 = arith.mulf %198, %206 : vector<2x64xf32>
    %215 = arith.addf %213, %214 : vector<2x64xf32>
    %216 = math.tanh %215 : vector<2x64xf32>
    %217 = arith.mulf %212, %216 : vector<2x64xf32>
    %218 = vector.extract_strided_slice %180 {offsets = [2, 0], sizes = [2, 256], strides = [1, 1]} : vector<8x256xf32> to vector<2x256xf32>
    %219 = vector.extract_strided_slice %180 {offsets = [4, 0], sizes = [2, 256], strides = [1, 1]} : vector<8x256xf32> to vector<2x256xf32>
    %220 = arith.truncf %217 : vector<2x64xf32> to vector<2x64xbf16>
    %c0_53 = arith.constant 0 : index
    %c0_54 = arith.constant 0 : index
    %221 = vector.load %arg7[%c0_53, %c0_54] : memref<64x256xbf16, #tpu.memory_space<vmem>>, vector<64x256xbf16>
    %cst_55 = arith.constant dense<0.000000e+00> : vector<2x256xf32>
    %222 = tpu.matmul %220, %221, %cst_55 {dimension_numbers = #tpu.dot_dimension_numbers<[1], [0], [0], [1], [0, 0, 1, 1], [], []>} : vector<2x64xbf16>, vector<64x256xbf16>, vector<2x256xf32> -> vector<2x256xf32>
    %223 = arith.select %18, %218, %219 : vector<2x256xi1>, vector<2x256xf32>
    %224 = arith.addf %223, %222 : vector<2x256xf32>
    %c0_56 = arith.constant 0 : index
    %c0_57 = arith.constant 0 : index
    %225 = vector.load %arg8[%c0_56, %c0_57] : memref<1x256xf32, #tpu.memory_space<vmem>>, vector<1x256xf32>
    %226 = vector.broadcast %225 : vector<1x256xf32> to vector<2x256xf32>
    %227 = arith.addf %224, %226 : vector<2x256xf32>
    %228 = vector.extract_strided_slice %227 {offsets = [0, 0], sizes = [2, 64], strides = [1, 1]} : vector<2x256xf32> to vector<2x64xf32>
    %229 = arith.negf %228 : vector<2x64xf32>
    %230 = math.exp %229 : vector<2x64xf32>
    %cst_58 = arith.constant 1.000000e+00 : f32
    %231 = vector.broadcast %cst_58 : f32 to vector<2x64xf32>
    %232 = arith.addf %231, %230 : vector<2x64xf32>
    %233 = arith.divf %231, %232 : vector<2x64xf32>
    %234 = vector.extract_strided_slice %227 {offsets = [0, 64], sizes = [2, 64], strides = [1, 1]} : vector<2x256xf32> to vector<2x64xf32>
    %235 = arith.negf %234 : vector<2x64xf32>
    %236 = math.exp %235 : vector<2x64xf32>
    %cst_59 = arith.constant 1.000000e+00 : f32
    %237 = vector.broadcast %cst_59 : f32 to vector<2x64xf32>
    %238 = arith.addf %237, %236 : vector<2x64xf32>
    %239 = arith.divf %237, %238 : vector<2x64xf32>
    %240 = vector.extract_strided_slice %227 {offsets = [0, 128], sizes = [2, 64], strides = [1, 1]} : vector<2x256xf32> to vector<2x64xf32>
    %241 = math.tanh %240 : vector<2x64xf32>
    %242 = vector.extract_strided_slice %227 {offsets = [0, 192], sizes = [2, 64], strides = [1, 1]} : vector<2x256xf32> to vector<2x64xf32>
    %243 = arith.negf %242 : vector<2x64xf32>
    %244 = math.exp %243 : vector<2x64xf32>
    %cst_60 = arith.constant 1.000000e+00 : f32
    %245 = vector.broadcast %cst_60 : f32 to vector<2x64xf32>
    %246 = arith.addf %245, %244 : vector<2x64xf32>
    %247 = arith.divf %245, %246 : vector<2x64xf32>
    %248 = arith.mulf %239, %215 : vector<2x64xf32>
    %249 = arith.mulf %233, %241 : vector<2x64xf32>
    %250 = arith.addf %248, %249 : vector<2x64xf32>
    %251 = math.tanh %250 : vector<2x64xf32>
    %252 = arith.mulf %247, %251 : vector<2x64xf32>
    %253 = vector.extract_strided_slice %180 {offsets = [4, 0], sizes = [2, 256], strides = [1, 1]} : vector<8x256xf32> to vector<2x256xf32>
    %254 = vector.extract_strided_slice %180 {offsets = [2, 0], sizes = [2, 256], strides = [1, 1]} : vector<8x256xf32> to vector<2x256xf32>
    %255 = arith.truncf %252 : vector<2x64xf32> to vector<2x64xbf16>
    %c0_61 = arith.constant 0 : index
    %c0_62 = arith.constant 0 : index
    %256 = vector.load %arg7[%c0_61, %c0_62] : memref<64x256xbf16, #tpu.memory_space<vmem>>, vector<64x256xbf16>
    %cst_63 = arith.constant dense<0.000000e+00> : vector<2x256xf32>
    %257 = tpu.matmul %255, %256, %cst_63 {dimension_numbers = #tpu.dot_dimension_numbers<[1], [0], [0], [1], [0, 0, 1, 1], [], []>} : vector<2x64xbf16>, vector<64x256xbf16>, vector<2x256xf32> -> vector<2x256xf32>
    %258 = arith.select %18, %253, %254 : vector<2x256xi1>, vector<2x256xf32>
    %259 = arith.addf %258, %257 : vector<2x256xf32>
    %c0_64 = arith.constant 0 : index
    %c0_65 = arith.constant 0 : index
    %260 = vector.load %arg8[%c0_64, %c0_65] : memref<1x256xf32, #tpu.memory_space<vmem>>, vector<1x256xf32>
    %261 = vector.broadcast %260 : vector<1x256xf32> to vector<2x256xf32>
    %262 = arith.addf %259, %261 : vector<2x256xf32>
    %263 = vector.extract_strided_slice %262 {offsets = [0, 0], sizes = [2, 64], strides = [1, 1]} : vector<2x256xf32> to vector<2x64xf32>
    %264 = arith.negf %263 : vector<2x64xf32>
    %265 = math.exp %264 : vector<2x64xf32>
    %cst_66 = arith.constant 1.000000e+00 : f32
    %266 = vector.broadcast %cst_66 : f32 to vector<2x64xf32>
    %267 = arith.addf %266, %265 : vector<2x64xf32>
    %268 = arith.divf %266, %267 : vector<2x64xf32>
    %269 = vector.extract_strided_slice %262 {offsets = [0, 64], sizes = [2, 64], strides = [1, 1]} : vector<2x256xf32> to vector<2x64xf32>
    %270 = arith.negf %269 : vector<2x64xf32>
    %271 = math.exp %270 : vector<2x64xf32>
    %cst_67 = arith.constant 1.000000e+00 : f32
    %272 = vector.broadcast %cst_67 : f32 to vector<2x64xf32>
    %273 = arith.addf %272, %271 : vector<2x64xf32>
    %274 = arith.divf %272, %273 : vector<2x64xf32>
    %275 = vector.extract_strided_slice %262 {offsets = [0, 128], sizes = [2, 64], strides = [1, 1]} : vector<2x256xf32> to vector<2x64xf32>
    %276 = math.tanh %275 : vector<2x64xf32>
    %277 = vector.extract_strided_slice %262 {offsets = [0, 192], sizes = [2, 64], strides = [1, 1]} : vector<2x256xf32> to vector<2x64xf32>
    %278 = arith.negf %277 : vector<2x64xf32>
    %279 = math.exp %278 : vector<2x64xf32>
    %cst_68 = arith.constant 1.000000e+00 : f32
    %280 = vector.broadcast %cst_68 : f32 to vector<2x64xf32>
    %281 = arith.addf %280, %279 : vector<2x64xf32>
    %282 = arith.divf %280, %281 : vector<2x64xf32>
    %283 = arith.mulf %274, %250 : vector<2x64xf32>
    %284 = arith.mulf %268, %276 : vector<2x64xf32>
    %285 = arith.addf %283, %284 : vector<2x64xf32>
    %286 = math.tanh %285 : vector<2x64xf32>
    %287 = arith.mulf %282, %286 : vector<2x64xf32>
    %288 = vector.extract_strided_slice %180 {offsets = [6, 0], sizes = [2, 256], strides = [1, 1]} : vector<8x256xf32> to vector<2x256xf32>
    %289 = vector.extract_strided_slice %180 {offsets = [0, 0], sizes = [2, 256], strides = [1, 1]} : vector<8x256xf32> to vector<2x256xf32>
    %290 = arith.truncf %287 : vector<2x64xf32> to vector<2x64xbf16>
    %c0_69 = arith.constant 0 : index
    %c0_70 = arith.constant 0 : index
    %291 = vector.load %arg7[%c0_69, %c0_70] : memref<64x256xbf16, #tpu.memory_space<vmem>>, vector<64x256xbf16>
    %cst_71 = arith.constant dense<0.000000e+00> : vector<2x256xf32>
    %292 = tpu.matmul %290, %291, %cst_71 {dimension_numbers = #tpu.dot_dimension_numbers<[1], [0], [0], [1], [0, 0, 1, 1], [], []>} : vector<2x64xbf16>, vector<64x256xbf16>, vector<2x256xf32> -> vector<2x256xf32>
    %293 = arith.select %18, %288, %289 : vector<2x256xi1>, vector<2x256xf32>
    %294 = arith.addf %293, %292 : vector<2x256xf32>
    %c0_72 = arith.constant 0 : index
    %c0_73 = arith.constant 0 : index
    %295 = vector.load %arg8[%c0_72, %c0_73] : memref<1x256xf32, #tpu.memory_space<vmem>>, vector<1x256xf32>
    %296 = vector.broadcast %295 : vector<1x256xf32> to vector<2x256xf32>
    %297 = arith.addf %294, %296 : vector<2x256xf32>
    %298 = vector.extract_strided_slice %297 {offsets = [0, 0], sizes = [2, 64], strides = [1, 1]} : vector<2x256xf32> to vector<2x64xf32>
    %299 = arith.negf %298 : vector<2x64xf32>
    %300 = math.exp %299 : vector<2x64xf32>
    %cst_74 = arith.constant 1.000000e+00 : f32
    %301 = vector.broadcast %cst_74 : f32 to vector<2x64xf32>
    %302 = arith.addf %301, %300 : vector<2x64xf32>
    %303 = arith.divf %301, %302 : vector<2x64xf32>
    %304 = vector.extract_strided_slice %297 {offsets = [0, 64], sizes = [2, 64], strides = [1, 1]} : vector<2x256xf32> to vector<2x64xf32>
    %305 = arith.negf %304 : vector<2x64xf32>
    %306 = math.exp %305 : vector<2x64xf32>
    %cst_75 = arith.constant 1.000000e+00 : f32
    %307 = vector.broadcast %cst_75 : f32 to vector<2x64xf32>
    %308 = arith.addf %307, %306 : vector<2x64xf32>
    %309 = arith.divf %307, %308 : vector<2x64xf32>
    %310 = vector.extract_strided_slice %297 {offsets = [0, 128], sizes = [2, 64], strides = [1, 1]} : vector<2x256xf32> to vector<2x64xf32>
    %311 = math.tanh %310 : vector<2x64xf32>
    %312 = vector.extract_strided_slice %297 {offsets = [0, 192], sizes = [2, 64], strides = [1, 1]} : vector<2x256xf32> to vector<2x64xf32>
    %313 = arith.negf %312 : vector<2x64xf32>
    %314 = math.exp %313 : vector<2x64xf32>
    %cst_76 = arith.constant 1.000000e+00 : f32
    %315 = vector.broadcast %cst_76 : f32 to vector<2x64xf32>
    %316 = arith.addf %315, %314 : vector<2x64xf32>
    %317 = arith.divf %315, %316 : vector<2x64xf32>
    %318 = arith.mulf %309, %285 : vector<2x64xf32>
    %319 = arith.mulf %303, %311 : vector<2x64xf32>
    %320 = arith.addf %318, %319 : vector<2x64xf32>
    %321 = math.tanh %320 : vector<2x64xf32>
    %322 = arith.mulf %317, %321 : vector<2x64xf32>
    %323 = vector.extract_strided_slice %322 {offsets = [0, 0], sizes = [2, 32], strides = [1, 1]} : vector<2x64xf32> to vector<2x32xf32>
    %324 = vector.extract_strided_slice %217 {offsets = [0, 32], sizes = [2, 32], strides = [1, 1]} : vector<2x64xf32> to vector<2x32xf32>
    %325 = tpu.concatenate %323, %324 in 1 : vector<2x32xf32>, vector<2x32xf32> -> vector<2x64xf32>
    %326 = arith.truncf %325 : vector<2x64xf32> to vector<2x64xbf16>
    %c0_77 = arith.constant 0 : index
    %c0_78 = arith.constant 0 : index
    %327 = vector.load %arg9[%c0_77, %c0_78] : memref<64x32xbf16, #tpu.memory_space<vmem>>, vector<64x32xbf16>
    %cst_79 = arith.constant dense<0.000000e+00> : vector<2x32xf32>
    %328 = tpu.matmul %326, %327, %cst_79 {dimension_numbers = #tpu.dot_dimension_numbers<[1], [0], [0], [1], [0, 0, 1, 1], [], []>} : vector<2x64xbf16>, vector<64x32xbf16>, vector<2x32xf32> -> vector<2x32xf32>
    %c0_80 = arith.constant 0 : index
    %c0_81 = arith.constant 0 : index
    %329 = vector.load %arg10[%c0_80, %c0_81] : memref<1x32xf32, #tpu.memory_space<vmem>>, vector<1x32xf32>
    %330 = vector.broadcast %329 : vector<1x32xf32> to vector<2x32xf32>
    %331 = arith.addf %328, %330 : vector<2x32xf32>
    %c0_82 = arith.constant 0 : index
    %c0_83 = arith.constant 0 : index
    %332 = vector.load %arg2[%c0_82, %c0_83] : memref<2x32xf32, #tpu.memory_space<vmem>>, vector<2x32xf32>
    %333 = tpu.concatenate %331, %332 in 1 : vector<2x32xf32>, vector<2x32xf32> -> vector<2x64xf32>
    %c0_84 = arith.constant 0 : index
    %c0_85 = arith.constant 0 : index
    %334 = vector.load %arg21[%c0_84, %c0_85] : memref<2x64xf32, #tpu.memory_space<vmem>>, vector<2x64xf32>
    tpu.vector_store %arg21[%c0_84, %c0_85], %333 {strides = array<i32>} : memref<2x64xf32, #tpu.memory_space<vmem>>, vector<2x64xf32>,
    %335 = arith.truncf %333 : vector<2x64xf32> to vector<2x64xbf16>
    %c0_86 = arith.constant 0 : index
    %c0_87 = arith.constant 0 : index
    %336 = vector.load %arg11[%c0_86, %c0_87] : memref<64x256xbf16, #tpu.memory_space<vmem>>, vector<64x256xbf16>
    %cst_88 = arith.constant dense<0.000000e+00> : vector<2x256xf32>
    %337 = tpu.matmul %335, %336, %cst_88 {dimension_numbers = #tpu.dot_dimension_numbers<[1], [0], [0], [1], [0, 0, 1, 1], [], []>} : vector<2x64xbf16>, vector<64x256xbf16>, vector<2x256xf32> -> vector<2x256xf32>
    %c0_89 = arith.constant 0 : index
    %c0_90 = arith.constant 0 : index
    %338 = vector.load %arg12[%c0_89, %c0_90] : memref<1x256xf32, #tpu.memory_space<vmem>>, vector<1x256xf32>
    %339 = vector.broadcast %338 : vector<1x256xf32> to vector<2x256xf32>
    %340 = arith.addf %337, %339 : vector<2x256xf32>
    %cst_91 = arith.constant 0.000000e+00 : f32
    %341 = vector.broadcast %cst_91 : f32 to vector<2x256xf32>
    %342 = arith.maximumf %340, %341 : vector<2x256xf32>
    %343 = vector.extract_strided_slice %342 {offsets = [0, 0], sizes = [2, 128], strides = [1, 1]} : vector<2x256xf32> to vector<2x128xf32>
    %344 = arith.truncf %343 : vector<2x128xf32> to vector<2x128xbf16>
    %345 = vector.extract_strided_slice %342 {offsets = [0, 128], sizes = [2, 128], strides = [1, 1]} : vector<2x256xf32> to vector<2x128xf32>
    %346 = arith.truncf %345 : vector<2x128xf32> to vector<2x128xbf16>
    %c0_92 = arith.constant 0 : index
    %c0_93 = arith.constant 0 : index
    %347 = vector.load %arg13[%c0_92, %c0_93] : memref<128x64xbf16, #tpu.memory_space<vmem>>, vector<128x64xbf16>
    %cst_94 = arith.constant dense<0.000000e+00> : vector<2x64xf32>
    %348 = tpu.matmul %344, %347, %cst_94 {dimension_numbers = #tpu.dot_dimension_numbers<[1], [0], [0], [1], [0, 0, 1, 1], [], []>} : vector<2x128xbf16>, vector<128x64xbf16>, vector<2x64xf32> -> vector<2x64xf32>
    %c0_95 = arith.constant 0 : index
    %c0_96 = arith.constant 0 : index
    %349 = vector.load %arg14[%c0_95, %c0_96] : memref<1x64xf32, #tpu.memory_space<vmem>>, vector<1x64xf32>
    %350 = vector.broadcast %349 : vector<1x64xf32> to vector<2x64xf32>
    %351 = arith.addf %348, %350 : vector<2x64xf32>
    %cst_97 = arith.constant 0.000000e+00 : f32
    %352 = vector.broadcast %cst_97 : f32 to vector<2x64xf32>
    %353 = arith.maximumf %351, %352 : vector<2x64xf32>
    %354 = arith.truncf %353 : vector<2x64xf32> to vector<2x64xbf16>
    %c0_98 = arith.constant 0 : index
    %c0_99 = arith.constant 0 : index
    %355 = vector.load %arg15[%c0_98, %c0_99] : memref<64x1xbf16, #tpu.memory_space<vmem>>, vector<64x1xbf16>
    %cst_100 = arith.constant dense<0.000000e+00> : vector<2x1xf32>
    %356 = tpu.matmul %354, %355, %cst_100 {dimension_numbers = #tpu.dot_dimension_numbers<[1], [0], [0], [1], [0, 0, 1, 1], [], []>} : vector<2x64xbf16>, vector<64x1xbf16>, vector<2x1xf32> -> vector<2x1xf32>
    %c0_101 = arith.constant 0 : index
    %c0_102 = arith.constant 0 : index
    %357 = vector.load %arg16[%c0_101, %c0_102] : memref<1x1xf32, #tpu.memory_space<vmem>>, vector<1x1xf32>
    %358 = vector.broadcast %357 : vector<1x1xf32> to vector<2x1xf32>
    %359 = arith.addf %356, %358 : vector<2x1xf32>
    %360 = arith.negf %359 : vector<2x1xf32>
    %361 = math.exp %360 : vector<2x1xf32>
    %cst_103 = arith.constant 1.000000e+00 : f32
    %362 = vector.broadcast %cst_103 : f32 to vector<2x1xf32>
    %363 = arith.addf %362, %361 : vector<2x1xf32>
    %364 = arith.divf %362, %363 : vector<2x1xf32>
    %c0_104 = arith.constant 0 : index
    %c0_105 = arith.constant 0 : index
    %365 = vector.load %arg22[%c0_104, %c0_105] : memref<2x1xf32, #tpu.memory_space<vmem>>, vector<2x1xf32>
    tpu.vector_store %arg22[%c0_104, %c0_105], %364 {strides = array<i32>} : memref<2x1xf32, #tpu.memory_space<vmem>>, vector<2x1xf32>,
    %c0_106 = arith.constant 0 : index
    %c0_107 = arith.constant 0 : index
    %366 = vector.load %arg17[%c0_106, %c0_107] : memref<128x256xbf16, #tpu.memory_space<vmem>>, vector<128x256xbf16>
    %cst_108 = arith.constant dense<0.000000e+00> : vector<2x256xf32>
    %367 = tpu.matmul %346, %366, %cst_108 {dimension_numbers = #tpu.dot_dimension_numbers<[1], [0], [0], [1], [0, 0, 1, 1], [], []>} : vector<2x128xbf16>, vector<128x256xbf16>, vector<2x256xf32> -> vector<2x256xf32>
    %c0_109 = arith.constant 0 : index
    %c0_110 = arith.constant 0 : index
    %368 = vector.load %arg18[%c0_109, %c0_110] : memref<1x256xf32, #tpu.memory_space<vmem>>, vector<1x256xf32>
    %369 = vector.broadcast %368 : vector<1x256xf32> to vector<2x256xf32>
    %370 = arith.addf %367, %369 : vector<2x256xf32>
    %cst_111 = arith.constant 0.000000e+00 : f32
    %371 = vector.broadcast %cst_111 : f32 to vector<2x256xf32>
    %372 = arith.maximumf %370, %371 : vector<2x256xf32>
    %373 = arith.truncf %372 : vector<2x256xf32> to vector<2x256xbf16>
    %c0_112 = arith.constant 0 : index
    %c0_113 = arith.constant 0 : index
    %374 = vector.load %arg19[%c0_112, %c0_113] : memref<256x768xbf16, #tpu.memory_space<vmem>>, vector<256x768xbf16>
    %cst_114 = arith.constant dense<0.000000e+00> : vector<2x768xf32>
    %375 = tpu.matmul %373, %374, %cst_114 {dimension_numbers = #tpu.dot_dimension_numbers<[1], [0], [0], [1], [0, 0, 1, 1], [], []>} : vector<2x256xbf16>, vector<256x768xbf16>, vector<2x768xf32> -> vector<2x768xf32>
    %c0_115 = arith.constant 0 : index
    %c0_116 = arith.constant 0 : index
    %376 = vector.load %arg20[%c0_115, %c0_116] : memref<1x768xf32, #tpu.memory_space<vmem>>, vector<1x768xf32>
    %377 = vector.broadcast %376 : vector<1x768xf32> to vector<2x768xf32>
    %378 = arith.addf %375, %377 : vector<2x768xf32>
    %379 = arith.negf %378 : vector<2x768xf32>
    %380 = math.exp %379 : vector<2x768xf32>
    %cst_117 = arith.constant 1.000000e+00 : f32
    %381 = vector.broadcast %cst_117 : f32 to vector<2x768xf32>
    %382 = arith.addf %381, %380 : vector<2x768xf32>
    %383 = arith.divf %381, %382 : vector<2x768xf32>
    %c0_118 = arith.constant 0 : index
    %c0_119 = arith.constant 0 : index
    %384 = vector.load %arg23[%c0_118, %c0_119] : memref<2x768xf32, #tpu.memory_space<vmem>>, vector<2x768xf32>
    tpu.vector_store %arg23[%c0_118, %c0_119], %383 {strides = array<i32>} : memref<2x768xf32, #tpu.memory_space<vmem>>, vector<2x768xf32>,
    return
  }
  func.func @transform_0(%arg0: i32) -> (i32, i32) {
    %c0_i32 = arith.constant 0 : i32
    %c0_i32_0 = arith.constant 0 : i32
    %c0_i32_1 = arith.constant 0 : i32
    return %c0_i32, %c0_i32_0 : i32, i32
  }
  func.func @transform_1(%arg0: i32) -> (i32, i32) {
    %c0_i32 = arith.constant 0 : i32
    %c0_i32_0 = arith.constant 0 : i32
    %c0_i32_1 = arith.constant 0 : i32
    return %c0_i32, %c0_i32_0 : i32, i32
  }
  func.func @transform_2(%arg0: i32) -> (i32, i32) {
    %c0_i32 = arith.constant 0 : i32
    %c0_i32_0 = arith.constant 0 : i32
    %c0_i32_1 = arith.constant 0 : i32
    return %c0_i32, %c0_i32_0 : i32, i32
  }
  func.func @transform_3(%arg0: i32) -> (i32, i32) {
    %c0_i32 = arith.constant 0 : i32
    %c0_i32_0 = arith.constant 0 : i32
    %c0_i32_1 = arith.constant 0 : i32
    return %c0_i32, %c0_i32_0 : i32, i32
  }
  func.func @transform_4(%arg0: i32) -> (i32, i32) {
    %c0_i32 = arith.constant 0 : i32
    %c0_i32_0 = arith.constant 0 : i32
    %c0_i32_1 = arith.constant 0 : i32
    return %c0_i32, %c0_i32_0 : i32, i32
  }
  func.func @transform_5(%arg0: i32) -> (i32, i32) {
    %c0_i32 = arith.constant 0 : i32
    %c0_i32_0 = arith.constant 0 : i32
    %c0_i32_1 = arith.constant 0 : i32
    return %c0_i32, %c0_i32_0 : i32, i32
  }
  func.func @transform_6(%arg0: i32) -> (i32, i32) {
    %c0_i32 = arith.constant 0 : i32
    %c0_i32_0 = arith.constant 0 : i32
    %c0_i32_1 = arith.constant 0 : i32
    return %c0_i32, %c0_i32_0 : i32, i32
  }
  func.func @transform_7(%arg0: i32) -> (i32, i32) {
    %c0_i32 = arith.constant 0 : i32
    %c0_i32_0 = arith.constant 0 : i32
    %c0_i32_1 = arith.constant 0 : i32
    return %c0_i32, %c0_i32_0 : i32, i32
  }
  func.func @transform_8(%arg0: i32) -> (i32, i32) {
    %c0_i32 = arith.constant 0 : i32
    %c0_i32_0 = arith.constant 0 : i32
    %c0_i32_1 = arith.constant 0 : i32
    return %c0_i32, %c0_i32_0 : i32, i32
  }
  func.func @transform_9(%arg0: i32) -> (i32, i32) {
    %c0_i32 = arith.constant 0 : i32
    %c0_i32_0 = arith.constant 0 : i32
    %c0_i32_1 = arith.constant 0 : i32
    return %c0_i32, %c0_i32_0 : i32, i32
  }
  func.func @transform_10(%arg0: i32) -> (i32, i32) {
    %c0_i32 = arith.constant 0 : i32
    %c0_i32_0 = arith.constant 0 : i32
    %c0_i32_1 = arith.constant 0 : i32
    return %c0_i32, %c0_i32_0 : i32, i32
  }
  func.func @transform_11(%arg0: i32) -> (i32, i32) {
    %c0_i32 = arith.constant 0 : i32
    %c0_i32_0 = arith.constant 0 : i32
    %c0_i32_1 = arith.constant 0 : i32
    return %c0_i32, %c0_i32_0 : i32, i32
  }
  func.func @transform_12(%arg0: i32) -> (i32, i32) {
    %c0_i32 = arith.constant 0 : i32
    %c0_i32_0 = arith.constant 0 : i32
    %c0_i32_1 = arith.constant 0 : i32
    return %c0_i32, %c0_i32_0 : i32, i32
  }
  func.func @transform_13(%arg0: i32) -> (i32, i32) {
    %c0_i32 = arith.constant 0 : i32
    %c0_i32_0 = arith.constant 0 : i32
    %c0_i32_1 = arith.constant 0 : i32
    return %c0_i32, %c0_i32_0 : i32, i32
  }
  func.func @transform_14(%arg0: i32) -> (i32, i32) {
    %c0_i32 = arith.constant 0 : i32
    %c0_i32_0 = arith.constant 0 : i32
    %c0_i32_1 = arith.constant 0 : i32
    return %c0_i32, %c0_i32_0 : i32, i32
  }
  func.func @transform_15(%arg0: i32) -> (i32, i32) {
    %c0_i32 = arith.constant 0 : i32
    %c0_i32_0 = arith.constant 0 : i32
    %c0_i32_1 = arith.constant 0 : i32
    return %c0_i32, %c0_i32_0 : i32, i32
  }
  func.func @transform_16(%arg0: i32) -> (i32, i32) {
    %c0_i32 = arith.constant 0 : i32
    %c0_i32_0 = arith.constant 0 : i32
    %c0_i32_1 = arith.constant 0 : i32
    return %c0_i32, %c0_i32_0 : i32, i32
  }
  func.func @transform_17(%arg0: i32) -> (i32, i32) {
    %c0_i32 = arith.constant 0 : i32
    %c0_i32_0 = arith.constant 0 : i32
    %c0_i32_1 = arith.constant 0 : i32
    return %c0_i32, %c0_i32_0 : i32, i32
  }
  func.func @transform_18(%arg0: i32) -> (i32, i32) {
    %c0_i32 = arith.constant 0 : i32
    %c0_i32_0 = arith.constant 0 : i32
    %c0_i32_1 = arith.constant 0 : i32
    return %c0_i32, %c0_i32_0 : i32, i32
  }
  func.func @transform_19(%arg0: i32) -> (i32, i32) {
    %c0_i32 = arith.constant 0 : i32
    %c0_i32_0 = arith.constant 0 : i32
    %c0_i32_1 = arith.constant 0 : i32
    return %c0_i32, %c0_i32_0 : i32, i32
  }
  func.func @transform_20(%arg0: i32) -> (i32, i32) {
    %c0_i32 = arith.constant 0 : i32
    %c0_i32_0 = arith.constant 0 : i32
    %c0_i32_1 = arith.constant 0 : i32
    return %c0_i32, %c0_i32_0 : i32, i32
  }
  func.func @transform_21(%arg0: i32) -> (i32, i32) {
    %c0_i32 = arith.constant 0 : i32
    %c0_i32_0 = arith.constant 0 : i32
    %c0_i32_1 = arith.constant 0 : i32
    return %c0_i32, %c0_i32_0 : i32, i32
  }
  func.func @transform_22(%arg0: i32) -> (i32, i32) {
    %c0_i32 = arith.constant 0 : i32
    %c0_i32_0 = arith.constant 0 : i32
    %c0_i32_1 = arith.constant 0 : i32
    return %c0_i32, %c0_i32_0 : i32, i32
  }
}

</mosaic_0001>

<bundles_post_ra>
// kernel: _lambda_.3
= control target key start
LH: loop header
LB: loop body
LE: loop exit
PB: predicated region body
PF: predicated region fallthrough
CT: control target
= control target key end

     0   :  { %v3134_v1 = vmov 0   ;;  %vm126_vm0 = vcmask 261120   ;;  %v71_v15 = vlaneseq  ;;  %s3135_s30 = smov 64   ;;  %vm219_vm3 = vcmask 523264   ;;  %s4101_s3 = inlined_call_operand.vmem [shape: bf16[64,256], index: 3, kind: input, shape index: {}]   ;;  %s4102_s2 = inlined_call_operand.vmem [shape: bf16[32,256], index: 2, kind: input, shape index: {}]   ;;  %s4103_s0 = inlined_call_operand.vmem [shape: f32[8,32], index: 0, kind: input, shape index: {}]   ;;  %s4104_s4 = inlined_call_operand.vmem [shape: f32[1,256], index: 4, kind: input, shape index: {}]   ;;  %s4105_s5 = inlined_call_operand.vmem [shape: bf16[64,256], index: 5, kind: input, shape index: {}]   ;;  %s4106_s6 = inlined_call_operand.vmem [shape: bf16[64,256], index: 6, kind: input, shape index: {}]   ;;  %s4107_s7 = inlined_call_operand.vmem [shape: f32[1,256], index: 7, kind: input, shape index: {}]   ;;  %s4108_s8 = inlined_call_operand.vmem [shape: bf16[64,32], index: 8, kind: input, shape index: {}]   ;;  %s4109_s1 = inlined_call_operand.vmem [shape: f32[2,32], index: 1, kind: input, shape index: {}]   ;;  %s4110_s10 = inlined_call_operand.vmem [shape: bf16[64,256], index: 10, kind: input, shape index: {}]   ;;  %s4111_s12 = inlined_call_operand.vmem [shape: bf16[128,64], index: 12, kind: input, shape index: {}]   ;;  %s4112_s9 = inlined_call_operand.vmem [shape: f32[1,32], index: 9, kind: input, shape index: {}]   ;;  %s4113_s20 = inlined_call_operand.vmem [shape: f32[2,64], index: 20, kind: output, shape index: {0}]   ;;  %s4114_s14 = inlined_call_operand.vmem [shape: bf16[64,1], index: 14, kind: input, shape index: {}]   ;;  %s4115_s11 = inlined_call_operand.vmem [shape: f32[1,256], index: 11, kind: input, shape index: {}]   ;;  %s4116_s16 = inlined_call_operand.vmem [shape: bf16[128,256], index: 16, kind: input, shape index: {}]   ;;  %s4117_s18 = inlined_call_operand.vmem [shape: bf16[256,768], index: 18, kind: input, shape index: {}]   ;;  %s4118_s15 = inlined_call_operand.<no memory space> [shape: f32[1,1], index: 15, kind: input, shape index: {}]   ;;  %s4119_s13 = inlined_call_operand.vmem [shape: f32[1,64], index: 13, kind: input, shape index: {}]   ;;  %s4120_s17 = inlined_call_operand.vmem [shape: f32[1,256], index: 17, kind: input, shape index: {}]   ;;  %s4121_s21 = inlined_call_operand.vmem [shape: f32[2,1], index: 21, kind: output, shape index: {1}]   ;;  %s4122_s19 = inlined_call_operand.vmem [shape: f32[1,768], index: 19, kind: input, shape index: {}]   ;;  %s4123_s22 = inlined_call_operand.vmem [shape: f32[2,768], index: 22, kind: output, shape index: {2}]  }
   0x1   :  { %4128 = sst [smem:[#allocation3_spill]] %s4101_s3  ;;  %162 = vmatprep.mubr.bf16.mxu0 %v3134_v1  ;;  %255 = vmatprep.mubr.bf16.mxu1 %v3134_v1  ;;  %vm603_vm4 = vcmask 1041408   ;;  %vm605_vm5 = vcmask 1043456   ;;  %vm607_vm6 = vcmask 1045504   ;;  %vm3137_vm7 = vmmov 0  }
   0x2   :  { %4129 = sst [smem:[#allocation4_spill]] %s4102_s2  ;;  %s4135_s29 = sld [smem:[#allocation3_spill]]  ;;  %v72_v16 = vand.u32 127, %v71_v15  ;;  %v3335_v17 = vshrl.u32 %v71_v15, 7  ;;  %vm1195_vm8 = vcmask 517120   ;;  %vm1507_vm9 = vcmask 1024  }
   0x3   :  { %4130 = sst [smem:[#allocation5_spill]] %s4103_s0  ;;  %s4136_s2 = sld [smem:[#allocation4_spill]] }
   0x4   :  { %4131 = sst [smem:[#allocation6_spill]] %s4104_s4  ;;  %s4137_s24 = sld [smem:[#allocation5_spill]]  ;;  %v78_v18 = vand.u32 63, %v72_v16  ;;  %v3342_v21 = vsub.s32 0, %v3335_v17  ;;  %v73_v28 = vadd.s32 128, %v72_v16  ;;  %v3368_v40 = vsub.s32 1, %v3335_v17 }
   0x5   :  { %4132 = sst [smem:[#allocation7_spill]] %s4105_s5  ;;  %s4138_s28 = sld [smem:[#allocation6_spill]] }
   0x6   :  { %4133 = sst [smem:[#allocation8_spill]] %s4106_s6  ;;  %vm3348_vm1 = vcmp.lt.s32.totalorder %v78_v18, 32  ;;  %v85_v35 = vand.u32 63, %v73_v28  ;;  %s4143_s23 = sld [smem:[#allocation7_spill]] }
   0x7   :  { %4134 = sst [smem:[#allocation9_spill]] %s4107_s7  ;;  %s3138_s0 = smov 32  }
   0x8   :  { %v2772_v0 = vld [vmem:[%s4135_s29 + $0x4] ss:$8 sps:$4 sm:$0xff]   ;;  %v3263_v2 = vld [vmem:[%s4135_s29] ss:$8 sps:$4 sm:$0xff]   ;;  %v3275_v5 = vld [vmem:[%s4135_s29 + $0x14] ss:$8 sps:$4 sm:$0xff]  }
   0x9   :  { %223 = vmatprep.subr.bf16.mxu1 %v2772_v0  ;;  %v2775_v3 = vld [vmem:[%s4136_s2 + $0x4] ss:$8 sps:$4 sm:$0xff]   ;;  %v2777_v4 = vld [vmem:[%s4136_s2] ss:$8 sps:$4 sm:$0xff]   ;;  %v3280_v6 = vld [vmem:[%s4135_s29 + $0x10] ss:$8 sps:$4 sm:$0xff]  }
   0xa   :  { %224 = vmatpush1.bf16.msra.mxu1 %v3263_v2  ;;  %130 = vmatprep.subr.bf16.mxu0 %v2775_v3  ;;  %v2781_v7 = vld [vmem:[%s4136_s2 + $0x14] ss:$8 sps:$4 sm:$0xff]   ;;  %v2783_v8 = vld [vmem:[%s4136_s2 + $0x10] ss:$8 sps:$4 sm:$0xff]   ;;  %v3292_v9 = vld [vmem:[%s4135_s29 + $0x24] ss:$8 sps:$4 sm:$0xff]  }
   0xb   :  { %131 = vmatpush1.bf16.msra.mxu0 %v2777_v4  ;;  %225 = vmatprep.subr.bf16.mxu1 %v3275_v5  ;;  %v100_v10 = vld [vmem:[%s4137_s24] sm:$0xff]  ;;  %v3307_v13 = vld [vmem:[%s4135_s29 + $0x34] ss:$8 sps:$4 sm:$0xff]   ;;  %v3313_v14 = vld [vmem:[%s4135_s29 + $0x30] ss:$8 sps:$4 sm:$0xff]   ;;  %vm3363_vm2 = vcmp.lt.s32.totalorder %v85_v35, 32 }
   0xc   :  { %132 = vmatprep.subr.bf16.mxu0 %v2781_v7  ;;  %v3301_v11 = vld [vmem:[%s4135_s29 + $0x20] ss:$8 sps:$4 sm:$0xff]   ;;  %v101_v12 = vpack.c.bf16 %v100_v10, %v100_v10  ;;  %s4144_s2 = sld [smem:[#allocation8_spill]]  ;;  %s4145_s27 = sld [smem:[#allocation9_spill]] }
   0xd   :  { %v274_v24 = vld [vmem:[%s4138_s28] sm:$0x3] }
   0xe   :  { %226 = vmatpush1.bf16.msra.mxu1 %v3280_v6  ;;  %v3353_v27 = vrot.slane %v274_v24, %v3342_v21  ;;  %v3377_v43 = vrot.slane %v274_v24, %v3368_v40 }
   0xf   :  { %227 = vmatprep.subr.bf16.mxu1 %v3292_v9  ;;  %133 = vmatpush1.bf16.msra.mxu0 %v2783_v8 }
  0x10   :  { %491 = vmatprep.subr.bf16.mxu0 %v2772_v0 }
  0x12   :  { %228 = vmatpush1.bf16.msra.mxu1 %v3301_v11  ;;  %2480 = vmatmul.mubr.msk.bf16.vlgmr.msra.gmra.mrb[0].mxu0 %vm126_vm0, %v101_v12 }
  0x13   :  { %229 = vmatprep.subr.bf16.mxu1 %v3307_v13  ;;  %492 = vmatpush1.bf16.msra.mxu0 %v3263_v2 }
  0x14   :  { %523 = vmatprep.mubr.bf16.mxu0 %v3134_v1  ;;  %493 = vmatprep.subr.bf16.mxu0 %v3275_v5 }
  0x16   :  { %230 = vmatpush1.bf16.msra.mxu1 %v3313_v14 }
  0x17   :  { %317 = vmatprep.subr.bf16.mxu1 %v2772_v0  ;;  %494 = vmatpush1.bf16.msra.mxu0 %v3280_v6 }
  0x18   :  { %495 = vmatprep.subr.bf16.mxu0 %v3292_v9 }
  0x19   :  { %256 = vmatmul.mubr.bf16.vlgmr.msra.gmra.mrb[0].mxu1 %v3134_v1 }
  0x1a   :  { %318 = vmatpush1.bf16.msra.mxu1 %v3263_v2  ;;  %349 = vmatprep.mubr.bf16.mxu1 %v3134_v1 }
  0x1b   :  { %319 = vmatprep.subr.bf16.mxu1 %v3275_v5  ;;  %496 = vmatpush1.bf16.msra.mxu0 %v3301_v11 }
  0x1c   :  { %497 = vmatprep.subr.bf16.mxu0 %v3307_v13 }
  0x1e   :  { %320 = vmatpush1.bf16.msra.mxu1 %v3280_v6 }
  0x1f   :  { %321 = vmatprep.subr.bf16.mxu1 %v3292_v9  ;;  %498 = vmatpush1.bf16.msra.mxu0 %v3313_v14 }
  0x22   :  { %322 = vmatpush1.bf16.msra.mxu1 %v3301_v11 }
  0x23   :  { %323 = vmatprep.subr.bf16.mxu1 %v3307_v13 }
  0x26   :  { %324 = vmatpush1.bf16.msra.mxu1 %v3313_v14 }
  0x27   :  { %407 = vmatprep.subr.bf16.mxu1 %v2772_v0 }
  0xe5   :  { %v3337_v19 = vpop.f32.mrb[0].mxu0 }
  0xe6   :  { %v3339_v20 = vpop.f32.mrb[1].mxu0  ;;  %v266_v22 = vrot.slane %v3337_v19, 6  ;;  %v358_v61 = vrot.slane %v3337_v19, 2 }
  0xe7   :  { %v168_v23 = vpop.f32.mrb[2].mxu0  ;;  %v267_v38 = vrot.slane %v3339_v20, 6  ;;  %v359_v8 = vrot.slane %v3339_v20, 2 }
  0xe8   :  { %v169_v25 = vpop.f32.mrb[3].mxu0  ;;  %v3358_v30 = vsel %vm3348_vm1, %v3337_v19, %v266_v22 }
  0xe9   :  { %v3373_v41 = vsel %vm3363_vm2, %v3339_v20, %v267_v38  ;;  %v3407_v10 = vsel %vm3363_vm2, %v3339_v20, %v359_v8 }
  0xec   :  { %v257_v29 = vpop.f32.mrb[0].mxu1 }
  0xed   :  { %v272_v31 = vadd.f32 %v3358_v30, %v257_v29  ;;  %v259_v32 = vpop.f32.mrb[1].mxu1 }
  0xee   :  { %v261_v33 = vpop.f32.mrb[2].mxu1  ;;  %v273_v42 = vadd.f32 %v3373_v41, %v259_v32 }
  0xef   :  { %v286_v34 = vadd.f32 %v3353_v27, %v272_v31  ;;  %v262_v36 = vpop.f32.mrb[3].mxu1 }
  0xf0   :  { %v287_v44 = vadd.f32 %v3377_v43, %v273_v42 }
  0xf1   :  { %v2489_v37 = vmul.f32 -1.442695, %v286_v34 }
  0xf2   :  { %v2490_v50 = vmul.f32 -1.442695, %v287_v44 }
  0xf3   :  { %3010 = vpow2.f32 %v2489_v37 }
  0xf4   :  { %3012 = vtanh.f32 %v287_v44 }
  0xfd   :  { %v3011_v45 = vpop.eup %3010 }
  0xfe   :  { %v291_v46 = vadd.f32 1.0, %v3011_v45  ;;  %v3013_v47 = vpop.eup %3012 }
 0x100   :  { %3014 = vrcp.f32 %v291_v46 }
 0x101   :  { %3016 = vpow2.f32 %v2490_v50 }
 0x10a   :  { %v3015_v48 = vpop.eup %3014 }
 0x10b   :  { %v302_v49 = vmul.f32 %v3015_v48, %v3013_v47  ;;  %v3017_v51 = vpop.eup %3016  ;;  %v301_v53 = vmul.f32 0.0, %v3015_v48 }
 0x10c   :  { %v298_v52 = vadd.f32 1.0, %v3017_v51 }
 0x10d   :  { %304 = vrot.lane.b32.xlu0 %v302_v49, %s3135_s30 }
 0x10e   :  { %3018 = vrcp.f32 %v298_v52 }
 0x118   :  { %v3019_v56 = vpop.eup %3018 }
 0x17f   :  { %v305_v54 = vpop.permute.xlu0 %304 }
 0x180   :  { %v307_v55 = vadd.f32 %v305_v54, %v301_v53 }
 0x182   :  { %3020 = vtanh.f32 %v307_v55  ;;  %v388_v16 = vrot.slane %v307_v55, 6 }
 0x18c   :  { %v3021_v57 = vpop.eup %3020 }
 0x18d   :  { %v3381_v58 = vmul.f32 %v3021_v57, %v3019_v56 }
 0x18f   :  { %v310_v59 = vpack.c.bf16 %v3381_v58, %v3381_v58 }
 0x191   :  { %312 = vrot.lane.b32.xlu0 %v310_v59, %s3135_s30 }
 0x203   :  { %v313_v60 = vpop.permute.xlu0 %312 }
 0x204   :  { %2491 = vmatmul.mubr.msk.bf16.vlgmr.msra.gmra.mrb[4].mxu1 %vm219_vm3, %v313_v60 }
 0x205   :  { %408 = vmatpush1.bf16.msra.mxu1 %v3263_v2  ;;  %439 = vmatprep.mubr.bf16.mxu1 %v3134_v1  ;;  %v3399_v2 = vsel %vm3348_vm1, %v3337_v19, %v358_v61 }
 0x206   :  { %409 = vmatprep.subr.bf16.mxu1 %v3275_v5 }
 0x209   :  { %410 = vmatpush1.bf16.msra.mxu1 %v3280_v6 }
 0x20a   :  { %411 = vmatprep.subr.bf16.mxu1 %v3292_v9 }
 0x20d   :  { %412 = vmatpush1.bf16.msra.mxu1 %v3301_v11 }
 0x20e   :  { %413 = vmatprep.subr.bf16.mxu1 %v3307_v13 }
 0x211   :  { %414 = vmatpush1.bf16.msra.mxu1 %v3313_v14 }
 0x2d7   :  { %v351_v62 = vpop.f32.mrb[4].mxu1 }
 0x2d8   :  { %v366_v63 = vrot.slane %v351_v62, 6  ;;  %v353_v0 = vpop.f32.mrb[5].mxu1 }
 0x2d9   :  { %v355_v3 = vpop.f32.mrb[6].mxu1  ;;  %v367_v9 = vrot.slane %v353_v0, 6 }
 0x2da   :  { %v370_v4 = vadd.f32 %v366_v63, %v3399_v2  ;;  %v356_v5 = vpop.f32.mrb[7].mxu1 }
 0x2db   :  { %v371_v11 = vadd.f32 %v367_v9, %v3407_v10 }
 0x2dc   :  { %v372_v6 = vadd.f32 %v370_v4, %v3353_v27 }
 0x2dd   :  { %v373_v12 = vadd.f32 %v371_v11, %v3377_v43 }
 0x2de   :  { %v2492_v7 = vmul.f32 -1.442695, %v372_v6 }
 0x2df   :  { %v2493_v23 = vmul.f32 -1.442695, %v373_v12 }
 0x2e0   :  { %3022 = vpow2.f32 %v2492_v7 }
 0x2e1   :  { %3024 = vtanh.f32 %v373_v12 }
 0x2ea   :  { %v3023_v13 = vpop.eup %3022 }
 0x2eb   :  { %v377_v14 = vadd.f32 1.0, %v3023_v13  ;;  %v3025_v15 = vpop.eup %3024 }
 0x2ed   :  { %3026 = vrcp.f32 %v377_v14 }
 0x2ee   :  { %3028 = vpow2.f32 %v2493_v23 }
 0x2f7   :  { %v3027_v18 = vpop.eup %3026 }
 0x2f8   :  { %v391_v19 = vmul.f32 %v3027_v18, %v3025_v15  ;;  %v390_v22 = vmul.f32 %v3027_v18, %v388_v16  ;;  %v3029_v24 = vpop.eup %3028 }
 0x2f9   :  { %v384_v20 = vadd.f32 1.0, %v3029_v24 }
 0x2fa   :  { %393 = vrot.lane.b32.xlu1 %v391_v19, %s3135_s30 }
 0x2fb   :  { %3030 = vrcp.f32 %v384_v20 }
 0x305   :  { %v3031_v29 = vpop.eup %3030 }
 0x36c   :  { %v394_v25 = vpop.permute.xlu1 %393 }
 0x36d   :  { %v396_v28 = vadd.f32 %v394_v25, %v390_v22 }
 0x36f   :  { %3032 = vtanh.f32 %v396_v28  ;;  %v472_v54 = vrot.slane %v396_v28, 6 }
 0x379   :  { %v3033_v31 = vpop.eup %3032 }
 0x37a   :  { %v3412_v32 = vmul.f32 %v3033_v31, %v3031_v29  ;;  %v3448_v29 = vld [vmem:[%s4144_s2 + $0x4] ss:$8 sps:$4 sm:$0xff]   ;;  %v3453_v31 = vld [vmem:[%s4144_s2] ss:$8 sps:$4 sm:$0xff]  }
 0x37b   :  { %750 = vmatprep.subr.bf16.mxu0 %v3448_v29 }
 0x37c   :  { %v399_v33 = vpack.c.bf16 %v3412_v32, %v3412_v32 }
 0x37e   :  { %v401_v34 = vrot.slane %v399_v33, 1 }
 0x380   :  { %402 = vrot.lane.b32.xlu1 %v401_v34, %s3135_s30 }
 0x3f2   :  { %v403_v35 = vpop.permute.xlu1 %402 }
 0x3f3   :  { %2494 = vmatmul.mubr.msk.bf16.vlgmr.msra.gmra.mrb[8].mxu1 %vm219_vm3, %v403_v35 }
 0x3f4   :  { %693 = vmatprep.mubr.bf16.mxu1 %v3134_v1 }
 0x4c6   :  { %v441_v36 = vpop.f32.mrb[8].mxu1 }
 0x4c7   :  { %v450_v37 = vrot.slane %v441_v36, 4  ;;  %v443_v38 = vpop.f32.mrb[9].mxu1 }
 0x4c8   :  { %v445_v42 = vpop.f32.mrb[10].mxu1  ;;  %v451_v48 = vrot.slane %v443_v38, 4  ;;  %v2798_v38 = vld [vmem:[%s4143_s23 + $0x14] ss:$8 sps:$4 sm:$0xff]  }
 0x4c9   :  { %v454_v44 = vadd.f32 %v450_v37, %v3358_v30  ;;  %v446_v45 = vpop.f32.mrb[11].mxu1  ;;  %v3463_v42 = vld [vmem:[%s4144_s2 + $0x14] ss:$8 sps:$4 sm:$0xff]  }
 0x4ca   :  { %v455_v49 = vadd.f32 %v451_v48, %v3373_v41  ;;  %v3471_v45 = vld [vmem:[%s4144_s2 + $0x10] ss:$8 sps:$4 sm:$0xff]   ;;  %v2802_v48 = vld [vmem:[%s4143_s23 + $0x20] ss:$8 sps:$4 sm:$0xff]  }
 0x4cb   :  { %v456_v46 = vadd.f32 %v454_v44, %v3353_v27  ;;  %v2796_v44 = vld [vmem:[%s4143_s23 + $0x10] ss:$8 sps:$4 sm:$0xff]  }
 0x4cc   :  { %v457_v50 = vadd.f32 %v455_v49, %v3377_v43  ;;  %v3489_v49 = vld [vmem:[%s4144_s2 + $0x20] ss:$8 sps:$4 sm:$0xff]  }
 0x4cd   :  { %v2495_v47 = vmul.f32 -1.442695, %v456_v46  ;;  %v2804_v46 = vld [vmem:[%s4143_s23 + $0x24] ss:$8 sps:$4 sm:$0xff]  }
 0x4ce   :  { %v2496_v30 = vmul.f32 -1.442695, %v457_v50 }
 0x4cf   :  { %3034 = vpow2.f32 %v2495_v47  ;;  %v3481_v47 = vld [vmem:[%s4144_s2 + $0x24] ss:$8 sps:$4 sm:$0xff]  }
 0x4d0   :  { %3036 = vtanh.f32 %v457_v50 }
 0x4d9   :  { %v3035_v51 = vpop.eup %3034 }
 0x4da   :  { %v461_v52 = vadd.f32 1.0, %v3035_v51  ;;  %v3037_v53 = vpop.eup %3036  ;;  %v2810_v51 = vld [vmem:[%s4143_s23 + $0x34] ss:$8 sps:$4 sm:$0xff]  }
 0x4dc   :  { %3038 = vrcp.f32 %v461_v52  ;;  %v3499_v52 = vld [vmem:[%s4144_s2 + $0x34] ss:$8 sps:$4 sm:$0xff]  }
 0x4dd   :  { %3040 = vpow2.f32 %v2496_v30 }
 0x4e6   :  { %v3039_v55 = vpop.eup %3038 }
 0x4e7   :  { %v475_v56 = vmul.f32 %v3039_v55, %v3037_v53  ;;  %v474_v57 = vmul.f32 %v3039_v55, %v472_v54  ;;  %v3041_v59 = vpop.eup %3040  ;;  %v2808_v54 = vld [vmem:[%s4143_s23 + $0x30] ss:$8 sps:$4 sm:$0xff]  }
 0x4e8   :  { %v468_v60 = vadd.f32 1.0, %v3041_v59  ;;  %v3507_v55 = vld [vmem:[%s4144_s2 + $0x30] ss:$8 sps:$4 sm:$0xff]  }
 0x4e9   :  { %477 = vrot.lane.b32.xlu0 %v475_v56, %s3135_s30 }
 0x4ea   :  { %3042 = vrcp.f32 %v468_v60 }
 0x4f4   :  { %v3043_v41 = vpop.eup %3042 }
 0x55b   :  { %v478_v61 = vpop.permute.xlu0 %477 }
 0x55c   :  { %v480_v62 = vadd.f32 %v478_v61, %v474_v57  ;;  %v598_v57 = vrot.slane %v3381_v58, 2  ;;  %v590_v61 = vrot.slane %v3412_v32, 6 }
 0x55e   :  { %3044 = vtanh.f32 %v480_v62  ;;  %v556_v24 = vrot.slane %v480_v62, 6 }
 0x568   :  { %v3045_v63 = vpop.eup %3044 }
 0x569   :  { %v3424_v0 = vmul.f32 %v3045_v63, %v3043_v41 }
 0x56b   :  { %v483_v3 = vpack.c.bf16 %v3424_v0, %v3424_v0  ;;  %v2757_v62 = vpack.i.bf16 %v590_v61, %v3424_v0 }
 0x56d   :  { %v485_v4 = vrot.slane %v483_v3, 2 }
 0x56f   :  { %486 = vrot.lane.b32.xlu1 %v485_v4, %s3135_s30 }
 0x5e1   :  { %v487_v5 = vpop.permute.xlu1 %486 }
 0x5e2   :  { %2497 = vmatmul.mubr.msk.bf16.vlgmr.msra.gmra.mrb[4].mxu0 %vm219_vm3, %v487_v5 }
 0x5e3   :  { %782 = vmatprep.mubr.bf16.mxu0 %v3134_v1  ;;  %751 = vmatpush1.bf16.msra.mxu0 %v3453_v31 }
 0x5e4   :  { %752 = vmatprep.subr.bf16.mxu0 %v3463_v42 }
 0x5e7   :  { %753 = vmatpush1.bf16.msra.mxu0 %v3471_v45 }
 0x5e8   :  { %754 = vmatprep.subr.bf16.mxu0 %v3481_v47 }
 0x5eb   :  { %755 = vmatpush1.bf16.msra.mxu0 %v3489_v49 }
 0x5ec   :  { %756 = vmatprep.subr.bf16.mxu0 %v3499_v52 }
 0x5ef   :  { %757 = vmatpush1.bf16.msra.mxu0 %v3507_v55 }
 0x5f0   :  { %934 = vmatprep.subr.bf16.mxu0 %v3448_v29 }
 0x5f2   :  { %783 = vmatmul.mubr.bf16.vlgmr.msra.gmra.mrb[8].mxu0 %v3134_v1 }
 0x5f3   :  { %935 = vmatpush1.bf16.msra.mxu0 %v3453_v31  ;;  %966 = vmatprep.mubr.bf16.mxu0 %v3134_v1 }
 0x5f4   :  { %936 = vmatprep.subr.bf16.mxu0 %v3463_v42 }
 0x5f7   :  { %937 = vmatpush1.bf16.msra.mxu0 %v3471_v45 }
 0x5f8   :  { %938 = vmatprep.subr.bf16.mxu0 %v3481_v47 }
 0x5fb   :  { %939 = vmatpush1.bf16.msra.mxu0 %v3489_v49 }
 0x5fc   :  { %940 = vmatprep.subr.bf16.mxu0 %v3499_v52 }
 0x5ff   :  { %941 = vmatpush1.bf16.msra.mxu0 %v3507_v55 }
 0x6b5   :  { %v525_v6 = vpop.f32.mrb[4].mxu0 }
 0x6b6   :  { %v534_v7 = vrot.slane %v525_v6, 2  ;;  %v527_v8 = vpop.f32.mrb[5].mxu0 }
 0x6b7   :  { %v529_v9 = vpop.f32.mrb[6].mxu0  ;;  %v535_v15 = vrot.slane %v527_v8, 2 }
 0x6b8   :  { %v538_v11 = vadd.f32 %v534_v7, %v3399_v2  ;;  %v530_v12 = vpop.f32.mrb[7].mxu0  ;;  %v582_v2 = vrot.slane %v3424_v0, 2 }
 0x6b9   :  { %v539_v16 = vadd.f32 %v535_v15, %v3407_v10  ;;  %v2792_v10 = vld [vmem:[%s4143_s23 + $0x4] ss:$8 sps:$4 sm:$0xff]  }
 0x6ba   :  { %v540_v13 = vadd.f32 %v538_v11, %v3353_v27  ;;  %v2747_v27 = vpack.i.bf16 %v582_v2, %v3412_v32  ;;  %661 = vmatprep.subr.bf16.mxu1 %v2792_v10 }
 0x6bb   :  { %v541_v18 = vadd.f32 %v539_v16, %v3377_v43  ;;  %v2790_v43 = vld [vmem:[%s4143_s23] ss:$8 sps:$4 sm:$0xff]  }
 0x6bc   :  { %v2498_v14 = vmul.f32 -1.442695, %v540_v13  ;;  %662 = vmatpush1.bf16.msra.mxu1 %v2790_v43 }
 0x6bd   :  { %v2499_v33 = vmul.f32 -1.442695, %v541_v18  ;;  %663 = vmatprep.subr.bf16.mxu1 %v2798_v38 }
 0x6be   :  { %3046 = vpow2.f32 %v2498_v14 }
 0x6bf   :  { %3048 = vtanh.f32 %v541_v18 }
 0x6c0   :  { %664 = vmatpush1.bf16.msra.mxu1 %v2796_v44 }
 0x6c1   :  { %665 = vmatprep.subr.bf16.mxu1 %v2804_v46 }
 0x6c4   :  { %666 = vmatpush1.bf16.msra.mxu1 %v2802_v48 }
 0x6c5   :  { %667 = vmatprep.subr.bf16.mxu1 %v2810_v51 }
 0x6c8   :  { %v3047_v19 = vpop.eup %3046  ;;  %668 = vmatpush1.bf16.msra.mxu1 %v2808_v54 }
 0x6c9   :  { %v545_v22 = vadd.f32 1.0, %v3047_v19  ;;  %v3049_v23 = vpop.eup %3048  ;;  %844 = vmatprep.subr.bf16.mxu1 %v3448_v29 }
 0x6cb   :  { %3050 = vrcp.f32 %v545_v22  ;;  %v784_v22 = vpop.f32.mrb[8].mxu0 }
 0x6cc   :  { %3052 = vpow2.f32 %v2499_v33 }
 0x6d5   :  { %v3051_v20 = vpop.eup %3050 }
 0x6d6   :  { %v559_v25 = vmul.f32 %v3051_v20, %v3049_v23  ;;  %v558_v28 = vmul.f32 %v3051_v20, %v556_v24  ;;  %v3053_v34 = vpop.eup %3052  ;;  %v786_v23 = vpop.f32.mrb[9].mxu0 }
 0x6d7   :  { %v552_v35 = vadd.f32 1.0, %v3053_v34  ;;  %v788_v24 = vpop.f32.mrb[10].mxu0 }
 0x6d8   :  { %561 = vrot.lane.b32.xlu0 %v559_v25, %s3135_s30  ;;  %v789_v20 = vpop.f32.mrb[11].mxu0  ;;  %v801_v25 = vld [vmem:[%s4145_s27] sm:$0x3] }
 0x6d9   :  { %3054 = vrcp.f32 %v552_v35  ;;  %v3547_v43 = vrot.slane %v801_v25, %v3342_v21  ;;  %v3561_v46 = vrot.slane %v801_v25, %v3368_v40 }
 0x6dc   :  { %2748 = vrot.lane.b32.xlu0 %v2747_v27, %s3135_s30 }
 0x6e3   :  { %v3055_v50 = vpop.eup %3054 }
 0x74a   :  { %v562_v36 = vpop.permute.xlu0 %561 }
 0x74b   :  { %v564_v37 = vadd.f32 %v562_v36, %v558_v28 }
 0x74d   :  { %3056 = vtanh.f32 %v564_v37 }
 0x757   :  { %v3057_v53 = vpop.eup %3056 }
 0x758   :  { %v566_v56 = vmul.f32 %v3057_v53, %v3055_v50 }
 0x75a   :  { %v2762_v30 = vpack.i.bf16 %v598_v57, %v566_v56  ;;  %v572_v59 = vrot.slane %v566_v56, 6 }
 0x75c   :  { %2763 = vrot.lane.b32.xlu0 %v2762_v30, %s3135_s30  ;;  %v2752_v60 = vpack.i.bf16 %v572_v59, %v3381_v58  ;;  %v2749_v58 = vpop.permute.xlu0 %2748 }
 0x75d   :  { %v2751_v4 = vunpack.i.h.bf16 %v2749_v58  ;;  %v2750_v5 = vunpack.i.l.bf16 %v2749_v58 }
 0x75e   :  { %2753 = vrot.lane.b32.xlu1 %v2752_v60, %s3135_s30 }
 0x75f   :  { %v586_v12 = vsel %vm126_vm0, %v2750_v5, %v2751_v4 }
 0x762   :  { %2758 = vrot.lane.b32.xlu1 %v2757_v62, %s3135_s30 }
 0x7ce   :  { %v2764_v63 = vpop.permute.xlu0 %2763 }
 0x7cf   :  { %v2766_v0 = vunpack.i.h.bf16 %v2764_v63  ;;  %v2765_v6 = vunpack.i.l.bf16 %v2764_v63 }
 0x7d0   :  { %v2754_v41 = vpop.permute.xlu1 %2753 }
 0x7d1   :  { %v2756_v32 = vunpack.i.h.bf16 %v2754_v41  ;;  %v2755_v3 = vunpack.i.l.bf16 %v2754_v41  ;;  %v602_v15 = vsel %vm126_vm0, %v2765_v6, %v2766_v0 }
 0x7d3   :  { %v576_v7 = vsel %vm126_vm0, %v2755_v3, %v2756_v32 }
 0x7d4   :  { %v2759_v8 = vpop.permute.xlu1 %2758  ;;  %v604_v13 = vsel %vm603_vm4, %v576_v7, %v586_v12 }
 0x7d5   :  { %v2761_v9 = vunpack.i.h.bf16 %v2759_v8  ;;  %v2760_v11 = vunpack.i.l.bf16 %v2759_v8 }
 0x7d7   :  { %v594_v14 = vsel %vm126_vm0, %v2760_v11, %v2761_v9 }
 0x7d8   :  { %v606_v16 = vsel %vm605_vm5, %v604_v13, %v594_v14 }
 0x7d9   :  { %v608_v18 = vsel %vm607_vm6, %v606_v16, %v602_v15 }
 0x7da   :  { %v609_v19 = vpack.c.bf16 %v608_v18, %v608_v18 }
 0x7dc   :  { %2508 = vmatmul.mubr.msk.bf16.vlgmr.msra.gmra.mrb[12].mxu1 %vm219_vm3, %v609_v19 }
 0x7dd   :  { %845 = vmatpush1.bf16.msra.mxu1 %v3453_v31  ;;  %876 = vmatprep.mubr.bf16.mxu1 %v3134_v1 }
 0x7de   :  { %846 = vmatprep.subr.bf16.mxu1 %v3463_v42 }
 0x7e1   :  { %847 = vmatpush1.bf16.msra.mxu1 %v3471_v45 }
 0x7e2   :  { %848 = vmatprep.subr.bf16.mxu1 %v3481_v47 }
 0x7e5   :  { %849 = vmatpush1.bf16.msra.mxu1 %v3489_v49 }
 0x7e6   :  { %850 = vmatprep.subr.bf16.mxu1 %v3499_v52 }
 0x7e9   :  { %851 = vmatpush1.bf16.msra.mxu1 %v3507_v55 }
 0x7ea   :  { %1018 = vmatprep.subr.bf16.mxu1 %v3448_v29 }
 0x8af   :  { %v695_v2 = vpop.f32.mrb[12].mxu1 }
 0x8b0   :  { %v793_v28 = vrot.slane %v695_v2, 6  ;;  %v697_v27 = vpop.f32.mrb[13].mxu1  ;;  %v885_v4 = vrot.slane %v695_v2, 2 }
 0x8b1   :  { %v699_v10 = vpop.f32.mrb[14].mxu1  ;;  %v794_v36 = vrot.slane %v697_v27, 6 }
 0x8b2   :  { %v3551_v33 = vsel %vm3348_vm1, %v695_v2, %v793_v28  ;;  %v700_v29 = vpop.f32.mrb[15].mxu1 }
 0x8b3   :  { %v799_v34 = vadd.f32 %v3551_v33, %v784_v22  ;;  %v3557_v38 = vsel %vm3363_vm2, %v697_v27, %v794_v36 }
 0x8b4   :  { %v800_v44 = vadd.f32 %v3557_v38, %v786_v23 }
 0x8b5   :  { %v813_v35 = vadd.f32 %v3547_v43, %v799_v34 }
 0x8b6   :  { %v814_v48 = vadd.f32 %v3561_v46, %v800_v44 }
 0x8b7   :  { %v2517_v37 = vmul.f32 -1.442695, %v813_v35 }
 0x8b8   :  { %v2518_v57 = vmul.f32 -1.442695, %v814_v48 }
 0x8b9   :  { %3058 = vpow2.f32 %v2517_v37 }
 0x8ba   :  { %3060 = vtanh.f32 %v814_v48 }
 0x8c3   :  { %v3059_v50 = vpop.eup %3058 }
 0x8c4   :  { %v818_v51 = vadd.f32 1.0, %v3059_v50  ;;  %v3061_v53 = vpop.eup %3060 }
 0x8c6   :  { %3062 = vrcp.f32 %v818_v51 }
 0x8c7   :  { %3064 = vpow2.f32 %v2518_v57 }
 0x8d0   :  { %v3063_v54 = vpop.eup %3062 }
 0x8d1   :  { %v829_v56 = vmul.f32 %v3063_v54, %v3061_v53  ;;  %v3065_v30 = vpop.eup %3064  ;;  %v828_v60 = vmul.f32 0.0, %v3063_v54 }
 0x8d2   :  { %v825_v59 = vadd.f32 1.0, %v3065_v30 }
 0x8d3   :  { %831 = vrot.lane.b32.xlu1 %v829_v56, %s3135_s30 }
 0x8d4   :  { %3066 = vrcp.f32 %v825_v59 }
 0x8de   :  { %v3067_v58 = vpop.eup %3066 }
 0x945   :  { %v832_v61 = vpop.permute.xlu1 %831 }
 0x946   :  { %v834_v62 = vadd.f32 %v832_v61, %v828_v60 }
 0x948   :  { %3068 = vtanh.f32 %v834_v62  ;;  %v915_v14 = vrot.slane %v834_v62, 6 }
 0x952   :  { %v3069_v41 = vpop.eup %3068 }
 0x953   :  { %v3565_v63 = vmul.f32 %v3069_v41, %v3067_v58 }
 0x955   :  { %v837_v32 = vpack.c.bf16 %v3565_v63, %v3565_v63 }
 0x957   :  { %839 = vrot.lane.b32.xlu0 %v837_v32, %s3135_s30 }
 0x9c9   :  { %v840_v3 = vpop.permute.xlu0 %839 }
 0x9ca   :  { %2519 = vmatmul.mubr.msk.bf16.vlgmr.msra.gmra.mrb[16].mxu1 %vm219_vm3, %v840_v3 }
 0x9cb   :  { %1019 = vmatpush1.bf16.msra.mxu1 %v3453_v31  ;;  %1050 = vmatprep.mubr.bf16.mxu1 %v3134_v1  ;;  %v3581_v31 = vsel %vm3348_vm1, %v695_v2, %v885_v4 }
 0x9cc   :  { %1020 = vmatprep.subr.bf16.mxu1 %v3463_v42 }
 0x9cf   :  { %1021 = vmatpush1.bf16.msra.mxu1 %v3471_v45 }
 0x9d0   :  { %1022 = vmatprep.subr.bf16.mxu1 %v3481_v47 }
 0x9d3   :  { %1023 = vmatpush1.bf16.msra.mxu1 %v3489_v49  ;;  %v886_v49 = vrot.slane %v697_v27, 2 }
 0x9d4   :  { %1024 = vmatprep.subr.bf16.mxu1 %v3499_v52 }
 0x9d7   :  { %1025 = vmatpush1.bf16.msra.mxu1 %v3507_v55  ;;  %v3587_v55 = vsel %vm3363_vm2, %v697_v27, %v886_v49 }
 0xa9d   :  { %v878_v5 = vpop.f32.mrb[16].mxu1 }
 0xa9e   :  { %v893_v0 = vrot.slane %v878_v5, 6  ;;  %v880_v6 = vpop.f32.mrb[17].mxu1 }
 0xa9f   :  { %v882_v7 = vpop.f32.mrb[18].mxu1  ;;  %v894_v52 = vrot.slane %v880_v6, 6 }
 0xaa0   :  { %v897_v42 = vadd.f32 %v893_v0, %v3581_v31  ;;  %v883_v45 = vpop.f32.mrb[19].mxu1 }
 0xaa1   :  { %v898_v9 = vadd.f32 %v894_v52, %v3587_v55 }
 0xaa2   :  { %v899_v47 = vadd.f32 %v897_v42, %v3547_v43 }
 0xaa3   :  { %v900_v26 = vadd.f32 %v898_v9, %v3561_v46 }
 0xaa4   :  { %v2520_v8 = vmul.f32 -1.442695, %v899_v47 }
 0xaa5   :  { %v2521_v19 = vmul.f32 -1.442695, %v900_v26 }
 0xaa6   :  { %3070 = vpow2.f32 %v2520_v8 }
 0xaa7   :  { %3072 = vtanh.f32 %v900_v26 }
 0xab0   :  { %v3071_v11 = vpop.eup %3070 }
 0xab1   :  { %v904_v12 = vadd.f32 1.0, %v3071_v11  ;;  %v3073_v13 = vpop.eup %3072 }
 0xab3   :  { %3074 = vrcp.f32 %v904_v12 }
 0xab4   :  { %3076 = vpow2.f32 %v2521_v19 }
 0xabd   :  { %v3075_v15 = vpop.eup %3074 }
 0xabe   :  { %v918_v16 = vmul.f32 %v3075_v15, %v3073_v13  ;;  %v917_v18 = vmul.f32 %v3075_v15, %v915_v14  ;;  %v3077_v39 = vpop.eup %3076 }
 0xabf   :  { %v911_v22 = vadd.f32 1.0, %v3077_v39 }
 0xac0   :  { %920 = vrot.lane.b32.xlu1 %v918_v16, %s3135_s30 }
 0xac1   :  { %3078 = vrcp.f32 %v911_v22 }
 0xacb   :  { %v3079_v20 = vpop.eup %3078 }
 0xb32   :  { %v921_v23 = vpop.permute.xlu1 %920 }
 0xb33   :  { %v923_v24 = vadd.f32 %v921_v23, %v917_v18 }
 0xb35   :  { %3080 = vtanh.f32 %v923_v24  ;;  %v999_v59 = vrot.slane %v923_v24, 6 }
 0xb3f   :  { %v3081_v25 = vpop.eup %3080 }
 0xb40   :  { %v925_v2 = vmul.f32 %v3081_v25, %v3079_v20 }
 0xb42   :  { %v926_v28 = vpack.c.bf16 %v925_v2, %v925_v2  ;;  %v2816_v2 = vld [vmem:[%s4108_s8 + $0x10] sm:$0xff]  }
 0xb44   :  { %v928_v27 = vrot.slane %v926_v28, 1  ;;  %v2817_v28 = vld [vmem:[%s4108_s8 + $0x18] sm:$0xff]  }
 0xb46   :  { %929 = vrot.lane.b32.xlu0 %v928_v27, %s3135_s30 }
 0xbb8   :  { %v930_v10 = vpop.permute.xlu0 %929 }
 0xbb9   :  { %2522 = vmatmul.mubr.msk.bf16.vlgmr.msra.gmra.mrb[12].mxu0 %vm219_vm3, %v930_v10 }
 0xc8c   :  { %v968_v29 = vpop.f32.mrb[12].mxu0 }
 0xc8d   :  { %v977_v34 = vrot.slane %v968_v29, 4  ;;  %v970_v35 = vpop.f32.mrb[13].mxu0  ;;  %v1189_v29 = vld [vmem:[%s4109_s1] sm:$0x3] }
 0xc8e   :  { %v972_v36 = vpop.f32.mrb[14].mxu0  ;;  %v978_v51 = vrot.slane %v970_v35, 4  ;;  %v1099_v35 = vrot.slane %v3565_v63, 2  ;;  %v2821_v63 = vld [vmem:[%s4110_s10 + $0x10] ss:$8 sps:$4 sm:$0xff]  }
 0xc8f   :  { %v981_v37 = vadd.f32 %v977_v34, %v3551_v33  ;;  %v973_v44 = vpop.f32.mrb[15].mxu0  ;;  %v2818_v36 = vld [vmem:[%s4110_s10] ss:$8 sps:$4 sm:$0xff]  }
 0xc90   :  { %v982_v53 = vadd.f32 %v978_v51, %v3557_v38  ;;  %v2823_v44 = vld [vmem:[%s4110_s10 + $0x14] ss:$8 sps:$4 sm:$0xff]   ;;  %v2824_v51 = vld [vmem:[%s4110_s10 + $0x20] ss:$8 sps:$4 sm:$0xff]  }
 0xc91   :  { %v983_v48 = vadd.f32 %v981_v37, %v3547_v43  ;;  %v2820_v37 = vld [vmem:[%s4110_s10 + $0x4] ss:$8 sps:$4 sm:$0xff]  }
 0xc92   :  { %v984_v54 = vadd.f32 %v982_v53, %v3561_v46  ;;  %1261 = vmatprep.subr.bf16.mxu1 %v2820_v37  ;;  %v2543_v37 = vld [vmem:[%s4119_s13] ss:$0 sm:$0xff] }
 0xc93   :  { %v2523_v50 = vmul.f32 -1.442695, %v983_v48 }
 0xc94   :  { %v2524_v33 = vmul.f32 -1.442695, %v984_v54 }
 0xc95   :  { %3082 = vpow2.f32 %v2523_v50  ;;  %v2826_v50 = vld [vmem:[%s4110_s10 + $0x24] ss:$8 sps:$4 sm:$0xff]  }
 0xc96   :  { %3084 = vtanh.f32 %v984_v54 }
 0xc9f   :  { %v3083_v56 = vpop.eup %3082 }
 0xca0   :  { %v988_v57 = vadd.f32 1.0, %v3083_v56  ;;  %v3085_v30 = vpop.eup %3084 }
 0xca2   :  { %3086 = vrcp.f32 %v988_v57 }
 0xca3   :  { %3088 = vpow2.f32 %v2524_v33  ;;  %v2831_v33 = vld [vmem:[%s4111_s12 + $0x8] sm:$0xff]  }
 0xcac   :  { %v3087_v60 = vpop.eup %3086 }
 0xcad   :  { %v1002_v61 = vmul.f32 %v3087_v60, %v3085_v30  ;;  %v1001_v62 = vmul.f32 %v3087_v60, %v999_v59  ;;  %v3089_v58 = vpop.eup %3088  ;;  %v2829_v60 = vld [vmem:[%s4110_s10 + $0x34] ss:$8 sps:$4 sm:$0xff]  }
 0xcae   :  { %v995_v41 = vadd.f32 1.0, %v3089_v58  ;;  %v2832_v58 = vld [vmem:[%s4111_s12 + $0x10] sm:$0xff]  }
 0xcaf   :  { %1004 = vrot.lane.b32.xlu1 %v1002_v61, %s3135_s30  ;;  %v2827_v61 = vld [vmem:[%s4110_s10 + $0x30] ss:$8 sps:$4 sm:$0xff]  }
 0xcb0   :  { %3090 = vrcp.f32 %v995_v41  ;;  %v2833_v41 = vld [vmem:[%s4111_s12 + $0x18] sm:$0xff]  }
 0xcba   :  { %v3091_v38 = vpop.eup %3090 }
 0xd21   :  { %v1005_v32 = vpop.permute.xlu1 %1004 }
 0xd22   :  { %v1007_v3 = vadd.f32 %v1005_v32, %v1001_v62  ;;  %v2830_v62 = vld [vmem:[%s4111_s12] sm:$0xff]  }
 0xd23   :  { %v2834_v32 = vld [vmem:[%s4111_s12 + $0x20] sm:$0xff]  }
 0xd24   :  { %3092 = vtanh.f32 %v1007_v3  ;;  %v1083_v18 = vrot.slane %v1007_v3, 6  ;;  %v2835_v3 = vld [vmem:[%s4111_s12 + $0x28] sm:$0xff]  }
 0xd2e   :  { %v3093_v4 = vpop.eup %3092 }
 0xd2f   :  { %v1009_v5 = vmul.f32 %v3093_v4, %v3091_v38  ;;  %v2528_v38 = vld [vmem:[%s4112_s9] ss:$0 sm:$0xff] }
 0xd31   :  { %v1010_v0 = vpack.c.bf16 %v1009_v5, %v1009_v5 }
 0xd33   :  { %v1012_v6 = vrot.slane %v1010_v0, 2 }
 0xd35   :  { %1013 = vrot.lane.b32.xlu0 %v1012_v6, %s3135_s30 }
 0xda7   :  { %v1014_v7 = vpop.permute.xlu0 %1013 }
 0xda8   :  { %2525 = vmatmul.mubr.msk.bf16.vlgmr.msra.gmra.mrb[20].mxu1 %vm219_vm3, %v1014_v7 }
 0xda9   :  { %1293 = vmatprep.mubr.bf16.mxu1 %v3134_v1  ;;  %1262 = vmatpush1.bf16.msra.mxu1 %v2818_v36  ;;  %v2902_v36 = vld [vmem:[%s4117_s18 + $0x120] ss:$24 sps:$4 sm:$0xff]  }
 0xdaa   :  { %1263 = vmatprep.subr.bf16.mxu1 %v2823_v44 }
 0xdad   :  { %1264 = vmatpush1.bf16.msra.mxu1 %v2821_v63 }
 0xdae   :  { %1265 = vmatprep.subr.bf16.mxu1 %v2826_v50 }
 0xdb1   :  { %1266 = vmatpush1.bf16.msra.mxu1 %v2824_v51 }
 0xdb2   :  { %1267 = vmatprep.subr.bf16.mxu1 %v2829_v60  ;;  %v2848_v60 = vld [vmem:[%s4116_s16 + $0x20] ss:$8 sps:$4 sm:$0xff]  }
 0xdb5   :  { %1268 = vmatpush1.bf16.msra.mxu1 %v2827_v61  ;;  %v2853_v61 = vld [vmem:[%s4116_s16 + $0x34] ss:$8 sps:$4 sm:$0xff]  }
 0xe7b   :  { %v1052_v42 = vpop.f32.mrb[20].mxu1 }
 0xe7c   :  { %v1061_v45 = vrot.slane %v1052_v42, 2  ;;  %v1054_v47 = vpop.f32.mrb[21].mxu1 }
 0xe7d   :  { %v1056_v8 = vpop.f32.mrb[22].mxu1  ;;  %v1062_v11 = vrot.slane %v1054_v47, 2 }
 0xe7e   :  { %v1065_v49 = vadd.f32 %v1061_v45, %v3581_v31  ;;  %v1057_v52 = vpop.f32.mrb[23].mxu1  ;;  %v3136_v31 = vmov 0.0   ;;  %v2836_v8 = vld [vmem:[%s4111_s12 + $0x30] sm:$0xff]  }
 0xe7f   :  { %v1066_v12 = vadd.f32 %v1062_v11, %v3587_v55  ;;  %2697 = vmatprep.subr.bf16.mxu0 %v3136_v31  ;;  %2705 = vmatprep.mubr.msk.bf16.mxu0 %vm3137_vm7, %v3136_v31  ;;  %v2838_v52 = vld [vmem:[%s4114_s14] sm:$0xff]  }
 0xe80   :  { %v1067_v9 = vadd.f32 %v1065_v49, %v3547_v43  ;;  %v2814_v43 = vld [vmem:[%s4108_s8] sm:$0xff]   ;;  %2729 = vmatprep.subr.bf16.mxu1 %v3136_v31  ;;  %v2837_v49 = vld [vmem:[%s4111_s12 + $0x38] sm:$0xff]  }
 0xe81   :  { %v1068_v13 = vadd.f32 %v1066_v12, %v3561_v46  ;;  %v2815_v46 = vld [vmem:[%s4108_s8 + $0x8] sm:$0xff]   ;;  %2698 = vmatpush3.bf16.msra.mxu0 %v2814_v43  ;;  %v3716_v11 = vld [vmem:[%s4115_s11] sm:$0x3] }
 0xe82   :  { %v2526_v26 = vmul.f32 -1.442695, %v1067_v9  ;;  %2699 = vmatprep.subr.bf16.mxu0 %v3136_v31  ;;  %v2839_v9 = vld [vmem:[%s4114_s14 + $0x8] sm:$0xff]   ;;  %v1211_v12 = vrot.slane %v3716_v11, %v3342_v21  ;;  %v2866_v43 = vld [vmem:[%s4117_s18] ss:$24 sps:$4 sm:$0xff]  }
 0xe83   :  { %v2527_v55 = vmul.f32 -1.442695, %v1068_v13 }
 0xe84   :  { %3094 = vpow2.f32 %v2526_v26  ;;  %v2840_v26 = vld [vmem:[%s4114_s14 + $0x10] sm:$0xff]  }
 0xe85   :  { %3096 = vtanh.f32 %v1068_v13  ;;  %2700 = vmatpush3.bf16.msra.mxu0 %v2815_v46  ;;  %v2868_v46 = vld [vmem:[%s4117_s18 + $0x4] ss:$24 sps:$4 sm:$0xff]  }
 0xe86   :  { %2701 = vmatprep.subr.bf16.mxu0 %v3136_v31 }
 0xe89   :  { %2702 = vmatpush3.bf16.msra.mxu0 %v2816_v2  ;;  %v2884_v2 = vld [vmem:[%s4117_s18 + $0x90] ss:$24 sps:$4 sm:$0xff]  }
 0xe8a   :  { %2703 = vmatprep.subr.bf16.mxu0 %v3136_v31 }
 0xe8d   :  { %2704 = vmatpush3.bf16.msra.mxu0 %v2817_v28  ;;  %v2892_v28 = vld [vmem:[%s4117_s18 + $0xc4] ss:$24 sps:$4 sm:$0xff]  }
 0xe8e   :  { %v3095_v14 = vpop.eup %3094  ;;  %2709 = vmatprep.subr.bf16.mxu0 %v3136_v31 }
 0xe8f   :  { %v1072_v15 = vadd.f32 1.0, %v3095_v14  ;;  %v3097_v16 = vpop.eup %3096 }
 0xe91   :  { %3098 = vrcp.f32 %v1072_v15 }
 0xe92   :  { %3100 = vpow2.f32 %v2527_v55  ;;  %v2874_v55 = vld [vmem:[%s4117_s18 + $0x34] ss:$24 sps:$4 sm:$0xff]  }
 0xe9b   :  { %v3099_v19 = vpop.eup %3098 }
 0xe9c   :  { %v1086_v39 = vmul.f32 %v3099_v19, %v3097_v16  ;;  %v1085_v22 = vmul.f32 %v3099_v19, %v1083_v18  ;;  %v3101_v23 = vpop.eup %3100 }
 0xe9d   :  { %v1079_v24 = vadd.f32 1.0, %v3101_v23  ;;  %v2872_v23 = vld [vmem:[%s4117_s18 + $0x30] ss:$24 sps:$4 sm:$0xff]  }
 0xe9e   :  { %1088 = vrot.lane.b32.xlu1 %v1086_v39, %s3135_s30 }
 0xe9f   :  { %3102 = vrcp.f32 %v1079_v24  ;;  %v2880_v24 = vld [vmem:[%s4117_s18 + $0x64] ss:$24 sps:$4 sm:$0xff]  }
 0xea2   :  { %1191 = vrot.lane.b32.xlu1 %v1189_v29, %s3138_s0  ;;  %v2896_v29 = vld [vmem:[%s4117_s18 + $0xf0] ss:$24 sps:$4 sm:$0xff]  }
 0xea9   :  { %v3103_v27 = vpop.eup %3102 }
 0xf10   :  { %v1089_v20 = vpop.permute.xlu1 %1088 }
 0xf11   :  { %v1091_v25 = vadd.f32 %v1089_v20, %v1085_v22  ;;  %v2841_v22 = vld [vmem:[%s4114_s14 + $0x18] sm:$0xff]  }
 0xf12   :  { %v2878_v20 = vld [vmem:[%s4117_s18 + $0x60] ss:$24 sps:$4 sm:$0xff]  }
 0xf13   :  { %3104 = vtanh.f32 %v1091_v25  ;;  %v2886_v25 = vld [vmem:[%s4117_s18 + $0x94] ss:$24 sps:$4 sm:$0xff]  }
 0xf14   :  { %v1192_v5 = vpop.permute.xlu1 %1191 }
 0xf1d   :  { %v3105_v10 = vpop.eup %3104 }
 0xf1e   :  { %v1093_v34 = vmul.f32 %v3105_v10, %v3103_v27  ;;  %v2890_v27 = vld [vmem:[%s4117_s18 + $0xc0] ss:$24 sps:$4 sm:$0xff]   ;;  %v2898_v10 = vld [vmem:[%s4117_s18 + $0xf4] ss:$24 sps:$4 sm:$0xff]  }
 0xf20   :  { %v2767_v48 = vpack.i.bf16 %v1099_v35, %v1093_v34  ;;  %v2904_v34 = vld [vmem:[%s4117_s18 + $0x124] ss:$24 sps:$4 sm:$0xff]   ;;  %v28_v35 = vstv %s4118_s15 }
 0xf21   :  { %29 = vst [vmem:[#allocation2] sm:$0x1] %v28_v35  ;;  %v2937_v35 = vld [vmem:[%s4117_s18 + $0x21c] ss:$24 sps:$4 sm:$0xff]  }
 0xf22   :  { %2768 = vrot.lane.b32.xlu0 %v2767_v48, %s3135_s30 }
 0xf94   :  { %v2769_v53 = vpop.permute.xlu0 %2768 }
 0xf95   :  { %v2771_v54 = vunpack.i.h.bf16 %v2769_v53  ;;  %v2770_v56 = vunpack.i.l.bf16 %v2769_v53 }
 0xf97   :  { %v1103_v57 = vsel %vm126_vm0, %v2770_v56, %v2771_v54  ;;  %v2842_v54 = vld [vmem:[%s4116_s16] ss:$8 sps:$4 sm:$0xff]  }
 0xf98   :  { %v1104_v30 = vpack.c.bf16 %v1103_v57, %v1103_v57  ;;  %v2847_v57 = vld [vmem:[%s4116_s16 + $0x14] ss:$8 sps:$4 sm:$0xff]  }
 0xf9a   :  { %v1121_v59 = vrot.slane %v1104_v30, 3  ;;  %v2845_v30 = vld [vmem:[%s4116_s16 + $0x10] ss:$8 sps:$4 sm:$0xff]  }
 0xf9c   :  { %2706 = vmatmul.mubr.msk.bf16.vlgmr.msra.gmra.mrb[16].mxu0 %vm219_vm3, %v1121_v59  ;;  %v2850_v59 = vld [vmem:[%s4116_s16 + $0x24] ss:$8 sps:$4 sm:$0xff]  }
 0xf9d   :  { %2725 = vmatprep.mubr.msk.bf16.mxu0 %vm3137_vm7, %v3136_v31  ;;  %2710 = vmatpush3.bf16.msra.mxu0 %v2830_v62  ;;  %v2856_v62 = vld [vmem:[%s4116_s16 + $0x44] ss:$8 sps:$4 sm:$0xff]  }
 0xf9e   :  { %2711 = vmatprep.subr.bf16.mxu0 %v3136_v31 }
 0xfa1   :  { %2712 = vmatpush3.bf16.msra.mxu0 %v2831_v33  ;;  %v2854_v33 = vld [vmem:[%s4116_s16 + $0x40] ss:$8 sps:$4 sm:$0xff]  }
 0xfa2   :  { %2713 = vmatprep.subr.bf16.mxu0 %v3136_v31 }
 0xfa5   :  { %2714 = vmatpush3.bf16.msra.mxu0 %v2832_v58  ;;  %v2859_v58 = vld [vmem:[%s4116_s16 + $0x54] ss:$8 sps:$4 sm:$0xff]  }
 0xfa6   :  { %2715 = vmatprep.subr.bf16.mxu0 %v3136_v31 }
 0xfa9   :  { %2716 = vmatpush3.bf16.msra.mxu0 %v2833_v41  ;;  %v2857_v41 = vld [vmem:[%s4116_s16 + $0x50] ss:$8 sps:$4 sm:$0xff]  }
 0xfaa   :  { %2717 = vmatprep.subr.bf16.mxu0 %v3136_v31 }
 0xfad   :  { %2718 = vmatpush3.bf16.msra.mxu0 %v2834_v32  ;;  %v1215_v32 = vrot.slane %v3716_v11, %v3368_v40  ;;  %v2895_v11 = vld [vmem:[%s4117_s18 + $0xcc] ss:$24 sps:$4 sm:$0xff]  }
 0xfae   :  { %2719 = vmatprep.subr.bf16.mxu0 %v3136_v31 }
 0xfb1   :  { %2720 = vmatpush3.bf16.msra.mxu0 %v2835_v3  ;;  %v2862_v3 = vld [vmem:[%s4116_s16 + $0x64] ss:$8 sps:$4 sm:$0xff]  }
 0xfb2   :  { %2721 = vmatprep.subr.bf16.mxu0 %v3136_v31 }
 0xfb5   :  { %2722 = vmatpush3.bf16.msra.mxu0 %v2836_v8  ;;  %v2875_v8 = vld [vmem:[%s4117_s18 + $0x38] ss:$24 sps:$4 sm:$0xff]  }
 0xfb6   :  { %2723 = vmatprep.subr.bf16.mxu0 %v3136_v31 }
 0xfb9   :  { %2724 = vmatpush3.bf16.msra.mxu0 %v2837_v49  ;;  %v2883_v49 = vld [vmem:[%s4117_s18 + $0x6c] ss:$24 sps:$4 sm:$0xff]  }
 0xfba   :  { %2270 = vmatprep.subr.bf16.mxu0 %v2868_v46  ;;  %v2919_v46 = vld [vmem:[%s4117_s18 + $0x18c] ss:$24 sps:$4 sm:$0xff]  }
0x106f   :  { %v1183_v4 = vpop.f32.mrb[16].mxu0 }
0x1070   :  { %v1184_v0 = vadd.f32 %v2528_v38, %v1183_v4  ;;  %v2707_v6 = vpop.f32.mrb[17].mxu0  ;;  %v2860_v38 = vld [vmem:[%s4116_s16 + $0x60] ss:$8 sps:$4 sm:$0xff]  }
0x1071   :  { %v1186_v7 = vpop.f32.mrb[18].mxu0 }
0x1072   :  { %v1194_v42 = vsel %vm126_vm0, %v1184_v0, %v1192_v5  ;;  %v2708_v45 = vpop.f32.mrb[19].mxu0  ;;  %v2865_v5 = vld [vmem:[%s4116_s16 + $0x74] ss:$8 sps:$4 sm:$0xff]   ;;  %v2863_v0 = vld [vmem:[%s4116_s16 + $0x70] ss:$8 sps:$4 sm:$0xff]  }
0x1073   :  { %1196 = vst.msk [vmem:[%s4113_s20] sm:$0x3] %vm1195_vm8, %v1194_v42  ;;  %v1197_v47 = vpack.c.bf16 %v1194_v42, %v1194_v42  ;;  %v2871_v7 = vld [vmem:[%s4117_s18 + $0xc] ss:$24 sps:$4 sm:$0xff]   ;;  %v2869_v42 = vld [vmem:[%s4117_s18 + $0x8] ss:$24 sps:$4 sm:$0xff]  }
0x1075   :  { %2542 = vmatmul.mubr.msk.bf16.vlgmr.msra.gmra.mrb[24].mxu1 %vm219_vm3, %v1197_v47  ;;  %v2877_v47 = vld [vmem:[%s4117_s18 + $0x3c] ss:$24 sps:$4 sm:$0xff]  }
0x1076   :  { %2737 = vmatprep.mubr.msk.bf16.mxu1 %vm3137_vm7, %v3136_v31  ;;  %2730 = vmatpush3.bf16.msra.mxu1 %v2838_v52  ;;  %v2881_v52 = vld [vmem:[%s4117_s18 + $0x68] ss:$24 sps:$4 sm:$0xff]  }
0x1077   :  { %2731 = vmatprep.subr.bf16.mxu1 %v3136_v31 }
0x107a   :  { %2732 = vmatpush3.bf16.msra.mxu1 %v2839_v9  ;;  %v2889_v9 = vld [vmem:[%s4117_s18 + $0x9c] ss:$24 sps:$4 sm:$0xff]  }
0x107b   :  { %2733 = vmatprep.subr.bf16.mxu1 %v3136_v31 }
0x107e   :  { %2734 = vmatpush3.bf16.msra.mxu1 %v2840_v26  ;;  %v2887_v26 = vld [vmem:[%s4117_s18 + $0x98] ss:$24 sps:$4 sm:$0xff]  }
0x107f   :  { %2735 = vmatprep.subr.bf16.mxu1 %v3136_v31  ;;  %v2844_v31 = vld [vmem:[%s4116_s16 + $0x4] ss:$8 sps:$4 sm:$0xff]  }
0x1082   :  { %2736 = vmatpush3.bf16.msra.mxu1 %v2841_v22  ;;  %v2911_v22 = vld [vmem:[%s4117_s18 + $0x158] ss:$24 sps:$4 sm:$0xff]  }
0x1083   :  { %1617 = vmatprep.subr.bf16.mxu1 %v2844_v31  ;;  %v2916_v31 = vld [vmem:[%s4117_s18 + $0x184] ss:$24 sps:$4 sm:$0xff]  }
0x1148   :  { %v1295_v13 = vpop.f32.mrb[24].mxu1 }
0x1149   :  { %v1296_v14 = vadd.f32 %v1295_v13, %v1211_v12  ;;  %v3720_v15 = vpop.f32.mrb[25].mxu1  ;;  %v2893_v12 = vld [vmem:[%s4117_s18 + $0xc8] ss:$24 sps:$4 sm:$0xff]   ;;  %v2901_v13 = vld [vmem:[%s4117_s18 + $0xfc] ss:$24 sps:$4 sm:$0xff]  }
0x114a   :  { %v1299_v16 = vpop.f32.mrb[26].mxu1  ;;  %v1298_v4 = vadd.f32 %v3720_v15, %v1215_v32  ;;  %v2907_v15 = vld [vmem:[%s4117_s18 + $0x12c] ss:$24 sps:$4 sm:$0xff]  }
0x114b   :  { %v1302_v18 = vmax.f32 %v1296_v14, 0.0  ;;  %v1300_v19 = vpop.f32.mrb[27].mxu1  ;;  %v2899_v14 = vld [vmem:[%s4117_s18 + $0xf8] ss:$24 sps:$4 sm:$0xff]   ;;  %v2905_v16 = vld [vmem:[%s4117_s18 + $0x128] ss:$24 sps:$4 sm:$0xff]  }
0x114c   :  { %v1303_v6 = vmax.f32 %v1298_v4, 0.0  ;;  %v2908_v19 = vld [vmem:[%s4117_s18 + $0x150] ss:$24 sps:$4 sm:$0xff]  }
0x114d   :  { %v1304_v39 = vpack.c.bf16 %v1302_v18, %v1302_v18  ;;  %v2910_v18 = vld [vmem:[%s4117_s18 + $0x154] ss:$24 sps:$4 sm:$0xff]  }
0x114e   :  { %v1305_v45 = vpack.c.bf16 %v1303_v6, %v1303_v6 }
0x114f   :  { %2726 = vmatmul.mubr.bf16.vlgmr.msra.gmra.mrb[20].mxu0 %v1304_v39  ;;  %v2913_v39 = vld [vmem:[%s4117_s18 + $0x15c] ss:$24 sps:$4 sm:$0xff]  }
0x1150   :  { %2271 = vmatpush1.bf16.msra.mxu0 %v2866_v43  ;;  %v2914_v43 = vld [vmem:[%s4117_s18 + $0x180] ss:$24 sps:$4 sm:$0xff]  }
0x1151   :  { %2272 = vmatprep.subr.bf16.mxu0 %v2874_v55  ;;  %v2917_v55 = vld [vmem:[%s4117_s18 + $0x188] ss:$24 sps:$4 sm:$0xff]  }
0x1154   :  { %2273 = vmatpush1.bf16.msra.mxu0 %v2872_v23  ;;  %v2922_v23 = vld [vmem:[%s4117_s18 + $0x1b4] ss:$24 sps:$4 sm:$0xff]  }
0x1155   :  { %2274 = vmatprep.subr.bf16.mxu0 %v2880_v24  ;;  %v2920_v24 = vld [vmem:[%s4117_s18 + $0x1b0] ss:$24 sps:$4 sm:$0xff]  }
0x1158   :  { %2275 = vmatpush1.bf16.msra.mxu0 %v2878_v20  ;;  %v2925_v20 = vld [vmem:[%s4117_s18 + $0x1bc] ss:$24 sps:$4 sm:$0xff]  }
0x1159   :  { %2276 = vmatprep.subr.bf16.mxu0 %v2886_v25  ;;  %v2923_v25 = vld [vmem:[%s4117_s18 + $0x1b8] ss:$24 sps:$4 sm:$0xff]  }
0x115c   :  { %2277 = vmatpush1.bf16.msra.mxu0 %v2884_v2  ;;  %v2928_v2 = vld [vmem:[%s4117_s18 + $0x1e4] ss:$24 sps:$4 sm:$0xff]  }
0x115d   :  { %2278 = vmatprep.subr.bf16.mxu0 %v2892_v28  ;;  %v2926_v28 = vld [vmem:[%s4117_s18 + $0x1e0] ss:$24 sps:$4 sm:$0xff]  }
0x1160   :  { %2279 = vmatpush1.bf16.msra.mxu0 %v2890_v27  ;;  %v2931_v27 = vld [vmem:[%s4117_s18 + $0x1ec] ss:$24 sps:$4 sm:$0xff]  }
0x1161   :  { %2280 = vmatprep.subr.bf16.mxu0 %v2898_v10  ;;  %v2929_v10 = vld [vmem:[%s4117_s18 + $0x1e8] ss:$24 sps:$4 sm:$0xff]  }
0x1164   :  { %2281 = vmatpush1.bf16.msra.mxu0 %v2896_v29  ;;  %v2934_v29 = vld [vmem:[%s4117_s18 + $0x214] ss:$24 sps:$4 sm:$0xff]  }
0x1165   :  { %2282 = vmatprep.subr.bf16.mxu0 %v2904_v34  ;;  %v2932_v34 = vld [vmem:[%s4117_s18 + $0x210] ss:$24 sps:$4 sm:$0xff]  }
0x1168   :  { %2283 = vmatpush1.bf16.msra.mxu0 %v2902_v36  ;;  %v2935_v36 = vld [vmem:[%s4117_s18 + $0x218] ss:$24 sps:$4 sm:$0xff]  }
0x1169   :  { %2284 = vmatprep.subr.bf16.mxu0 %v2910_v18  ;;  %v2967_v18 = vld [vmem:[%s4117_s18 + $0x44] ss:$24 sps:$4 sm:$0xff]  }
0x116c   :  { %2285 = vmatpush1.bf16.msra.mxu0 %v2908_v19  ;;  %v2965_v19 = vld [vmem:[%s4117_s18 + $0x40] ss:$24 sps:$4 sm:$0xff]  }
0x116d   :  { %2286 = vmatprep.subr.bf16.mxu0 %v2916_v31  ;;  %v2973_v31 = vld [vmem:[%s4117_s18 + $0xa4] ss:$24 sps:$4 sm:$0xff]  }
0x1170   :  { %2287 = vmatpush1.bf16.msra.mxu0 %v2914_v43  ;;  %v2971_v43 = vld [vmem:[%s4117_s18 + $0xa0] ss:$24 sps:$4 sm:$0xff]  }
0x1171   :  { %2288 = vmatprep.subr.bf16.mxu0 %v2922_v23  ;;  %v2979_v23 = vld [vmem:[%s4117_s18 + $0x104] ss:$24 sps:$4 sm:$0xff]  }
0x1174   :  { %2289 = vmatpush1.bf16.msra.mxu0 %v2920_v24  ;;  %v2977_v24 = vld [vmem:[%s4117_s18 + $0x100] ss:$24 sps:$4 sm:$0xff]  }
0x1175   :  { %2290 = vmatprep.subr.bf16.mxu0 %v2928_v2  ;;  %v2985_v2 = vld [vmem:[%s4117_s18 + $0x164] ss:$24 sps:$4 sm:$0xff]  }
0x1178   :  { %2291 = vmatpush1.bf16.msra.mxu0 %v2926_v28  ;;  %v2983_v28 = vld [vmem:[%s4117_s18 + $0x160] ss:$24 sps:$4 sm:$0xff]  }
0x1179   :  { %2292 = vmatprep.subr.bf16.mxu0 %v2934_v29  ;;  %v2991_v29 = vld [vmem:[%s4117_s18 + $0x1c4] ss:$24 sps:$4 sm:$0xff]  }
0x117c   :  { %2293 = vmatpush1.bf16.msra.mxu0 %v2932_v34  ;;  %v2989_v34 = vld [vmem:[%s4117_s18 + $0x1c0] ss:$24 sps:$4 sm:$0xff]  }
0x1222   :  { %v1411_v44 = vpop.f32.mrb[20].mxu0 }
0x1223   :  { %v1412_v48 = vadd.f32 %v2543_v37, %v1411_v44  ;;  %v2727_v63 = vpop.f32.mrb[21].mxu0  ;;  %v2940_v37 = vld [vmem:[%s4117_s18 + $0x244] ss:$24 sps:$4 sm:$0xff]   ;;  %v2938_v44 = vld [vmem:[%s4117_s18 + $0x240] ss:$24 sps:$4 sm:$0xff]  }
0x1224   :  { %v1414_v50 = vpop.f32.mrb[22].mxu0  ;;  %2294 = vmatprep.subr.bf16.mxu0 %v2940_v37  ;;  %v2941_v63 = vld [vmem:[%s4117_s18 + $0x248] ss:$24 sps:$4 sm:$0xff]   ;;  %v2997_v37 = vld [vmem:[%s4117_s18 + $0x224] ss:$24 sps:$4 sm:$0xff]  }
0x1225   :  { %v1417_v51 = vmax.f32 %v1412_v48, 0.0  ;;  %v2728_v53 = vpop.f32.mrb[23].mxu0  ;;  %v2943_v48 = vld [vmem:[%s4117_s18 + $0x24c] ss:$24 sps:$4 sm:$0xff]   ;;  %2295 = vmatpush1.bf16.msra.mxu0 %v2938_v44  ;;  %v2995_v44 = vld [vmem:[%s4117_s18 + $0x220] ss:$24 sps:$4 sm:$0xff]  }
0x1226   :  { %v2946_v50 = vld [vmem:[%s4117_s18 + $0x274] ss:$24 sps:$4 sm:$0xff]  }
0x1227   :  { %v1418_v56 = vpack.c.bf16 %v1417_v51, %v1417_v51  ;;  %v2944_v51 = vld [vmem:[%s4117_s18 + $0x270] ss:$24 sps:$4 sm:$0xff]   ;;  %v2949_v53 = vld [vmem:[%s4117_s18 + $0x27c] ss:$24 sps:$4 sm:$0xff]   ;;  %2296 = vmatprep.subr.bf16.mxu0 %v2946_v50 }
0x1228   :  { %v3003_v50 = vld [vmem:[%s4117_s18 + $0x284] ss:$24 sps:$4 sm:$0xff]  }
0x1229   :  { %2738 = vmatmul.mubr.msk.bf16.vlgmr.msra.gmra.mrb[28].mxu1 %vm219_vm3, %v1418_v56  ;;  %2297 = vmatpush1.bf16.msra.mxu0 %v2944_v51  ;;  %v2952_v56 = vld [vmem:[%s4117_s18 + $0x2a4] ss:$24 sps:$4 sm:$0xff]   ;;  %v3001_v51 = vld [vmem:[%s4117_s18 + $0x280] ss:$24 sps:$4 sm:$0xff]  }
0x122a   :  { %1618 = vmatpush1.bf16.msra.mxu1 %v2842_v54  ;;  %1649 = vmatprep.mubr.bf16.mxu1 %v3134_v1  ;;  %v2851_v1 = vld [vmem:[%s4116_s16 + $0x30] ss:$8 sps:$4 sm:$0xff]  }
0x122b   :  { %1619 = vmatprep.subr.bf16.mxu1 %v2847_v57  ;;  %v2947_v54 = vld [vmem:[%s4117_s18 + $0x278] ss:$24 sps:$4 sm:$0xff]   ;;  %2298 = vmatprep.subr.bf16.mxu0 %v2952_v56  ;;  %v3009_v56 = vld [vmem:[%s4117_s18 + $0x2e4] ss:$24 sps:$4 sm:$0xff]  }
0x122c   :  { %v2950_v57 = vld [vmem:[%s4117_s18 + $0x2a0] ss:$24 sps:$4 sm:$0xff]  }
0x122d   :  { %2299 = vmatpush1.bf16.msra.mxu0 %v2950_v57  ;;  %v3007_v57 = vld [vmem:[%s4117_s18 + $0x2e0] ss:$24 sps:$4 sm:$0xff]  }
0x122e   :  { %1620 = vmatpush1.bf16.msra.mxu1 %v2845_v30  ;;  %v2955_v30 = vld [vmem:[%s4117_s18 + $0x2ac] ss:$24 sps:$4 sm:$0xff]  }
0x122f   :  { %1621 = vmatprep.subr.bf16.mxu1 %v2850_v59  ;;  %v2953_v59 = vld [vmem:[%s4117_s18 + $0x2a8] ss:$24 sps:$4 sm:$0xff]  }
0x1232   :  { %1622 = vmatpush1.bf16.msra.mxu1 %v2848_v60  ;;  %v2958_v60 = vld [vmem:[%s4117_s18 + $0x2d4] ss:$24 sps:$4 sm:$0xff]  }
0x1233   :  { %1623 = vmatprep.subr.bf16.mxu1 %v2853_v61  ;;  %v2956_v61 = vld [vmem:[%s4117_s18 + $0x2d0] ss:$24 sps:$4 sm:$0xff]   ;;  %2300 = vmatprep.subr.bf16.mxu0 %v2958_v60  ;;  %v1774_v60 = vsub.s32 3, %v3335_v17 }
0x1234   :  { %2301 = vmatpush1.bf16.msra.mxu0 %v2956_v61 }
0x1236   :  { %1624 = vmatpush1.bf16.msra.mxu1 %v2851_v1  ;;  %v2961_v1 = vld [vmem:[%s4117_s18 + $0x2dc] ss:$24 sps:$4 sm:$0xff]  }
0x1237   :  { %1625 = vmatprep.subr.bf16.mxu1 %v2856_v62  ;;  %v2959_v62 = vld [vmem:[%s4117_s18 + $0x2d8] ss:$24 sps:$4 sm:$0xff]  }
0x123a   :  { %1626 = vmatpush1.bf16.msra.mxu1 %v2854_v33  ;;  %v2964_v33 = vld [vmem:[%s4117_s18 + $0x14] ss:$24 sps:$4 sm:$0xff]  }
0x123b   :  { %1627 = vmatprep.subr.bf16.mxu1 %v2859_v58  ;;  %2352 = vmatprep.subr.bf16.mxu0 %v2964_v33  ;;  %v2552_v58 = vld [vmem:[#allocation2] ss:$0 sm:$0xff] }
0x123e   :  { %1628 = vmatpush1.bf16.msra.mxu1 %v2857_v41 }
0x123f   :  { %1629 = vmatprep.subr.bf16.mxu1 %v2862_v3 }
0x1242   :  { %1630 = vmatpush1.bf16.msra.mxu1 %v2860_v38 }
0x1243   :  { %1631 = vmatprep.subr.bf16.mxu1 %v2865_v5 }
0x1246   :  { %1632 = vmatpush1.bf16.msra.mxu1 %v2863_v0 }
0x1247   :  { %2311 = vmatprep.subr.bf16.mxu1 %v2871_v7  ;;  %v1525_v7 = vld [vmem:[%s4120_s17] sm:$0x3] }
0x1249   :  { %1650 = vmatmul.mubr.bf16.vlgmr.msra.gmra.mrb[32].mxu1 %v1305_v45  ;;  %v1530_v45 = vrot.slane %v1525_v7, %v3342_v21 }
0x124a   :  { %2312 = vmatpush1.bf16.msra.mxu1 %v2869_v42 }
0x124b   :  { %2313 = vmatprep.subr.bf16.mxu1 %v2877_v47  ;;  %v1534_v47 = vrot.slane %v1525_v7, %v3368_v40 }
0x124e   :  { %2314 = vmatpush1.bf16.msra.mxu1 %v2875_v8 }
0x124f   :  { %2315 = vmatprep.subr.bf16.mxu1 %v2883_v49 }
0x1252   :  { %2316 = vmatpush1.bf16.msra.mxu1 %v2881_v52 }
0x1253   :  { %2317 = vmatprep.subr.bf16.mxu1 %v2889_v9 }
0x1256   :  { %2318 = vmatpush1.bf16.msra.mxu1 %v2887_v26 }
0x1257   :  { %2319 = vmatprep.subr.bf16.mxu1 %v2895_v11 }
0x125a   :  { %2320 = vmatpush1.bf16.msra.mxu1 %v2893_v12 }
0x125b   :  { %2321 = vmatprep.subr.bf16.mxu1 %v2901_v13 }
0x125e   :  { %2322 = vmatpush1.bf16.msra.mxu1 %v2899_v14 }
0x125f   :  { %2323 = vmatprep.subr.bf16.mxu1 %v2907_v15  ;;  %v2962_v15 = vld [vmem:[%s4117_s18 + $0x10] ss:$24 sps:$4 sm:$0xff]  }
0x1262   :  { %2324 = vmatpush1.bf16.msra.mxu1 %v2905_v16 }
0x1263   :  { %2325 = vmatprep.subr.bf16.mxu1 %v2913_v39  ;;  %v2970_v39 = vld [vmem:[%s4117_s18 + $0x74] ss:$24 sps:$4 sm:$0xff]  }
0x1266   :  { %2326 = vmatpush1.bf16.msra.mxu1 %v2911_v22  ;;  %v2968_v22 = vld [vmem:[%s4117_s18 + $0x70] ss:$24 sps:$4 sm:$0xff]  }
0x1267   :  { %2327 = vmatprep.subr.bf16.mxu1 %v2919_v46  ;;  %v2976_v46 = vld [vmem:[%s4117_s18 + $0xd4] ss:$24 sps:$4 sm:$0xff]  }
0x126a   :  { %2328 = vmatpush1.bf16.msra.mxu1 %v2917_v55  ;;  %v2974_v55 = vld [vmem:[%s4117_s18 + $0xd0] ss:$24 sps:$4 sm:$0xff]  }
0x126b   :  { %2329 = vmatprep.subr.bf16.mxu1 %v2925_v20  ;;  %v2982_v20 = vld [vmem:[%s4117_s18 + $0x134] ss:$24 sps:$4 sm:$0xff]  }
0x126e   :  { %2330 = vmatpush1.bf16.msra.mxu1 %v2923_v25  ;;  %v2980_v25 = vld [vmem:[%s4117_s18 + $0x130] ss:$24 sps:$4 sm:$0xff]  }
0x126f   :  { %2331 = vmatprep.subr.bf16.mxu1 %v2931_v27  ;;  %v2988_v27 = vld [vmem:[%s4117_s18 + $0x194] ss:$24 sps:$4 sm:$0xff]  }
0x1272   :  { %2332 = vmatpush1.bf16.msra.mxu1 %v2929_v10  ;;  %v2986_v10 = vld [vmem:[%s4117_s18 + $0x190] ss:$24 sps:$4 sm:$0xff]  }
0x1273   :  { %2333 = vmatprep.subr.bf16.mxu1 %v2937_v35  ;;  %v2994_v35 = vld [vmem:[%s4117_s18 + $0x1f4] ss:$24 sps:$4 sm:$0xff]  }
0x1276   :  { %2334 = vmatpush1.bf16.msra.mxu1 %v2935_v36  ;;  %v2992_v36 = vld [vmem:[%s4117_s18 + $0x1f0] ss:$24 sps:$4 sm:$0xff]  }
0x1277   :  { %2335 = vmatprep.subr.bf16.mxu1 %v2943_v48  ;;  %v3000_v48 = vld [vmem:[%s4117_s18 + $0x254] ss:$24 sps:$4 sm:$0xff]  }
0x127a   :  { %2336 = vmatpush1.bf16.msra.mxu1 %v2941_v63  ;;  %v2998_v63 = vld [vmem:[%s4117_s18 + $0x250] ss:$24 sps:$4 sm:$0xff]  }
0x127b   :  { %2337 = vmatprep.subr.bf16.mxu1 %v2949_v53  ;;  %v3006_v53 = vld [vmem:[%s4117_s18 + $0x2b4] ss:$24 sps:$4 sm:$0xff]  }
0x127e   :  { %2338 = vmatpush1.bf16.msra.mxu1 %v2947_v54  ;;  %v3004_v54 = vld [vmem:[%s4117_s18 + $0x2b0] ss:$24 sps:$4 sm:$0xff]  }
0x127f   :  { %2339 = vmatprep.subr.bf16.mxu1 %v2955_v30  ;;  %v1770_v30 = vsub.s32 2, %v3335_v17 }
0x1282   :  { %2340 = vmatpush1.bf16.msra.mxu1 %v2953_v59  ;;  %v1758_v59 = vld [vmem:[%s4122_s19] sm:$0x3f] }
0x1283   :  { %2341 = vmatprep.subr.bf16.mxu1 %v2961_v1  ;;  %v1763_v61 = vrot.slane %v1758_v59, %v3342_v21  ;;  %v1771_v1 = vrot.slane %v1758_v59, %v1770_v30  ;;  %v1775_v33 = vrot.slane %v1758_v59, %v1774_v60 }
0x1286   :  { %2342 = vmatpush1.bf16.msra.mxu1 %v2959_v62  ;;  %v1767_v62 = vrot.slane %v1758_v59, %v3368_v40 }
0x12fc   :  { %v1495_v41 = vpop.f32.mrb[28].mxu1 }
0x12fd   :  { %v1496_v32 = vadd.f32 %v2552_v58, %v1495_v41  ;;  %v2739_v3 = vpop.f32.mrb[29].mxu1 }
0x12fe   :  { %v1498_v38 = vpop.f32.mrb[30].mxu1 }
0x12ff   :  { %v2558_v4 = vmul.f32 -1.442695, %v1496_v32  ;;  %v2740_v5 = vpop.f32.mrb[31].mxu1 }
0x1301   :  { %3106 = vpow2.f32 %v2558_v4 }
0x130b   :  { %v3107_v0 = vpop.eup %3106 }
0x130c   :  { %v1504_v6 = vadd.f32 1.0, %v3107_v0 }
0x130e   :  { %3108 = vrcp.f32 %v1504_v6 }
0x1318   :  { %v3109_v42 = vpop.eup %3108 }
0x1319   :  { %1508 = vst.msk [vmem:[%s4121_s21] sm:$0x3] %vm1507_vm9, %v3109_v42 }
0x131c   :  { %v1651_v8 = vpop.f32.mrb[32].mxu1 }
0x131d   :  { %v1652_v49 = vadd.f32 %v1651_v8, %v1530_v45  ;;  %v1653_v52 = vpop.f32.mrb[33].mxu1 }
0x131e   :  { %v1654_v9 = vadd.f32 %v1653_v52, %v1534_v47  ;;  %v1655_v26 = vpop.f32.mrb[34].mxu1 }
0x131f   :  { %v1658_v11 = vmax.f32 %v1652_v49, 0.0  ;;  %v1656_v12 = vpop.f32.mrb[35].mxu1 }
0x1320   :  { %v1659_v13 = vmax.f32 %v1654_v9, 0.0 }
0x1321   :  { %v3990_v16 = vpack.c.bf16 %v1658_v11, %v1658_v11 }
0x1322   :  { %v1661_v14 = vpack.c.bf16 %v1659_v13, %v1659_v13 }
0x1324   :  { %2302 = vmatprep.mubr.bf16.mxu0 %v1661_v14  ;;  %2343 = vmatprep.mubr.bf16.mxu1 %v1661_v14 }
0x1325   :  { %2303 = vmatmul.mubr.bf16.vlgmr.msra.gmra.mrb[24].mxu0 %v3990_v16  ;;  %2344 = vmatmul.mubr.bf16.vlgmr.msra.gmra.mrb[36].mxu1 %v3990_v16 }
0x1326   :  { %2353 = vmatpush1.bf16.msra.mxu0 %v2962_v15  ;;  %2384 = vmatprep.mubr.bf16.mxu0 %v1661_v14  ;;  %v3139_v15 = vmov 1983009808  }
0x1327   :  { %2354 = vmatprep.subr.bf16.mxu0 %v2967_v18 }
0x132a   :  { %2355 = vmatpush1.bf16.msra.mxu0 %v2965_v19 }
0x132b   :  { %2356 = vmatprep.subr.bf16.mxu0 %v2970_v39 }
0x132e   :  { %2357 = vmatpush1.bf16.msra.mxu0 %v2968_v22 }
0x132f   :  { %2358 = vmatprep.subr.bf16.mxu0 %v2973_v31 }
0x1332   :  { %2359 = vmatpush1.bf16.msra.mxu0 %v2971_v43 }
0x1333   :  { %2360 = vmatprep.subr.bf16.mxu0 %v2976_v46 }
0x1336   :  { %2361 = vmatpush1.bf16.msra.mxu0 %v2974_v55 }
0x1337   :  { %2362 = vmatprep.subr.bf16.mxu0 %v2979_v23 }
0x133a   :  { %2363 = vmatpush1.bf16.msra.mxu0 %v2977_v24 }
0x133b   :  { %2364 = vmatprep.subr.bf16.mxu0 %v2982_v20 }
0x133e   :  { %2365 = vmatpush1.bf16.msra.mxu0 %v2980_v25  ;;  %v1778_v25 = vsub.s32 4, %v3335_v17 }
0x133f   :  { %2366 = vmatprep.subr.bf16.mxu0 %v2985_v2  ;;  %v1782_v2 = vsub.s32 5, %v3335_v17 }
0x1342   :  { %2367 = vmatpush1.bf16.msra.mxu0 %v2983_v28  ;;  %v1779_v28 = vrot.slane %v1758_v59, %v1778_v25 }
0x1343   :  { %2368 = vmatprep.subr.bf16.mxu0 %v2988_v27  ;;  %v1783_v27 = vrot.slane %v1758_v59, %v1782_v2 }
0x1346   :  { %2369 = vmatpush1.bf16.msra.mxu0 %v2986_v10 }
0x1347   :  { %2370 = vmatprep.subr.bf16.mxu0 %v2991_v29 }
0x134a   :  { %2371 = vmatpush1.bf16.msra.mxu0 %v2989_v34 }
0x134b   :  { %2372 = vmatprep.subr.bf16.mxu0 %v2994_v35 }
0x134e   :  { %2373 = vmatpush1.bf16.msra.mxu0 %v2992_v36 }
0x134f   :  { %2374 = vmatprep.subr.bf16.mxu0 %v2997_v37 }
0x1352   :  { %2375 = vmatpush1.bf16.msra.mxu0 %v2995_v44 }
0x1353   :  { %2376 = vmatprep.subr.bf16.mxu0 %v3000_v48 }
0x1356   :  { %2377 = vmatpush1.bf16.msra.mxu0 %v2998_v63 }
0x1357   :  { %2378 = vmatprep.subr.bf16.mxu0 %v3003_v50 }
0x135a   :  { %2379 = vmatpush1.bf16.msra.mxu0 %v3001_v51 }
0x135b   :  { %2380 = vmatprep.subr.bf16.mxu0 %v3006_v53 }
0x135e   :  { %2381 = vmatpush1.bf16.msra.mxu0 %v3004_v54 }
0x135f   :  { %2382 = vmatprep.subr.bf16.mxu0 %v3009_v56 }
0x1362   :  { %2383 = vmatpush1.bf16.msra.mxu0 %v3007_v57 }
0x1365   :  { %2385 = vmatmul.mubr.bf16.vlgmr.msra.gmra.mrb[28].mxu0 %v3990_v16  ;;  %v2438_v16 = vunpack.c.l.s4 %v3139_v15 }
0x1367   :  { %v2439_v18 = vunpack.c.0.s8 %v2438_v16 }
0x1369   :  { %v2442_v22 = vsub.s32 %v2439_v18, %v3335_v17 }
0x13f8   :  { %v2304_v58 = vpop.f32.mrb[24].mxu0  ;;  %v2345_v41 = vpop.f32.mrb[36].mxu1 }
0x13f9   :  { %v2305_v32 = vadd.f32 %v2304_v58, %v1763_v61  ;;  %v2346_v3 = vadd.f32 %v2345_v41, %v1771_v1  ;;  %v2306_v38 = vpop.f32.mrb[25].mxu0  ;;  %v2347_v4 = vpop.f32.mrb[37].mxu1 }
0x13fa   :  { %v2307_v5 = vadd.f32 %v2306_v38, %v1767_v62  ;;  %v2348_v0 = vadd.f32 %v2347_v4, %v1775_v33  ;;  %v2308_v6 = vpop.f32.mrb[26].mxu0  ;;  %v2349_v7 = vpop.f32.mrb[38].mxu1 }
0x13fb   :  { %v2671_v42 = vmul.f32 -1.442695, %v2305_v32  ;;  %v2673_v45 = vmul.f32 -1.442695, %v2346_v3  ;;  %v2309_v47 = vpop.f32.mrb[27].mxu0  ;;  %v2350_v8 = vpop.f32.mrb[39].mxu1 }
0x13fc   :  { %v2672_v49 = vmul.f32 -1.442695, %v2307_v5  ;;  %v2674_v21 = vmul.f32 -1.442695, %v2348_v0 }
0x13fd   :  { %3110 = vpow2.f32 %v2671_v42 }
0x13fe   :  { %3112 = vpow2.f32 %v2673_v45 }
0x13ff   :  { %3114 = vpow2.f32 %v2672_v49 }
0x1400   :  { %3116 = vpow2.f32 %v2674_v21 }
0x1407   :  { %v3111_v40 = vpop.eup %3110 }
0x1408   :  { %v3113_v52 = vpop.eup %3112  ;;  %v2411_v9 = vadd.f32 1.0, %v3111_v40 }
0x1409   :  { %v3115_v26 = vpop.eup %3114  ;;  %v2413_v11 = vadd.f32 1.0, %v3113_v52 }
0x140a   :  { %v3117_v12 = vpop.eup %3116  ;;  %3118 = vrcp.f32 %v2411_v9  ;;  %v2412_v13 = vadd.f32 1.0, %v3115_v26 }
0x140b   :  { %3120 = vrcp.f32 %v2413_v11  ;;  %v2414_v14 = vadd.f32 1.0, %v3117_v12 }
0x140c   :  { %3122 = vrcp.f32 %v2412_v13 }
0x140d   :  { %3124 = vrcp.f32 %v2414_v14 }
0x1414   :  { %v3119_v19 = vpop.eup %3118 }
0x1415   :  { %v3121_v39 = vpop.eup %3120 }
0x1416   :  { %v3123_v31 = vpop.eup %3122 }
0x1417   :  { %v3125_v43 = vpop.eup %3124  ;;  %v2435_v46 = vcombine.low %v3119_v19, %v3123_v31 }
0x1418   :  { %v2436_v55 = vcombine.low %v3121_v39, %v3125_v43 }
0x1419   :  { %v2443_v23 = vrot.slane %v2435_v46, %v2442_v22 }
0x141a   :  { %v2450_v24 = vrot.slane %v2436_v55, %v2442_v22 }
0x141c   :  { %v2451_v20 = vcombine.low %v2443_v23, %v2450_v24 }
0x141e   :  { %2462 = vst [vmem:[%s4123_s22] sm:$0xff] %v2451_v20 }
0x1438   :  { %v2386_v10 = vpop.f32.mrb[28].mxu0 }
0x1439   :  { %v2387_v29 = vadd.f32 %v2386_v10, %v1779_v28  ;;  %v2388_v34 = vpop.f32.mrb[29].mxu0 }
0x143a   :  { %v2389_v35 = vadd.f32 %v2388_v34, %v1783_v27  ;;  %v2390_v36 = vpop.f32.mrb[30].mxu0 }
0x143b   :  { %v2675_v37 = vmul.f32 -1.442695, %v2387_v29  ;;  %v2391_v44 = vpop.f32.mrb[31].mxu0 }
0x143c   :  { %v2676_v48 = vmul.f32 -1.442695, %v2389_v35 }
0x143d   :  { %3126 = vpow2.f32 %v2675_v37 }
0x143e   :  { %3128 = vpow2.f32 %v2676_v48 }
0x1447   :  { %v3127_v63 = vpop.eup %3126 }
0x1448   :  { %v3129_v50 = vpop.eup %3128  ;;  %v2415_v51 = vadd.f32 1.0, %v3127_v63 }
0x1449   :  { %v2416_v53 = vadd.f32 1.0, %v3129_v50 }
0x144a   :  { %3130 = vrcp.f32 %v2415_v51 }
0x144b   :  { %3132 = vrcp.f32 %v2416_v53 }
0x1454   :  { %v3131_v54 = vpop.eup %3130 }
0x1455   :  { %v3133_v17 = vpop.eup %3132 }
0x1456   :  { %v2452_v56 = vcombine.low %v3131_v54, %v3133_v17 }
0x1458   :  { %2677 = vst.sshfl [vmem:[%s4123_s22 + $0x8] sm:$0x33 pattern:$0x76325410] %v2452_v56 }

// kernel: _lambda_.2
= control target key start
LH: loop header
LB: loop body
LE: loop exit
PB: predicated region body
PF: predicated region fallthrough
CT: control target
= control target key end

     0   :  { %s6891_s24 = smov 0   ;;  %s7712_s0 = inlined_call_operand.vmem [shape: f32[2,8,768], index: 0, kind: input, shape index: {}]   ;;  %s7713_s1 = inlined_call_operand.vmem [shape: bf16[2,768,1024], index: 1, kind: input, shape index: {}]   ;;  %s7714_s2 = inlined_call_operand.vmem [shape: f32[2,1,1024], index: 2, kind: input, shape index: {}]   ;;  %s7715_s3 = inlined_call_operand.vmem [shape: bf16[2,1024,512], index: 3, kind: input, shape index: {}]   ;;  %s7716_s4 = inlined_call_operand.vmem [shape: f32[2,1,512], index: 4, kind: input, shape index: {}]   ;;  %s7717_s5 = inlined_call_operand.vmem [shape: bf16[2,512,32], index: 5, kind: input, shape index: {}]   ;;  %s7718_s6 = inlined_call_operand.vmem [shape: f32[2,1,32], index: 6, kind: input, shape index: {}]   ;;  %s7719_s7 = inlined_call_operand.vmem [shape: f32[2,8,32], index: 7, kind: output, shape index: {}]  }
   0x1 LB: > { %s5613_s25 = sadd.s32 4294967295, %s6849_s24   ;;  %p5617_p0 = scmp.ge.s32.totalorder %s6849_s24, 1  ;;  %s6849_s24 = sphi %s6891_s24, %s17_s24  }
   0x2   : > { %p293_p1 = scmp.lt.s32.totalorder %s6849_s24, 3 }
   0x4   : > { %p294_p2 = pnand %p5617_p0, %p293_p1 }
   0x5   : > { %p350_p3 = scmp.lt.s32.totalorder (!%p294_p2), %s5613_s25, 1  ;;  %vm5489_vm0 = vcmask (!%p294_p2), 261120  }
   0x6   : > { %297 = sbr.rel (%p294_p2) target bundleno = 1129 (0x469), region = 48 }
   0xd   : > { %s7721_s25 = smov (!%p350_p3, %s5613_s25), 1 }
   0xe   : > { %s6417_s26 = smul.u32 3072, %s7721_s25  ;;  %s6302_s11 = sshll.u32 %s7721_s25, 11 }
   0xf   : > { %s6416_s30 = smul.u32 48, %s7721_s25  ;;  %s7215_s14 = scalar_lea.vmem %s7715_s3, %s6302_s11 }
  0x10   : > { %s6905_s29 = scalar_lea.vmem %s7713_s1, %s6417_s26  ;;  %s5620_s15 = sshll.u32 %s7721_s25, 3 }
  0x11   : > { %v398_v0 = vld [vmem:[%s6905_s29] sm:$0xff]  ;;  %v399_v2 = vld [vmem:[%s6905_s29 + $0x8] sm:$0xff]  ;;  %s6937_s10 = scalar_lea.vmem %s7712_s0, %s6416_s30  ;;  %s7371_s18 = scalar_lea.vmem %s7714_s2, %s5620_s15 }
  0x12   : > { %v402_v1 = vld [vmem:[%s6905_s29 + $0x20] sm:$0xff]  ;;  %v403_v4 = vld [vmem:[%s6905_s29 + $0x28] sm:$0xff]  ;;  %s6303_s19 = sshll.u32 %s7721_s25, 8  ;;  %s5623_s23 = sshll.u32 %s7721_s25, 2 }
  0x13   : > { %v5628_v3 = vcombine.high %v398_v0, %v402_v1  ;;  %v5627_v5 = vcombine.low %v398_v0, %v402_v1  ;;  %v406_v6 = vld [vmem:[%s6905_s29 + $0x40] sm:$0xff]  ;;  %v5630_v8 = vcombine.high %v399_v2, %v403_v4  ;;  %v5629_v9 = vcombine.low %v399_v2, %v403_v4  ;;  %v407_v11 = vld [vmem:[%s6905_s29 + $0x48] sm:$0xff]  ;;  %s7551_s22 = scalar_lea.vmem %s7717_s5, %s6303_s19  ;;  %s372_s28 = scalar_lea.vmem %s7716_s4, %s5623_s23 }
  0x14   : > { %v410_v7 = vld [vmem:[%s6905_s29 + $0x60] sm:$0xff]  ;;  %v411_v12 = vld [vmem:[%s6905_s29 + $0x68] sm:$0xff]  ;;  %s380_s8 = scalar_lea.vmem %s7718_s6, %s7721_s25  ;;  %s384_s11 = scalar_lea.vmem %s7719_s7, %s5620_s15 }
  0x15   : > { %v5636_v10 = vcombine.high %v406_v6, %v410_v7  ;;  %v414_v13 = vld [vmem:[%s6905_s29 + $0x80] sm:$0xff]  ;;  %2744 = vmatprep.subr.bf16.mxu0 %v5628_v3  ;;  %v5638_v14 = vcombine.high %v407_v11, %v411_v12  ;;  %v415_v16 = vld [vmem:[%s6905_s29 + $0x88] sm:$0xff]  ;;  %2867 = vmatprep.subr.bf16.mxu1 %v5630_v8  ;;  %v5635_v18 = vcombine.low %v406_v6, %v410_v7 }
  0x16   : > { %v418_v15 = vld [vmem:[%s6905_s29 + $0xa0] sm:$0xff]  ;;  %v419_v17 = vld [vmem:[%s6905_s29 + $0xa8] sm:$0xff]  ;;  %2745 = vmatpush1.bf16.msra.mxu0 %v5627_v5  ;;  %2868 = vmatpush1.bf16.msra.mxu1 %v5629_v9  ;;  %v5637_v19 = vcombine.low %v407_v11, %v411_v12 }
  0x17   : > { %2746 = vmatprep.subr.bf16.mxu0 %v5636_v10  ;;  %v5644_v20 = vcombine.high %v414_v13, %v418_v15  ;;  %2869 = vmatprep.subr.bf16.mxu1 %v5638_v14  ;;  %v5646_v21 = vcombine.high %v415_v16, %v419_v17  ;;  %v422_v22 = vld [vmem:[%s6905_s29 + $0xc0] sm:$0xff]  ;;  %v423_v24 = vld [vmem:[%s6905_s29 + $0xc8] sm:$0xff]  ;;  %v5643_v26 = vcombine.low %v414_v13, %v418_v15 }
  0x18   : > { %v426_v23 = vld [vmem:[%s6905_s29 + $0xe0] sm:$0xff]  ;;  %v427_v25 = vld [vmem:[%s6905_s29 + $0xe8] sm:$0xff]  ;;  %v5645_v27 = vcombine.low %v415_v16, %v419_v17 }
  0x19   : > { %v5652_v28 = vcombine.high %v422_v22, %v426_v23  ;;  %v5654_v29 = vcombine.high %v423_v24, %v427_v25  ;;  %v430_v30 = vld [vmem:[%s6905_s29 + $0x100] sm:$0xff]  ;;  %v431_v32 = vld [vmem:[%s6905_s29 + $0x108] sm:$0xff]  ;;  %v5651_v34 = vcombine.low %v422_v22, %v426_v23  ;;  %v5653_v35 = vcombine.low %v423_v24, %v427_v25 }
  0x1a   : > { %2747 = vmatpush1.bf16.msra.mxu0 %v5635_v18  ;;  %2870 = vmatpush1.bf16.msra.mxu1 %v5637_v19  ;;  %v434_v31 = vld [vmem:[%s6905_s29 + $0x120] sm:$0xff]  ;;  %v435_v33 = vld [vmem:[%s6905_s29 + $0x128] sm:$0xff] }
  0x1b   : > { %2748 = vmatprep.subr.bf16.mxu0 %v5644_v20  ;;  %2871 = vmatprep.subr.bf16.mxu1 %v5646_v21  ;;  %v5660_v36 = vcombine.high %v430_v30, %v434_v31  ;;  %v5662_v37 = vcombine.high %v431_v32, %v435_v33  ;;  %v438_v38 = vld [vmem:[%s6905_s29 + $0x140] sm:$0xff]  ;;  %v439_v40 = vld [vmem:[%s6905_s29 + $0x148] sm:$0xff]  ;;  %v5659_v42 = vcombine.low %v430_v30, %v434_v31 }
  0x1c   : > { %v442_v39 = vld [vmem:[%s6905_s29 + $0x160] sm:$0xff]  ;;  %v443_v41 = vld [vmem:[%s6905_s29 + $0x168] sm:$0xff]  ;;  %v5661_v43 = vcombine.low %v431_v32, %v435_v33 }
  0x1d   : > { %v5668_v44 = vcombine.high %v438_v38, %v442_v39  ;;  %v5670_v45 = vcombine.high %v439_v40, %v443_v41  ;;  %v446_v46 = vld [vmem:[%s6905_s29 + $0x180] sm:$0xff]  ;;  %v447_v48 = vld [vmem:[%s6905_s29 + $0x188] sm:$0xff]  ;;  %v5667_v50 = vcombine.low %v438_v38, %v442_v39  ;;  %v5669_v51 = vcombine.low %v439_v40, %v443_v41 }
  0x1e   : > { %2749 = vmatpush1.bf16.msra.mxu0 %v5643_v26  ;;  %2872 = vmatpush1.bf16.msra.mxu1 %v5645_v27  ;;  %v450_v47 = vld [vmem:[%s6905_s29 + $0x1a0] sm:$0xff]  ;;  %v451_v49 = vld [vmem:[%s6905_s29 + $0x1a8] sm:$0xff] }
  0x1f   : > { %2750 = vmatprep.subr.bf16.mxu0 %v5652_v28  ;;  %2873 = vmatprep.subr.bf16.mxu1 %v5654_v29  ;;  %v5676_v52 = vcombine.high %v446_v46, %v450_v47  ;;  %v387_v53 = vld [vmem:[%s6937_s10 + $0x8] sm:$0xff]  ;;  %v5678_v54 = vcombine.high %v447_v48, %v451_v49  ;;  %v454_v55 = vld [vmem:[%s6905_s29 + $0x1c0] sm:$0xff]  ;;  %v5675_v60 = vcombine.low %v446_v46, %v450_v47 }
  0x20   : > { %v458_v56 = vld [vmem:[%s6905_s29 + $0x1e0] sm:$0xff]  ;;  %v6944_v57 = vpack.c.bf16 %v387_v53, %v387_v53  ;;  %v455_v58 = vld [vmem:[%s6905_s29 + $0x1c8] sm:$0xff]  ;;  %v5677_v61 = vcombine.low %v447_v48, %v451_v49 }
  0x21   : > { %v459_v59 = vld [vmem:[%s6905_s29 + $0x1e8] sm:$0xff]  ;;  %v5684_v62 = vcombine.high %v454_v55, %v458_v56  ;;  %v462_v0 = vld [vmem:[%s6905_s29 + $0x200] sm:$0xff]  ;;  %v5683_v4 = vcombine.low %v454_v55, %v458_v56 }
  0x22   : > { %2751 = vmatpush1.bf16.msra.mxu0 %v5651_v34  ;;  %2874 = vmatpush1.bf16.msra.mxu1 %v5653_v35  ;;  %v5686_v63 = vcombine.high %v455_v58, %v459_v59  ;;  %v466_v1 = vld [vmem:[%s6905_s29 + $0x220] sm:$0xff]  ;;  %v463_v2 = vld [vmem:[%s6905_s29 + $0x208] sm:$0xff]  ;;  %v5685_v5 = vcombine.low %v455_v58, %v459_v59 }
  0x23   : > { %2752 = vmatprep.subr.bf16.mxu0 %v5660_v36  ;;  %2875 = vmatprep.subr.bf16.mxu1 %v5662_v37  ;;  %v467_v3 = vld [vmem:[%s6905_s29 + $0x228] sm:$0xff]  ;;  %v5692_v6 = vcombine.high %v462_v0, %v466_v1  ;;  %v470_v8 = vld [vmem:[%s6905_s29 + $0x240] sm:$0xff]  ;;  %v5691_v12 = vcombine.low %v462_v0, %v466_v1 }
  0x24   : > { %2776 = vmatprep.mubr.bf16.mxu0 %v6944_v57  ;;  %2899 = vmatprep.mubr.bf16.mxu1 %v6944_v57  ;;  %v5694_v7 = vcombine.high %v463_v2, %v467_v3  ;;  %v474_v9 = vld [vmem:[%s6905_s29 + $0x260] sm:$0xff]  ;;  %v471_v10 = vld [vmem:[%s6905_s29 + $0x248] sm:$0xff]  ;;  %v5693_v13 = vcombine.low %v463_v2, %v467_v3 }
  0x25   : > { %v475_v11 = vld [vmem:[%s6905_s29 + $0x268] sm:$0xff]  ;;  %v5700_v14 = vcombine.high %v470_v8, %v474_v9  ;;  %v478_v16 = vld [vmem:[%s6905_s29 + $0x280] sm:$0xff]  ;;  %v5699_v20 = vcombine.low %v470_v8, %v474_v9 }
  0x26   : > { %2753 = vmatpush1.bf16.msra.mxu0 %v5659_v42  ;;  %2876 = vmatpush1.bf16.msra.mxu1 %v5661_v43  ;;  %v5702_v15 = vcombine.high %v471_v10, %v475_v11  ;;  %v482_v17 = vld [vmem:[%s6905_s29 + $0x2a0] sm:$0xff]  ;;  %v479_v18 = vld [vmem:[%s6905_s29 + $0x288] sm:$0xff]  ;;  %v5701_v21 = vcombine.low %v471_v10, %v475_v11 }
  0x27   : > { %2754 = vmatprep.subr.bf16.mxu0 %v5668_v44  ;;  %2877 = vmatprep.subr.bf16.mxu1 %v5670_v45  ;;  %v483_v19 = vld [vmem:[%s6905_s29 + $0x2a8] sm:$0xff]  ;;  %v5708_v22 = vcombine.high %v478_v16, %v482_v17  ;;  %v486_v24 = vld [vmem:[%s6905_s29 + $0x2c0] sm:$0xff]  ;;  %v5707_v28 = vcombine.low %v478_v16, %v482_v17 }
  0x28   : > { %v5710_v23 = vcombine.high %v479_v18, %v483_v19  ;;  %v490_v25 = vld [vmem:[%s6905_s29 + $0x2e0] sm:$0xff]  ;;  %v487_v26 = vld [vmem:[%s6905_s29 + $0x2c8] sm:$0xff]  ;;  %v5709_v29 = vcombine.low %v479_v18, %v483_v19 }
  0x29   : > { %v491_v27 = vld [vmem:[%s6905_s29 + $0x2e8] sm:$0xff]  ;;  %v5716_v30 = vcombine.high %v486_v24, %v490_v25  ;;  %v494_v32 = vld [vmem:[%s6905_s29 + $0x300] sm:$0xff]  ;;  %v5715_v36 = vcombine.low %v486_v24, %v490_v25 }
  0x2a   : > { %2755 = vmatpush1.bf16.msra.mxu0 %v5667_v50  ;;  %2878 = vmatpush1.bf16.msra.mxu1 %v5669_v51  ;;  %v5718_v31 = vcombine.high %v487_v26, %v491_v27  ;;  %v498_v33 = vld [vmem:[%s6905_s29 + $0x320] sm:$0xff]  ;;  %v495_v34 = vld [vmem:[%s6905_s29 + $0x308] sm:$0xff]  ;;  %v5717_v37 = vcombine.low %v487_v26, %v491_v27 }
  0x2b   : > { %2756 = vmatprep.subr.bf16.mxu0 %v5676_v52  ;;  %2879 = vmatprep.subr.bf16.mxu1 %v5678_v54  ;;  %v499_v35 = vld [vmem:[%s6905_s29 + $0x328] sm:$0xff]  ;;  %v5724_v38 = vcombine.high %v494_v32, %v498_v33  ;;  %v502_v40 = vld [vmem:[%s6905_s29 + $0x340] sm:$0xff]  ;;  %v5723_v44 = vcombine.low %v494_v32, %v498_v33 }
  0x2c   : > { %v5726_v39 = vcombine.high %v495_v34, %v499_v35  ;;  %v506_v41 = vld [vmem:[%s6905_s29 + $0x360] sm:$0xff]  ;;  %v503_v42 = vld [vmem:[%s6905_s29 + $0x348] sm:$0xff]  ;;  %v5725_v45 = vcombine.low %v495_v34, %v499_v35 }
  0x2d   : > { %v507_v43 = vld [vmem:[%s6905_s29 + $0x368] sm:$0xff]  ;;  %v5732_v46 = vcombine.high %v502_v40, %v506_v41  ;;  %v510_v48 = vld [vmem:[%s6905_s29 + $0x380] sm:$0xff]  ;;  %v5731_v52 = vcombine.low %v502_v40, %v506_v41 }
  0x2e   : > { %2757 = vmatpush1.bf16.msra.mxu0 %v5675_v60  ;;  %2880 = vmatpush1.bf16.msra.mxu1 %v5677_v61  ;;  %v5734_v47 = vcombine.high %v503_v42, %v507_v43  ;;  %v514_v49 = vld [vmem:[%s6905_s29 + $0x3a0] sm:$0xff]  ;;  %v511_v50 = vld [vmem:[%s6905_s29 + $0x388] sm:$0xff]  ;;  %v5733_v53 = vcombine.low %v503_v42, %v507_v43 }
  0x2f   : > { %2758 = vmatprep.subr.bf16.mxu0 %v5684_v62  ;;  %2881 = vmatprep.subr.bf16.mxu1 %v5686_v63  ;;  %v515_v51 = vld [vmem:[%s6905_s29 + $0x3a8] sm:$0xff]  ;;  %v5740_v54 = vcombine.high %v510_v48, %v514_v49  ;;  %v518_v56 = vld [vmem:[%s6905_s29 + $0x3c0] sm:$0xff]  ;;  %v5739_v61 = vcombine.low %v510_v48, %v514_v49 }
  0x30   : > { %v5742_v55 = vcombine.high %v511_v50, %v515_v51  ;;  %v522_v58 = vld [vmem:[%s6905_s29 + $0x3e0] sm:$0xff]  ;;  %v519_v59 = vld [vmem:[%s6905_s29 + $0x3c8] sm:$0xff]  ;;  %v5741_v62 = vcombine.low %v511_v50, %v515_v51 }
  0x31   : > { %v523_v60 = vld [vmem:[%s6905_s29 + $0x3e8] sm:$0xff]  ;;  %v5748_v63 = vcombine.high %v518_v56, %v522_v58  ;;  %v526_v1 = vld [vmem:[%s6905_s29 + $0x400] sm:$0xff] }
  0x32   : > { %2759 = vmatpush1.bf16.msra.mxu0 %v5683_v4  ;;  %2882 = vmatpush1.bf16.msra.mxu1 %v5685_v5  ;;  %v5750_v0 = vcombine.high %v519_v59, %v523_v60  ;;  %v530_v2 = vld [vmem:[%s6905_s29 + $0x420] sm:$0xff]  ;;  %v527_v3 = vld [vmem:[%s6905_s29 + $0x408] sm:$0xff]  ;;  %v5747_v5 = vcombine.low %v518_v56, %v522_v58 }
  0x33   : > { %2760 = vmatprep.subr.bf16.mxu0 %v5692_v6  ;;  %2883 = vmatprep.subr.bf16.mxu1 %v5694_v7  ;;  %v531_v4 = vld [vmem:[%s6905_s29 + $0x428] sm:$0xff]  ;;  %v386_v6 = vld [vmem:[%s6937_s10] sm:$0xff]  ;;  %v5749_v7 = vcombine.low %v519_v59, %v523_v60  ;;  %v5756_v8 = vcombine.high %v526_v1, %v530_v2  ;;  %v5755_v16 = vcombine.low %v526_v1, %v530_v2 }
  0x34   : > { %v5758_v9 = vcombine.high %v527_v3, %v531_v4  ;;  %v534_v10 = vld [vmem:[%s6905_s29 + $0x440] sm:$0xff]  ;;  %v5757_v17 = vcombine.low %v527_v3, %v531_v4  ;;  %v547_v24 = vld [vmem:[%s6905_s29 + $0x4a8] sm:$0xff] }
  0x35   : > { %v538_v11 = vld [vmem:[%s6905_s29 + $0x460] sm:$0xff]  ;;  %v555_v32 = vld [vmem:[%s6905_s29 + $0x4e8] sm:$0xff] }
  0x36   : > { %2761 = vmatpush1.bf16.msra.mxu0 %v5691_v12  ;;  %2884 = vmatpush1.bf16.msra.mxu1 %v5693_v13  ;;  %v6989_v12 = vpack.c.bf16 %v386_v6, %v386_v6  ;;  %v535_v13 = vld [vmem:[%s6905_s29 + $0x448] sm:$0xff]  ;;  %v5764_v18 = vcombine.high %v534_v10, %v538_v11  ;;  %v5763_v25 = vcombine.low %v534_v10, %v538_v11  ;;  %v590_v6 = vld [vmem:[%s6905_s29 + $0x600] sm:$0xff] }
  0x37   : > { %2762 = vmatprep.subr.bf16.mxu0 %v5700_v14  ;;  %2885 = vmatprep.subr.bf16.mxu1 %v5702_v15  ;;  %v539_v14 = vld [vmem:[%s6905_s29 + $0x468] sm:$0xff]  ;;  %v389_v15 = vld [vmem:[%s6937_s10 + $0x18] sm:$0xff] }
  0x38   : > { %v5766_v19 = vcombine.high %v535_v13, %v539_v14  ;;  %v5765_v26 = vcombine.low %v535_v13, %v539_v14  ;;  %v563_v40 = vld [vmem:[%s6905_s29 + $0x528] sm:$0xff] }
  0x39   : > { %v571_v48 = vld [vmem:[%s6905_s29 + $0x568] sm:$0xff] }
  0x3a   : > { %2763 = vmatpush1.bf16.msra.mxu0 %v5699_v20  ;;  %2886 = vmatpush1.bf16.msra.mxu1 %v5701_v21  ;;  %v542_v20 = vld [vmem:[%s6905_s29 + $0x480] sm:$0xff]  ;;  %v579_v56 = vld [vmem:[%s6905_s29 + $0x5a8] sm:$0xff] }
  0x3b   : > { %2764 = vmatprep.subr.bf16.mxu0 %v5708_v22  ;;  %2887 = vmatprep.subr.bf16.mxu1 %v5710_v23  ;;  %v546_v21 = vld [vmem:[%s6905_s29 + $0x4a0] sm:$0xff]  ;;  %v6996_v22 = vpack.c.bf16 %v389_v15, %v389_v15  ;;  %v543_v23 = vld [vmem:[%s6905_s29 + $0x488] sm:$0xff] }
  0x3c   : > { %v5772_v27 = vcombine.high %v542_v20, %v546_v21  ;;  %v5771_v33 = vcombine.low %v542_v20, %v546_v21  ;;  %v5773_v34 = vcombine.low %v543_v23, %v547_v24  ;;  %v587_v1 = vld [vmem:[%s6905_s29 + $0x5e8] sm:$0xff]  ;;  %v598_v15 = vld [vmem:[%s6905_s29 + $0x640] sm:$0xff] }
  0x3e   : > { %2765 = vmatpush1.bf16.msra.mxu0 %v5707_v28  ;;  %2888 = vmatpush1.bf16.msra.mxu1 %v5709_v29  ;;  %v5774_v28 = vcombine.high %v543_v23, %v547_v24  ;;  %v550_v29 = vld [vmem:[%s6905_s29 + $0x4c0] sm:$0xff] }
  0x3f   : > { %2766 = vmatprep.subr.bf16.mxu0 %v5716_v30  ;;  %2889 = vmatprep.subr.bf16.mxu1 %v5718_v31  ;;  %v554_v30 = vld [vmem:[%s6905_s29 + $0x4e0] sm:$0xff]  ;;  %v551_v31 = vld [vmem:[%s6905_s29 + $0x4c8] sm:$0xff] }
  0x40   : > { %v5780_v35 = vcombine.high %v550_v29, %v554_v30  ;;  %v5779_v41 = vcombine.low %v550_v29, %v554_v30  ;;  %v5781_v42 = vcombine.low %v551_v31, %v555_v32  ;;  %v606_v24 = vld [vmem:[%s6905_s29 + $0x680] sm:$0xff] }
  0x42   : > { %2767 = vmatpush1.bf16.msra.mxu0 %v5715_v36  ;;  %2890 = vmatpush1.bf16.msra.mxu1 %v5717_v37  ;;  %v5782_v36 = vcombine.high %v551_v31, %v555_v32  ;;  %v558_v37 = vld [vmem:[%s6905_s29 + $0x500] sm:$0xff] }
  0x43   : > { %2768 = vmatprep.subr.bf16.mxu0 %v5724_v38  ;;  %2891 = vmatprep.subr.bf16.mxu1 %v5726_v39  ;;  %v562_v38 = vld [vmem:[%s6905_s29 + $0x520] sm:$0xff]  ;;  %v559_v39 = vld [vmem:[%s6905_s29 + $0x508] sm:$0xff] }
  0x44   : > { %v5788_v43 = vcombine.high %v558_v37, %v562_v38  ;;  %v5787_v49 = vcombine.low %v558_v37, %v562_v38  ;;  %v5789_v50 = vcombine.low %v559_v39, %v563_v40  ;;  %v614_v32 = vld [vmem:[%s6905_s29 + $0x6c0] sm:$0xff] }
  0x46   : > { %2769 = vmatpush1.bf16.msra.mxu0 %v5723_v44  ;;  %2892 = vmatpush1.bf16.msra.mxu1 %v5725_v45  ;;  %v5790_v44 = vcombine.high %v559_v39, %v563_v40  ;;  %v566_v45 = vld [vmem:[%s6905_s29 + $0x540] sm:$0xff] }
  0x47   : > { %2770 = vmatprep.subr.bf16.mxu0 %v5732_v46  ;;  %2893 = vmatprep.subr.bf16.mxu1 %v5734_v47  ;;  %v570_v46 = vld [vmem:[%s6905_s29 + $0x560] sm:$0xff]  ;;  %v567_v47 = vld [vmem:[%s6905_s29 + $0x548] sm:$0xff] }
  0x48   : > { %v5796_v51 = vcombine.high %v566_v45, %v570_v46  ;;  %v5795_v58 = vcombine.low %v566_v45, %v570_v46  ;;  %v5797_v59 = vcombine.low %v567_v47, %v571_v48  ;;  %v622_v40 = vld [vmem:[%s6905_s29 + $0x700] sm:$0xff] }
  0x4a   : > { %2771 = vmatpush1.bf16.msra.mxu0 %v5731_v52  ;;  %2894 = vmatpush1.bf16.msra.mxu1 %v5733_v53  ;;  %v5798_v52 = vcombine.high %v567_v47, %v571_v48  ;;  %v574_v53 = vld [vmem:[%s6905_s29 + $0x580] sm:$0xff] }
  0x4b   : > { %2772 = vmatprep.subr.bf16.mxu0 %v5740_v54  ;;  %2895 = vmatprep.subr.bf16.mxu1 %v5742_v55  ;;  %v578_v54 = vld [vmem:[%s6905_s29 + $0x5a0] sm:$0xff]  ;;  %v575_v55 = vld [vmem:[%s6905_s29 + $0x588] sm:$0xff] }
  0x4c   : > { %v5804_v60 = vcombine.high %v574_v53, %v578_v54  ;;  %v5803_v2 = vcombine.low %v574_v53, %v578_v54  ;;  %v5805_v3 = vcombine.low %v575_v55, %v579_v56  ;;  %v630_v48 = vld [vmem:[%s6905_s29 + $0x740] sm:$0xff] }
  0x4e   : > { %2773 = vmatpush1.bf16.msra.mxu0 %v5739_v61  ;;  %2896 = vmatpush1.bf16.msra.mxu1 %v5741_v62  ;;  %v5806_v61 = vcombine.high %v575_v55, %v579_v56  ;;  %v582_v62 = vld [vmem:[%s6905_s29 + $0x5c0] sm:$0xff] }
  0x4f   : > { %2774 = vmatprep.subr.bf16.mxu0 %v5748_v63  ;;  %2897 = vmatprep.subr.bf16.mxu1 %v5750_v0  ;;  %v586_v63 = vld [vmem:[%s6905_s29 + $0x5e0] sm:$0xff]  ;;  %v583_v0 = vld [vmem:[%s6905_s29 + $0x5c8] sm:$0xff] }
  0x50   : > { %v5812_v4 = vcombine.high %v582_v62, %v586_v63  ;;  %v5811_v10 = vcombine.low %v582_v62, %v586_v63  ;;  %v5813_v11 = vcombine.low %v583_v0, %v587_v1  ;;  %v638_v56 = vld [vmem:[%s6905_s29 + $0x780] sm:$0xff] }
  0x52   : > { %2775 = vmatpush1.bf16.msra.mxu0 %v5747_v5  ;;  %2898 = vmatpush1.bf16.msra.mxu1 %v5749_v7  ;;  %v5814_v5 = vcombine.high %v583_v0, %v587_v1  ;;  %v594_v7 = vld [vmem:[%s6905_s29 + $0x620] sm:$0xff] }
  0x53   : > { %2785 = vmatprep.subr.bf16.mxu0 %v5756_v8  ;;  %2908 = vmatprep.subr.bf16.mxu1 %v5758_v9  ;;  %v591_v8 = vld [vmem:[%s6905_s29 + $0x608] sm:$0xff]  ;;  %v5820_v13 = vcombine.high %v590_v6, %v594_v7  ;;  %v646_v1 = vld [vmem:[%s6905_s29 + $0x7c0] sm:$0xff] }
  0x54   : > { %v595_v9 = vld [vmem:[%s6905_s29 + $0x628] sm:$0xff] }
  0x55   : > { %2777 = vmatmul.mubr.bf16.vlgmr.msra.gmra.mrb[0].mxu0 %v6989_v12  ;;  %2900 = vmatmul.mubr.bf16.vlgmr.msra.gmra.mrb[0].mxu1 %v6989_v12  ;;  %v5822_v14 = vcombine.high %v591_v8, %v595_v9  ;;  %v5821_v20 = vcombine.low %v591_v8, %v595_v9  ;;  %v654_v9 = vld [vmem:[%s6905_s29 + $0x800] sm:$0xff] }
  0x56   : > { %2786 = vmatpush1.bf16.msra.mxu0 %v5755_v16  ;;  %2909 = vmatpush1.bf16.msra.mxu1 %v5757_v17  ;;  %v602_v16 = vld [vmem:[%s6905_s29 + $0x660] sm:$0xff]  ;;  %v599_v17 = vld [vmem:[%s6905_s29 + $0x648] sm:$0xff] }
  0x57   : > { %2787 = vmatprep.subr.bf16.mxu0 %v5764_v18  ;;  %2910 = vmatprep.subr.bf16.mxu1 %v5766_v19  ;;  %v603_v18 = vld [vmem:[%s6905_s29 + $0x668] sm:$0xff]  ;;  %v5819_v19 = vcombine.low %v590_v6, %v594_v7  ;;  %v5828_v21 = vcombine.high %v598_v15, %v602_v16 }
  0x58   : > { %2817 = vmatprep.mubr.bf16.mxu0 %v6996_v22  ;;  %2940 = vmatprep.mubr.bf16.mxu1 %v6996_v22  ;;  %v5830_v23 = vcombine.high %v599_v17, %v603_v18  ;;  %v5829_v29 = vcombine.low %v599_v17, %v603_v18 }
  0x5a   : > { %2788 = vmatpush1.bf16.msra.mxu0 %v5763_v25  ;;  %2911 = vmatpush1.bf16.msra.mxu1 %v5765_v26  ;;  %v610_v25 = vld [vmem:[%s6905_s29 + $0x6a0] sm:$0xff]  ;;  %v607_v26 = vld [vmem:[%s6905_s29 + $0x688] sm:$0xff] }
  0x5b   : > { %2789 = vmatprep.subr.bf16.mxu0 %v5772_v27  ;;  %2912 = vmatprep.subr.bf16.mxu1 %v5774_v28  ;;  %v611_v27 = vld [vmem:[%s6905_s29 + $0x6a8] sm:$0xff]  ;;  %v5827_v28 = vcombine.low %v598_v15, %v602_v16  ;;  %v5836_v30 = vcombine.high %v606_v24, %v610_v25  ;;  %v388_v15 = vld [vmem:[%s6937_s10 + $0x10] sm:$0xff] }
  0x5c   : > { %v5838_v31 = vcombine.high %v607_v26, %v611_v27  ;;  %v5837_v37 = vcombine.low %v607_v26, %v611_v27 }
  0x5e   : > { %2790 = vmatpush1.bf16.msra.mxu0 %v5771_v33  ;;  %2913 = vmatpush1.bf16.msra.mxu1 %v5773_v34  ;;  %v618_v33 = vld [vmem:[%s6905_s29 + $0x6e0] sm:$0xff]  ;;  %v615_v34 = vld [vmem:[%s6905_s29 + $0x6c8] sm:$0xff] }
  0x5f   : > { %2791 = vmatprep.subr.bf16.mxu0 %v5780_v35  ;;  %2914 = vmatprep.subr.bf16.mxu1 %v5782_v36  ;;  %v619_v35 = vld [vmem:[%s6905_s29 + $0x6e8] sm:$0xff]  ;;  %v5835_v36 = vcombine.low %v606_v24, %v610_v25  ;;  %v5844_v38 = vcombine.high %v614_v32, %v618_v33 }
  0x60   : > { %v5846_v39 = vcombine.high %v615_v34, %v619_v35  ;;  %v5845_v45 = vcombine.low %v615_v34, %v619_v35  ;;  %v667_v24 = vld [vmem:[%s6905_s29 + $0x868] sm:$0xff] }
  0x61   : > { %v391_v25 = vld [vmem:[%s6937_s10 + $0x28] sm:$0xff] }
  0x62   : > { %2792 = vmatpush1.bf16.msra.mxu0 %v5779_v41  ;;  %2915 = vmatpush1.bf16.msra.mxu1 %v5781_v42  ;;  %v626_v41 = vld [vmem:[%s6905_s29 + $0x720] sm:$0xff]  ;;  %v623_v42 = vld [vmem:[%s6905_s29 + $0x708] sm:$0xff] }
  0x63   : > { %2793 = vmatprep.subr.bf16.mxu0 %v5788_v43  ;;  %2916 = vmatprep.subr.bf16.mxu1 %v5790_v44  ;;  %v627_v43 = vld [vmem:[%s6905_s29 + $0x728] sm:$0xff]  ;;  %v5843_v44 = vcombine.low %v614_v32, %v618_v33  ;;  %v5852_v46 = vcombine.high %v622_v40, %v626_v41  ;;  %v7070_v32 = vpack.c.bf16 %v391_v25, %v391_v25 }
  0x64   : > { %v5854_v47 = vcombine.high %v623_v42, %v627_v43  ;;  %v5853_v53 = vcombine.low %v623_v42, %v627_v43  ;;  %v671_v33 = vld [vmem:[%s6905_s29 + $0x888] sm:$0xff] }
  0x65   : > { %v675_v34 = vld [vmem:[%s6905_s29 + $0x8a8] sm:$0xff] }
  0x66   : > { %2794 = vmatpush1.bf16.msra.mxu0 %v5787_v49  ;;  %2917 = vmatpush1.bf16.msra.mxu1 %v5789_v50  ;;  %v634_v49 = vld [vmem:[%s6905_s29 + $0x760] sm:$0xff]  ;;  %v631_v50 = vld [vmem:[%s6905_s29 + $0x748] sm:$0xff] }
  0x67   : > { %2795 = vmatprep.subr.bf16.mxu0 %v5796_v51  ;;  %2918 = vmatprep.subr.bf16.mxu1 %v5798_v52  ;;  %v635_v51 = vld [vmem:[%s6905_s29 + $0x768] sm:$0xff]  ;;  %v5851_v52 = vcombine.low %v622_v40, %v626_v41  ;;  %v5860_v54 = vcombine.high %v630_v48, %v634_v49  ;;  %v682_v40 = vld [vmem:[%s6905_s29 + $0x8e0] sm:$0xff] }
  0x68   : > { %v5862_v55 = vcombine.high %v631_v50, %v635_v51  ;;  %v5861_v62 = vcombine.low %v631_v50, %v635_v51  ;;  %v679_v41 = vld [vmem:[%s6905_s29 + $0x8c8] sm:$0xff] }
  0x69   : > { %v683_v42 = vld [vmem:[%s6905_s29 + $0x8e8] sm:$0xff] }
  0x6a   : > { %2796 = vmatpush1.bf16.msra.mxu0 %v5795_v58  ;;  %2919 = vmatpush1.bf16.msra.mxu1 %v5797_v59  ;;  %v642_v58 = vld [vmem:[%s6905_s29 + $0x7a0] sm:$0xff]  ;;  %v639_v59 = vld [vmem:[%s6905_s29 + $0x788] sm:$0xff] }
  0x6b   : > { %2797 = vmatprep.subr.bf16.mxu0 %v5804_v60  ;;  %2920 = vmatprep.subr.bf16.mxu1 %v5806_v61  ;;  %v643_v60 = vld [vmem:[%s6905_s29 + $0x7a8] sm:$0xff]  ;;  %v5859_v61 = vcombine.low %v630_v48, %v634_v49  ;;  %v5868_v63 = vcombine.high %v638_v56, %v642_v58  ;;  %v690_v48 = vld [vmem:[%s6905_s29 + $0x920] sm:$0xff] }
  0x6c   : > { %v5870_v0 = vcombine.high %v639_v59, %v643_v60  ;;  %v5869_v6 = vcombine.low %v639_v59, %v643_v60  ;;  %v687_v49 = vld [vmem:[%s6905_s29 + $0x908] sm:$0xff] }
  0x6d   : > { %v691_v50 = vld [vmem:[%s6905_s29 + $0x928] sm:$0xff] }
  0x6e   : > { %2798 = vmatpush1.bf16.msra.mxu0 %v5803_v2  ;;  %2921 = vmatpush1.bf16.msra.mxu1 %v5805_v3  ;;  %v650_v2 = vld [vmem:[%s6905_s29 + $0x7e0] sm:$0xff]  ;;  %v647_v3 = vld [vmem:[%s6905_s29 + $0x7c8] sm:$0xff] }
  0x6f   : > { %2799 = vmatprep.subr.bf16.mxu0 %v5812_v4  ;;  %2922 = vmatprep.subr.bf16.mxu1 %v5814_v5  ;;  %v651_v4 = vld [vmem:[%s6905_s29 + $0x7e8] sm:$0xff]  ;;  %v5867_v5 = vcombine.low %v638_v56, %v642_v58  ;;  %v5876_v7 = vcombine.high %v646_v1, %v650_v2  ;;  %v698_v56 = vld [vmem:[%s6905_s29 + $0x960] sm:$0xff] }
  0x70   : > { %v5878_v8 = vcombine.high %v647_v3, %v651_v4  ;;  %v5877_v16 = vcombine.low %v647_v3, %v651_v4  ;;  %v695_v58 = vld [vmem:[%s6905_s29 + $0x948] sm:$0xff] }
  0x71   : > { %v699_v59 = vld [vmem:[%s6905_s29 + $0x968] sm:$0xff] }
  0x72   : > { %2800 = vmatpush1.bf16.msra.mxu0 %v5811_v10  ;;  %2923 = vmatpush1.bf16.msra.mxu1 %v5813_v11  ;;  %v658_v10 = vld [vmem:[%s6905_s29 + $0x820] sm:$0xff]  ;;  %v655_v11 = vld [vmem:[%s6905_s29 + $0x808] sm:$0xff] }
  0x73   : > { %2801 = vmatprep.subr.bf16.mxu0 %v5820_v13  ;;  %2924 = vmatprep.subr.bf16.mxu1 %v5822_v14  ;;  %v659_v13 = vld [vmem:[%s6905_s29 + $0x828] sm:$0xff]  ;;  %v5875_v14 = vcombine.low %v646_v1, %v650_v2  ;;  %v5884_v17 = vcombine.high %v654_v9, %v658_v10  ;;  %v5883_v26 = vcombine.low %v654_v9, %v658_v10  ;;  %v706_v1 = vld [vmem:[%s6905_s29 + $0x9a0] sm:$0xff] }
  0x74   : > { %v5886_v18 = vcombine.high %v655_v11, %v659_v13  ;;  %v5885_v27 = vcombine.low %v655_v11, %v659_v13  ;;  %v703_v2 = vld [vmem:[%s6905_s29 + $0x988] sm:$0xff]  ;;  %v714_v9 = vld [vmem:[%s6905_s29 + $0x9e0] sm:$0xff] }
  0x75   : > { %v707_v3 = vld [vmem:[%s6905_s29 + $0x9a8] sm:$0xff] }
  0x76   : > { %2802 = vmatpush1.bf16.msra.mxu0 %v5819_v19  ;;  %2925 = vmatpush1.bf16.msra.mxu1 %v5821_v20  ;;  %v662_v19 = vld [vmem:[%s6905_s29 + $0x840] sm:$0xff]  ;;  %v711_v10 = vld [vmem:[%s6905_s29 + $0x9c8] sm:$0xff] }
  0x77   : > { %2803 = vmatprep.subr.bf16.mxu0 %v5828_v21  ;;  %2926 = vmatprep.subr.bf16.mxu1 %v5830_v23  ;;  %v666_v20 = vld [vmem:[%s6905_s29 + $0x860] sm:$0xff]  ;;  %v7063_v21 = vpack.c.bf16 %v388_v15, %v388_v15  ;;  %v663_v23 = vld [vmem:[%s6905_s29 + $0x848] sm:$0xff] }
  0x78   : > { %v5891_v35 = vcombine.low %v662_v19, %v666_v20  ;;  %v715_v11 = vld [vmem:[%s6905_s29 + $0x9e8] sm:$0xff] }
  0x7a   : > { %2804 = vmatpush1.bf16.msra.mxu0 %v5827_v28  ;;  %2927 = vmatpush1.bf16.msra.mxu1 %v5829_v29  ;;  %v5892_v28 = vcombine.high %v662_v19, %v666_v20  ;;  %v5894_v29 = vcombine.high %v663_v23, %v667_v24  ;;  %v719_v19 = vld [vmem:[%s6905_s29 + $0xa08] sm:$0xff] }
  0x7b   : > { %2805 = vmatprep.subr.bf16.mxu0 %v5836_v30  ;;  %2928 = vmatprep.subr.bf16.mxu1 %v5838_v31  ;;  %v670_v30 = vld [vmem:[%s6905_s29 + $0x880] sm:$0xff]  ;;  %v723_v20 = vld [vmem:[%s6905_s29 + $0xa28] sm:$0xff] }
  0x7c   : > { %v674_v31 = vld [vmem:[%s6905_s29 + $0x8a0] sm:$0xff] }
  0x7d   : > { %v5899_v43 = vcombine.low %v670_v30, %v674_v31 }
  0x7e   : > { %2806 = vmatpush1.bf16.msra.mxu0 %v5835_v36  ;;  %2929 = vmatpush1.bf16.msra.mxu1 %v5837_v37  ;;  %v5893_v36 = vcombine.low %v663_v23, %v667_v24  ;;  %v5900_v37 = vcombine.high %v670_v30, %v674_v31  ;;  %v5941_v24 = vcombine.low %v711_v10, %v715_v11  ;;  %v731_v30 = vld [vmem:[%s6905_s29 + $0xa68] sm:$0xff] }
  0x7f   : > { %2807 = vmatprep.subr.bf16.mxu0 %v5844_v38  ;;  %2930 = vmatprep.subr.bf16.mxu1 %v5846_v39  ;;  %v5902_v38 = vcombine.high %v671_v33, %v675_v34  ;;  %v678_v39 = vld [vmem:[%s6905_s29 + $0x8c0] sm:$0xff] }
  0x80   : > { %v5907_v51 = vcombine.low %v678_v39, %v682_v40 }
  0x82   : > { %2808 = vmatpush1.bf16.msra.mxu0 %v5843_v44  ;;  %2931 = vmatpush1.bf16.msra.mxu1 %v5845_v45  ;;  %v5901_v44 = vcombine.low %v671_v33, %v675_v34  ;;  %v5908_v45 = vcombine.high %v678_v39, %v682_v40  ;;  %v5949_v33 = vcombine.low %v719_v19, %v723_v20  ;;  %v739_v39 = vld [vmem:[%s6905_s29 + $0xaa8] sm:$0xff] }
  0x83   : > { %2809 = vmatprep.subr.bf16.mxu0 %v5852_v46  ;;  %2932 = vmatprep.subr.bf16.mxu1 %v5854_v47  ;;  %v5910_v46 = vcombine.high %v679_v41, %v683_v42  ;;  %v686_v47 = vld [vmem:[%s6905_s29 + $0x900] sm:$0xff] }
  0x84   : > { %v5915_v60 = vcombine.low %v686_v47, %v690_v48 }
  0x86   : > { %2810 = vmatpush1.bf16.msra.mxu0 %v5851_v52  ;;  %2933 = vmatpush1.bf16.msra.mxu1 %v5853_v53  ;;  %v5909_v52 = vcombine.low %v679_v41, %v683_v42  ;;  %v5916_v53 = vcombine.high %v686_v47, %v690_v48  ;;  %v747_v47 = vld [vmem:[%s6905_s29 + $0xae8] sm:$0xff] }
  0x87   : > { %2811 = vmatprep.subr.bf16.mxu0 %v5860_v54  ;;  %2934 = vmatprep.subr.bf16.mxu1 %v5862_v55  ;;  %v5918_v54 = vcombine.high %v687_v49, %v691_v50  ;;  %v694_v55 = vld [vmem:[%s6905_s29 + $0x940] sm:$0xff] }
  0x88   : > { %v5923_v4 = vcombine.low %v694_v55, %v698_v56 }
  0x8a   : > { %2812 = vmatpush1.bf16.msra.mxu0 %v5859_v61  ;;  %2935 = vmatpush1.bf16.msra.mxu1 %v5861_v62  ;;  %v5917_v61 = vcombine.low %v687_v49, %v691_v50  ;;  %v5924_v62 = vcombine.high %v694_v55, %v698_v56  ;;  %v755_v55 = vld [vmem:[%s6905_s29 + $0xb28] sm:$0xff] }
  0x8b   : > { %2813 = vmatprep.subr.bf16.mxu0 %v5868_v63  ;;  %2936 = vmatprep.subr.bf16.mxu1 %v5870_v0  ;;  %v5926_v63 = vcombine.high %v695_v58, %v699_v59  ;;  %v702_v0 = vld [vmem:[%s6905_s29 + $0x980] sm:$0xff] }
  0x8c   : > { %v5931_v13 = vcombine.low %v702_v0, %v706_v1 }
  0x8e   : > { %2814 = vmatpush1.bf16.msra.mxu0 %v5867_v5  ;;  %2937 = vmatpush1.bf16.msra.mxu1 %v5869_v6  ;;  %v5925_v5 = vcombine.low %v695_v58, %v699_v59  ;;  %v5932_v6 = vcombine.high %v702_v0, %v706_v1  ;;  %v763_v0 = vld [vmem:[%s6905_s29 + $0xb68] sm:$0xff] }
  0x8f   : > { %2815 = vmatprep.subr.bf16.mxu0 %v5876_v7  ;;  %2938 = vmatprep.subr.bf16.mxu1 %v5878_v8  ;;  %v5934_v7 = vcombine.high %v703_v2, %v707_v3  ;;  %v710_v8 = vld [vmem:[%s6905_s29 + $0x9c0] sm:$0xff] }
  0x90   : > { %v5940_v15 = vcombine.high %v710_v8, %v714_v9  ;;  %v5939_v23 = vcombine.low %v710_v8, %v714_v9  ;;  %v771_v8 = vld [vmem:[%s6905_s29 + $0xba8] sm:$0xff] }
  0x92   : > { %2816 = vmatpush1.bf16.msra.mxu0 %v5875_v14  ;;  %2939 = vmatpush1.bf16.msra.mxu1 %v5877_v16  ;;  %v5933_v14 = vcombine.low %v703_v2, %v707_v3  ;;  %v5942_v16 = vcombine.high %v711_v10, %v715_v11 }
  0x93   : > { %2826 = vmatprep.subr.bf16.mxu0 %v5884_v17  ;;  %2949 = vmatprep.subr.bf16.mxu1 %v5886_v18  ;;  %v718_v17 = vld [vmem:[%s6905_s29 + $0xa00] sm:$0xff] }
  0x94   : > { %v722_v18 = vld [vmem:[%s6905_s29 + $0xa20] sm:$0xff] }
  0x95   : > { %2818 = vmatmul.mubr.bf16.vlgmr.msra.gmra.mrb[0].mxu0 %v7063_v21  ;;  %2941 = vmatmul.mubr.bf16.vlgmr.msra.gmra.mrb[0].mxu1 %v7063_v21  ;;  %v5948_v25 = vcombine.high %v718_v17, %v722_v18  ;;  %v5947_v31 = vcombine.low %v718_v17, %v722_v18  ;;  %v779_v17 = vld [vmem:[%s6905_s29 + $0xbe8] sm:$0xff] }
  0x96   : > { %2827 = vmatpush1.bf16.msra.mxu0 %v5883_v26  ;;  %2950 = vmatpush1.bf16.msra.mxu1 %v5885_v27  ;;  %v5950_v26 = vcombine.high %v719_v19, %v723_v20  ;;  %v726_v27 = vld [vmem:[%s6905_s29 + $0xa40] sm:$0xff] }
  0x97   : > { %2828 = vmatprep.subr.bf16.mxu0 %v5892_v28  ;;  %2951 = vmatprep.subr.bf16.mxu1 %v5894_v29  ;;  %v730_v28 = vld [vmem:[%s6905_s29 + $0xa60] sm:$0xff]  ;;  %v727_v29 = vld [vmem:[%s6905_s29 + $0xa48] sm:$0xff] }
  0x98   : > { %2858 = vmatprep.mubr.bf16.mxu0 %v7070_v32  ;;  %2981 = vmatprep.mubr.bf16.mxu1 %v7070_v32  ;;  %v5956_v34 = vcombine.high %v726_v27, %v730_v28  ;;  %v5955_v40 = vcombine.low %v726_v27, %v730_v28  ;;  %v5957_v41 = vcombine.low %v727_v29, %v731_v30  ;;  %v405_v27 = vld [vmem:[%s6905_s29 + $0x38] sm:$0xff] }
  0x9a   : > { %2829 = vmatpush1.bf16.msra.mxu0 %v5891_v35  ;;  %2952 = vmatpush1.bf16.msra.mxu1 %v5893_v36  ;;  %v5958_v35 = vcombine.high %v727_v29, %v731_v30  ;;  %v734_v36 = vld [vmem:[%s6905_s29 + $0xa80] sm:$0xff] }
  0x9b   : > { %2830 = vmatprep.subr.bf16.mxu0 %v5900_v37  ;;  %2953 = vmatprep.subr.bf16.mxu1 %v5902_v38  ;;  %v738_v37 = vld [vmem:[%s6905_s29 + $0xaa0] sm:$0xff]  ;;  %v735_v38 = vld [vmem:[%s6905_s29 + $0xa88] sm:$0xff] }
  0x9c   : > { %v5964_v42 = vcombine.high %v734_v36, %v738_v37  ;;  %v5963_v48 = vcombine.low %v734_v36, %v738_v37  ;;  %v5965_v49 = vcombine.low %v735_v38, %v739_v39  ;;  %v390_v29 = vld [vmem:[%s6937_s10 + $0x20] sm:$0xff]  ;;  %v409_v37 = vld [vmem:[%s6905_s29 + $0x58] sm:$0xff] }
  0x9d   : > { %v7137_v36 = vpack.c.bf16 %v390_v29, %v390_v29 }
  0x9e   : > { %2831 = vmatpush1.bf16.msra.mxu0 %v5899_v43  ;;  %2954 = vmatpush1.bf16.msra.mxu1 %v5901_v44  ;;  %v5966_v43 = vcombine.high %v735_v38, %v739_v39  ;;  %v742_v44 = vld [vmem:[%s6905_s29 + $0xac0] sm:$0xff]  ;;  %v413_v38 = vld [vmem:[%s6905_s29 + $0x78] sm:$0xff] }
  0x9f   : > { %2832 = vmatprep.subr.bf16.mxu0 %v5908_v45  ;;  %2955 = vmatprep.subr.bf16.mxu1 %v5910_v46  ;;  %v746_v45 = vld [vmem:[%s6905_s29 + $0xae0] sm:$0xff]  ;;  %v743_v46 = vld [vmem:[%s6905_s29 + $0xac8] sm:$0xff] }
  0xa0   : > { %v5972_v50 = vcombine.high %v742_v44, %v746_v45  ;;  %v5971_v56 = vcombine.low %v742_v44, %v746_v45  ;;  %v5973_v58 = vcombine.low %v743_v46, %v747_v47  ;;  %v420_v44 = vld [vmem:[%s6905_s29 + $0xb0] sm:$0xff]  ;;  %v417_v45 = vld [vmem:[%s6905_s29 + $0x98] sm:$0xff] }
  0xa2   : > { %2833 = vmatpush1.bf16.msra.mxu0 %v5907_v51  ;;  %2956 = vmatpush1.bf16.msra.mxu1 %v5909_v52  ;;  %v5974_v51 = vcombine.high %v743_v46, %v747_v47  ;;  %v750_v52 = vld [vmem:[%s6905_s29 + $0xb00] sm:$0xff]  ;;  %v421_v46 = vld [vmem:[%s6905_s29 + $0xb8] sm:$0xff] }
  0xa3   : > { %2834 = vmatprep.subr.bf16.mxu0 %v5916_v53  ;;  %2957 = vmatprep.subr.bf16.mxu1 %v5918_v54  ;;  %v754_v53 = vld [vmem:[%s6905_s29 + $0xb20] sm:$0xff]  ;;  %v751_v54 = vld [vmem:[%s6905_s29 + $0xb08] sm:$0xff] }
  0xa4   : > { %v5980_v59 = vcombine.high %v750_v52, %v754_v53  ;;  %v5979_v1 = vcombine.low %v750_v52, %v754_v53  ;;  %v5981_v2 = vcombine.low %v751_v54, %v755_v55  ;;  %v428_v52 = vld [vmem:[%s6905_s29 + $0xf0] sm:$0xff]  ;;  %v425_v53 = vld [vmem:[%s6905_s29 + $0xd8] sm:$0xff] }
  0xa6   : > { %2835 = vmatpush1.bf16.msra.mxu0 %v5915_v60  ;;  %2958 = vmatpush1.bf16.msra.mxu1 %v5917_v61  ;;  %v5982_v60 = vcombine.high %v751_v54, %v755_v55  ;;  %v758_v61 = vld [vmem:[%s6905_s29 + $0xb40] sm:$0xff]  ;;  %v429_v54 = vld [vmem:[%s6905_s29 + $0xf8] sm:$0xff] }
  0xa7   : > { %2836 = vmatprep.subr.bf16.mxu0 %v5924_v62  ;;  %2959 = vmatprep.subr.bf16.mxu1 %v5926_v63  ;;  %v762_v62 = vld [vmem:[%s6905_s29 + $0xb60] sm:$0xff]  ;;  %v759_v63 = vld [vmem:[%s6905_s29 + $0xb48] sm:$0xff] }
  0xa8   : > { %v5988_v3 = vcombine.high %v758_v61, %v762_v62  ;;  %v5987_v9 = vcombine.low %v758_v61, %v762_v62  ;;  %v5989_v10 = vcombine.low %v759_v63, %v763_v0  ;;  %v436_v61 = vld [vmem:[%s6905_s29 + $0x130] sm:$0xff]  ;;  %v433_v62 = vld [vmem:[%s6905_s29 + $0x118] sm:$0xff] }
  0xaa   : > { %2837 = vmatpush1.bf16.msra.mxu0 %v5923_v4  ;;  %2960 = vmatpush1.bf16.msra.mxu1 %v5925_v5  ;;  %v5990_v4 = vcombine.high %v759_v63, %v763_v0  ;;  %v766_v5 = vld [vmem:[%s6905_s29 + $0xb80] sm:$0xff]  ;;  %v437_v63 = vld [vmem:[%s6905_s29 + $0x138] sm:$0xff] }
  0xab   : > { %2838 = vmatprep.subr.bf16.mxu0 %v5932_v6  ;;  %2961 = vmatprep.subr.bf16.mxu1 %v5934_v7  ;;  %v770_v6 = vld [vmem:[%s6905_s29 + $0xba0] sm:$0xff]  ;;  %v767_v7 = vld [vmem:[%s6905_s29 + $0xb88] sm:$0xff] }
  0xac   : > { %v5996_v11 = vcombine.high %v766_v5, %v770_v6  ;;  %v5995_v18 = vcombine.low %v766_v5, %v770_v6  ;;  %v5997_v19 = vcombine.low %v767_v7, %v771_v8  ;;  %v441_v5 = vld [vmem:[%s6905_s29 + $0x158] sm:$0xff] }
  0xad   : > { %v445_v6 = vld [vmem:[%s6905_s29 + $0x178] sm:$0xff] }
  0xae   : > { %2839 = vmatpush1.bf16.msra.mxu0 %v5931_v13  ;;  %2962 = vmatpush1.bf16.msra.mxu1 %v5933_v14  ;;  %v5998_v13 = vcombine.high %v767_v7, %v771_v8  ;;  %v774_v14 = vld [vmem:[%s6905_s29 + $0xbc0] sm:$0xff]  ;;  %v5665_v8 = vcombine.low %v433_v62, %v437_v63 }
  0xaf   : > { %2840 = vmatprep.subr.bf16.mxu0 %v5940_v15  ;;  %2963 = vmatprep.subr.bf16.mxu1 %v5942_v16  ;;  %v778_v15 = vld [vmem:[%s6905_s29 + $0xbe0] sm:$0xff]  ;;  %v775_v16 = vld [vmem:[%s6905_s29 + $0xbc8] sm:$0xff] }
  0xb0   : > { %v6004_v20 = vcombine.high %v774_v14, %v778_v15  ;;  %v6003_v28 = vcombine.low %v774_v14, %v778_v15  ;;  %v6005_v30 = vcombine.low %v775_v16, %v779_v17  ;;  %v449_v14 = vld [vmem:[%s6905_s29 + $0x198] sm:$0xff] }
  0xb1   : > { %v453_v15 = vld [vmem:[%s6905_s29 + $0x1b8] sm:$0xff] }
  0xb2   : > { %2841 = vmatpush1.bf16.msra.mxu0 %v5939_v23  ;;  %2964 = vmatpush1.bf16.msra.mxu1 %v5941_v24  ;;  %v6006_v23 = vcombine.high %v775_v16, %v779_v17  ;;  %v400_v24 = vld [vmem:[%s6905_s29 + $0x10] sm:$0xff]  ;;  %v5673_v17 = vcombine.low %v441_v5, %v445_v6 }
  0xb3   : > { %2842 = vmatprep.subr.bf16.mxu0 %v5948_v25  ;;  %2965 = vmatprep.subr.bf16.mxu1 %v5950_v26  ;;  %v404_v25 = vld [vmem:[%s6905_s29 + $0x30] sm:$0xff]  ;;  %v401_v26 = vld [vmem:[%s6905_s29 + $0x18] sm:$0xff] }
  0xb4   : > { %v5631_v39 = vcombine.low %v400_v24, %v404_v25 }
  0xb6   : > { %2843 = vmatpush1.bf16.msra.mxu0 %v5947_v31  ;;  %2966 = vmatpush1.bf16.msra.mxu1 %v5949_v33  ;;  %v5632_v31 = vcombine.high %v400_v24, %v404_v25  ;;  %v5634_v33 = vcombine.high %v401_v26, %v405_v27  ;;  %v457_v24 = vld [vmem:[%s6905_s29 + $0x1d8] sm:$0xff] }
  0xb7   : > { %2844 = vmatprep.subr.bf16.mxu0 %v5956_v34  ;;  %2967 = vmatprep.subr.bf16.mxu1 %v5958_v35  ;;  %v408_v34 = vld [vmem:[%s6905_s29 + $0x50] sm:$0xff]  ;;  %v461_v25 = vld [vmem:[%s6905_s29 + $0x1f8] sm:$0xff] }
  0xb8   : > { %v412_v35 = vld [vmem:[%s6905_s29 + $0x70] sm:$0xff]  ;;  %v5690_v29 = vcombine.high %v457_v24, %v461_v25 }
  0xb9   : > { %v5639_v47 = vcombine.low %v408_v34, %v412_v35 }
  0xba   : > { %2845 = vmatpush1.bf16.msra.mxu0 %v5955_v40  ;;  %2968 = vmatpush1.bf16.msra.mxu1 %v5957_v41  ;;  %v5633_v40 = vcombine.low %v401_v26, %v405_v27  ;;  %v5640_v41 = vcombine.high %v408_v34, %v412_v35  ;;  %v5681_v27 = vcombine.low %v449_v14, %v453_v15  ;;  %v469_v34 = vld [vmem:[%s6905_s29 + $0x238] sm:$0xff] }
  0xbb   : > { %2846 = vmatprep.subr.bf16.mxu0 %v5964_v42  ;;  %2969 = vmatprep.subr.bf16.mxu1 %v5966_v43  ;;  %v5642_v42 = vcombine.high %v409_v37, %v413_v38  ;;  %v416_v43 = vld [vmem:[%s6905_s29 + $0x90] sm:$0xff] }
  0xbc   : > { %v5647_v55 = vcombine.low %v416_v43, %v420_v44 }
  0xbe   : > { %2847 = vmatpush1.bf16.msra.mxu0 %v5963_v48  ;;  %2970 = vmatpush1.bf16.msra.mxu1 %v5965_v49  ;;  %v5641_v48 = vcombine.low %v409_v37, %v413_v38  ;;  %v5648_v49 = vcombine.high %v416_v43, %v420_v44  ;;  %v5689_v37 = vcombine.low %v457_v24, %v461_v25  ;;  %v477_v43 = vld [vmem:[%s6905_s29 + $0x278] sm:$0xff] }
  0xbf   : > { %2848 = vmatprep.subr.bf16.mxu0 %v5972_v50  ;;  %2971 = vmatprep.subr.bf16.mxu1 %v5974_v51  ;;  %v5650_v50 = vcombine.high %v417_v45, %v421_v46  ;;  %v424_v51 = vld [vmem:[%s6905_s29 + $0xd0] sm:$0xff] }
  0xc0   : > { %v5655_v0 = vcombine.low %v424_v51, %v428_v52 }
  0xc2   : > { %2849 = vmatpush1.bf16.msra.mxu0 %v5971_v56  ;;  %2972 = vmatpush1.bf16.msra.mxu1 %v5973_v58  ;;  %v5649_v56 = vcombine.low %v417_v45, %v421_v46  ;;  %v5656_v58 = vcombine.high %v424_v51, %v428_v52  ;;  %v485_v51 = vld [vmem:[%s6905_s29 + $0x2b8] sm:$0xff] }
  0xc3   : > { %2850 = vmatprep.subr.bf16.mxu0 %v5980_v59  ;;  %2973 = vmatprep.subr.bf16.mxu1 %v5982_v60  ;;  %v5658_v59 = vcombine.high %v425_v53, %v429_v54  ;;  %v432_v60 = vld [vmem:[%s6905_s29 + $0x110] sm:$0xff] }
  0xc4   : > { %v5663_v7 = vcombine.low %v432_v60, %v436_v61 }
  0xc6   : > { %2851 = vmatpush1.bf16.msra.mxu0 %v5979_v1  ;;  %2974 = vmatpush1.bf16.msra.mxu1 %v5981_v2  ;;  %v5664_v1 = vcombine.high %v432_v60, %v436_v61  ;;  %v5666_v2 = vcombine.high %v433_v62, %v437_v63  ;;  %v493_v60 = vld [vmem:[%s6905_s29 + $0x2f8] sm:$0xff] }
  0xc7   : > { %2852 = vmatprep.subr.bf16.mxu0 %v5988_v3  ;;  %2975 = vmatprep.subr.bf16.mxu1 %v5990_v4  ;;  %v440_v3 = vld [vmem:[%s6905_s29 + $0x150] sm:$0xff] }
  0xc8   : > { %v444_v4 = vld [vmem:[%s6905_s29 + $0x170] sm:$0xff] }
  0xc9   : > { %v5671_v16 = vcombine.low %v440_v3, %v444_v4 }
  0xca   : > { %2853 = vmatpush1.bf16.msra.mxu0 %v5987_v9  ;;  %2976 = vmatpush1.bf16.msra.mxu1 %v5989_v10  ;;  %v5672_v9 = vcombine.high %v440_v3, %v444_v4  ;;  %v5674_v10 = vcombine.high %v441_v5, %v445_v6  ;;  %v501_v3 = vld [vmem:[%s6905_s29 + $0x338] sm:$0xff] }
  0xcb   : > { %2854 = vmatprep.subr.bf16.mxu0 %v5996_v11  ;;  %2977 = vmatprep.subr.bf16.mxu1 %v5998_v13  ;;  %v448_v11 = vld [vmem:[%s6905_s29 + $0x190] sm:$0xff] }
  0xcc   : > { %v452_v13 = vld [vmem:[%s6905_s29 + $0x1b0] sm:$0xff] }
  0xcd   : > { %v5679_v26 = vcombine.low %v448_v11, %v452_v13 }
  0xce   : > { %2855 = vmatpush1.bf16.msra.mxu0 %v5995_v18  ;;  %2978 = vmatpush1.bf16.msra.mxu1 %v5997_v19  ;;  %v5680_v18 = vcombine.high %v448_v11, %v452_v13  ;;  %v5682_v19 = vcombine.high %v449_v14, %v453_v15  ;;  %v509_v11 = vld [vmem:[%s6905_s29 + $0x378] sm:$0xff] }
  0xcf   : > { %2856 = vmatprep.subr.bf16.mxu0 %v6004_v20  ;;  %2979 = vmatprep.subr.bf16.mxu1 %v6006_v23  ;;  %v456_v20 = vld [vmem:[%s6905_s29 + $0x1d0] sm:$0xff] }
  0xd0   : > { %v460_v23 = vld [vmem:[%s6905_s29 + $0x1f0] sm:$0xff] }
  0xd1   : > { %v5687_v35 = vcombine.low %v456_v20, %v460_v23 }
  0xd2   : > { %2857 = vmatpush1.bf16.msra.mxu0 %v6003_v28  ;;  %2980 = vmatpush1.bf16.msra.mxu1 %v6005_v30  ;;  %v5688_v28 = vcombine.high %v456_v20, %v460_v23  ;;  %v464_v30 = vld [vmem:[%s6905_s29 + $0x210] sm:$0xff]  ;;  %v517_v20 = vld [vmem:[%s6905_s29 + $0x3b8] sm:$0xff] }
  0xd3   : > { %2990 = vmatprep.subr.bf16.mxu0 %v5632_v31  ;;  %3113 = vmatprep.subr.bf16.mxu1 %v5634_v33  ;;  %v468_v31 = vld [vmem:[%s6905_s29 + $0x230] sm:$0xff]  ;;  %v465_v33 = vld [vmem:[%s6905_s29 + $0x218] sm:$0xff] }
  0xd4   : > { %v5696_v38 = vcombine.high %v464_v30, %v468_v31  ;;  %v5695_v44 = vcombine.low %v464_v30, %v468_v31  ;;  %v5697_v45 = vcombine.low %v465_v33, %v469_v34  ;;  %v525_v30 = vld [vmem:[%s6905_s29 + $0x3f8] sm:$0xff] }
  0xd5   : > { %2859 = vmatmul.mubr.bf16.vlgmr.msra.gmra.mrb[0].mxu0 %v7137_v36  ;;  %2982 = vmatmul.mubr.bf16.vlgmr.msra.gmra.mrb[0].mxu1 %v7137_v36 }
  0xd6   : > { %2991 = vmatpush1.bf16.msra.mxu0 %v5631_v39  ;;  %3114 = vmatpush1.bf16.msra.mxu1 %v5633_v40  ;;  %v5698_v39 = vcombine.high %v465_v33, %v469_v34  ;;  %v472_v40 = vld [vmem:[%s6905_s29 + $0x250] sm:$0xff] }
  0xd7   : > { %2992 = vmatprep.subr.bf16.mxu0 %v5640_v41  ;;  %3115 = vmatprep.subr.bf16.mxu1 %v5642_v42  ;;  %v476_v41 = vld [vmem:[%s6905_s29 + $0x270] sm:$0xff]  ;;  %v473_v42 = vld [vmem:[%s6905_s29 + $0x258] sm:$0xff] }
  0xd8   : > { %3022 = vmatprep.mubr.bf16.mxu0 %v6944_v57  ;;  %3145 = vmatprep.mubr.bf16.mxu1 %v6944_v57  ;;  %v5657_v57 = vcombine.low %v425_v53, %v429_v54  ;;  %v5704_v46 = vcombine.high %v472_v40, %v476_v41  ;;  %v5703_v52 = vcombine.low %v472_v40, %v476_v41  ;;  %v533_v40 = vld [vmem:[%s6905_s29 + $0x438] sm:$0xff] }
  0xd9   : > { %v5705_v53 = vcombine.low %v473_v42, %v477_v43 }
  0xda   : > { %2993 = vmatpush1.bf16.msra.mxu0 %v5639_v47  ;;  %3116 = vmatpush1.bf16.msra.mxu1 %v5641_v48  ;;  %v5706_v47 = vcombine.high %v473_v42, %v477_v43  ;;  %v480_v48 = vld [vmem:[%s6905_s29 + $0x290] sm:$0xff] }
  0xdb   : > { %2994 = vmatprep.subr.bf16.mxu0 %v5648_v49  ;;  %3117 = vmatprep.subr.bf16.mxu1 %v5650_v50  ;;  %v484_v49 = vld [vmem:[%s6905_s29 + $0x2b0] sm:$0xff]  ;;  %v481_v50 = vld [vmem:[%s6905_s29 + $0x298] sm:$0xff] }
  0xdc   : > { %v5712_v54 = vcombine.high %v480_v48, %v484_v49  ;;  %v5711_v61 = vcombine.low %v480_v48, %v484_v49  ;;  %v5713_v62 = vcombine.low %v481_v50, %v485_v51  ;;  %v541_v48 = vld [vmem:[%s6905_s29 + $0x478] sm:$0xff] }
  0xde   : > { %2995 = vmatpush1.bf16.msra.mxu0 %v5647_v55  ;;  %3118 = vmatpush1.bf16.msra.mxu1 %v5649_v56  ;;  %v5714_v55 = vcombine.high %v481_v50, %v485_v51  ;;  %v488_v56 = vld [vmem:[%s6905_s29 + $0x2d0] sm:$0xff] }
  0xdf   : > { %2996 = vmatprep.subr.bf16.mxu0 %v5656_v58  ;;  %3119 = vmatprep.subr.bf16.mxu1 %v5658_v59  ;;  %v492_v58 = vld [vmem:[%s6905_s29 + $0x2f0] sm:$0xff]  ;;  %v489_v59 = vld [vmem:[%s6905_s29 + $0x2d8] sm:$0xff] }
  0xe0   : > { %v5720_v63 = vcombine.high %v488_v56, %v492_v58  ;;  %v5719_v4 = vcombine.low %v488_v56, %v492_v58  ;;  %v5721_v5 = vcombine.low %v489_v59, %v493_v60  ;;  %v549_v56 = vld [vmem:[%s6905_s29 + $0x4b8] sm:$0xff] }
  0xe2   : > { %2997 = vmatpush1.bf16.msra.mxu0 %v5655_v0  ;;  %3120 = vmatpush1.bf16.msra.mxu1 %v5657_v57  ;;  %v5722_v0 = vcombine.high %v489_v59, %v493_v60  ;;  %v496_v57 = vld [vmem:[%s6905_s29 + $0x310] sm:$0xff] }
  0xe3   : > { %2998 = vmatprep.subr.bf16.mxu0 %v5664_v1  ;;  %3121 = vmatprep.subr.bf16.mxu1 %v5666_v2  ;;  %v500_v1 = vld [vmem:[%s6905_s29 + $0x330] sm:$0xff]  ;;  %v497_v2 = vld [vmem:[%s6905_s29 + $0x318] sm:$0xff] }
  0xe4   : > { %v5728_v6 = vcombine.high %v496_v57, %v500_v1  ;;  %v5727_v13 = vcombine.low %v496_v57, %v500_v1  ;;  %v5729_v14 = vcombine.low %v497_v2, %v501_v3  ;;  %v557_v57 = vld [vmem:[%s6905_s29 + $0x4f8] sm:$0xff] }
  0xe6   : > { %2999 = vmatpush1.bf16.msra.mxu0 %v5663_v7  ;;  %3122 = vmatpush1.bf16.msra.mxu1 %v5665_v8  ;;  %v5730_v7 = vcombine.high %v497_v2, %v501_v3  ;;  %v504_v8 = vld [vmem:[%s6905_s29 + $0x350] sm:$0xff] }
  0xe7   : > { %3000 = vmatprep.subr.bf16.mxu0 %v5672_v9  ;;  %3123 = vmatprep.subr.bf16.mxu1 %v5674_v10  ;;  %v508_v9 = vld [vmem:[%s6905_s29 + $0x370] sm:$0xff]  ;;  %v505_v10 = vld [vmem:[%s6905_s29 + $0x358] sm:$0xff] }
  0xe8   : > { %v5736_v15 = vcombine.high %v504_v8, %v508_v9  ;;  %v5735_v23 = vcombine.low %v504_v8, %v508_v9  ;;  %v5737_v24 = vcombine.low %v505_v10, %v509_v11  ;;  %v560_v3 = vld [vmem:[%s6905_s29 + $0x510] sm:$0xff] }
  0xea   : > { %3001 = vmatpush1.bf16.msra.mxu0 %v5671_v16  ;;  %3124 = vmatpush1.bf16.msra.mxu1 %v5673_v17  ;;  %v5738_v16 = vcombine.high %v505_v10, %v509_v11  ;;  %v512_v17 = vld [vmem:[%s6905_s29 + $0x390] sm:$0xff] }
  0xeb   : > { %3002 = vmatprep.subr.bf16.mxu0 %v5680_v18  ;;  %3125 = vmatprep.subr.bf16.mxu1 %v5682_v19  ;;  %v516_v18 = vld [vmem:[%s6905_s29 + $0x3b0] sm:$0xff]  ;;  %v513_v19 = vld [vmem:[%s6905_s29 + $0x398] sm:$0xff] }
  0xec   : > { %v5744_v25 = vcombine.high %v512_v17, %v516_v18  ;;  %v5743_v31 = vcombine.low %v512_v17, %v516_v18  ;;  %v5745_v33 = vcombine.low %v513_v19, %v517_v20  ;;  %v568_v10 = vld [vmem:[%s6905_s29 + $0x550] sm:$0xff] }
  0xed   : > { %v572_v11 = vld [vmem:[%s6905_s29 + $0x570] sm:$0xff] }
  0xee   : > { %3003 = vmatpush1.bf16.msra.mxu0 %v5679_v26  ;;  %3126 = vmatpush1.bf16.msra.mxu1 %v5681_v27  ;;  %v5746_v26 = vcombine.high %v513_v19, %v517_v20  ;;  %v520_v27 = vld [vmem:[%s6905_s29 + $0x3d0] sm:$0xff]  ;;  %v5800_v18 = vcombine.high %v568_v10, %v572_v11 }
  0xef   : > { %3004 = vmatprep.subr.bf16.mxu0 %v5688_v28  ;;  %3127 = vmatprep.subr.bf16.mxu1 %v5690_v29  ;;  %v524_v28 = vld [vmem:[%s6905_s29 + $0x3f0] sm:$0xff]  ;;  %v521_v29 = vld [vmem:[%s6905_s29 + $0x3d8] sm:$0xff] }
  0xf0   : > { %v5752_v34 = vcombine.high %v520_v27, %v524_v28  ;;  %v5751_v41 = vcombine.low %v520_v27, %v524_v28  ;;  %v5753_v42 = vcombine.low %v521_v29, %v525_v30  ;;  %v576_v19 = vld [vmem:[%s6905_s29 + $0x590] sm:$0xff] }
  0xf1   : > { %v580_v20 = vld [vmem:[%s6905_s29 + $0x5b0] sm:$0xff] }
  0xf2   : > { %3005 = vmatpush1.bf16.msra.mxu0 %v5687_v35  ;;  %3128 = vmatpush1.bf16.msra.mxu1 %v5689_v37  ;;  %v5754_v35 = vcombine.high %v521_v29, %v525_v30  ;;  %v528_v37 = vld [vmem:[%s6905_s29 + $0x410] sm:$0xff]  ;;  %v5808_v28 = vcombine.high %v576_v19, %v580_v20 }
  0xf3   : > { %3006 = vmatprep.subr.bf16.mxu0 %v5696_v38  ;;  %3129 = vmatprep.subr.bf16.mxu1 %v5698_v39  ;;  %v532_v38 = vld [vmem:[%s6905_s29 + $0x430] sm:$0xff]  ;;  %v529_v39 = vld [vmem:[%s6905_s29 + $0x418] sm:$0xff] }
  0xf4   : > { %v5760_v43 = vcombine.high %v528_v37, %v532_v38  ;;  %v5759_v49 = vcombine.low %v528_v37, %v532_v38  ;;  %v5761_v50 = vcombine.low %v529_v39, %v533_v40  ;;  %v584_v30 = vld [vmem:[%s6905_s29 + $0x5d0] sm:$0xff] }
  0xf6   : > { %3007 = vmatpush1.bf16.msra.mxu0 %v5695_v44  ;;  %3130 = vmatpush1.bf16.msra.mxu1 %v5697_v45  ;;  %v5762_v44 = vcombine.high %v529_v39, %v533_v40  ;;  %v536_v45 = vld [vmem:[%s6905_s29 + $0x450] sm:$0xff] }
  0xf7   : > { %3008 = vmatprep.subr.bf16.mxu0 %v5704_v46  ;;  %3131 = vmatprep.subr.bf16.mxu1 %v5706_v47  ;;  %v540_v46 = vld [vmem:[%s6905_s29 + $0x470] sm:$0xff]  ;;  %v537_v47 = vld [vmem:[%s6905_s29 + $0x458] sm:$0xff] }
  0xf8   : > { %v5768_v51 = vcombine.high %v536_v45, %v540_v46  ;;  %v5767_v58 = vcombine.low %v536_v45, %v540_v46  ;;  %v5769_v59 = vcombine.low %v537_v47, %v541_v48  ;;  %v592_v40 = vld [vmem:[%s6905_s29 + $0x610] sm:$0xff] }
  0xfa   : > { %3009 = vmatpush1.bf16.msra.mxu0 %v5703_v52  ;;  %3132 = vmatpush1.bf16.msra.mxu1 %v5705_v53  ;;  %v544_v52 = vld [vmem:[%s6905_s29 + $0x490] sm:$0xff] }
  0xfb   : > { %3010 = vmatprep.subr.bf16.mxu0 %v5712_v54  ;;  %3133 = vmatprep.subr.bf16.mxu1 %v5714_v55  ;;  %v548_v53 = vld [vmem:[%s6905_s29 + $0x4b0] sm:$0xff]  ;;  %v5770_v54 = vcombine.high %v537_v47, %v541_v48  ;;  %v545_v55 = vld [vmem:[%s6905_s29 + $0x498] sm:$0xff] }
  0xfc   : > { %v5776_v60 = vcombine.high %v544_v52, %v548_v53  ;;  %v5777_v1 = vcombine.low %v545_v55, %v549_v56  ;;  %v600_v48 = vld [vmem:[%s6905_s29 + $0x650] sm:$0xff] }
  0xfe   : > { %3011 = vmatpush1.bf16.msra.mxu0 %v5711_v61  ;;  %3134 = vmatpush1.bf16.msra.mxu1 %v5713_v62  ;;  %v552_v61 = vld [vmem:[%s6905_s29 + $0x4d0] sm:$0xff] }
  0xff   : > { %3012 = vmatprep.subr.bf16.mxu0 %v5720_v63  ;;  %3135 = vmatprep.subr.bf16.mxu1 %v5722_v0  ;;  %v556_v62 = vld [vmem:[%s6905_s29 + $0x4f0] sm:$0xff]  ;;  %v5778_v63 = vcombine.high %v545_v55, %v549_v56  ;;  %v553_v0 = vld [vmem:[%s6905_s29 + $0x4d8] sm:$0xff] }
 0x100   : > { %v5784_v2 = vcombine.high %v552_v61, %v556_v62  ;;  %v5783_v8 = vcombine.low %v552_v61, %v556_v62  ;;  %v608_v55 = vld [vmem:[%s6905_s29 + $0x690] sm:$0xff] }
 0x101   : > { %v612_v56 = vld [vmem:[%s6905_s29 + $0x6b0] sm:$0xff] }
 0x102   : > { %3013 = vmatpush1.bf16.msra.mxu0 %v5719_v4  ;;  %3136 = vmatpush1.bf16.msra.mxu1 %v5721_v5  ;;  %v564_v4 = vld [vmem:[%s6905_s29 + $0x530] sm:$0xff]  ;;  %v561_v5 = vld [vmem:[%s6905_s29 + $0x518] sm:$0xff] }
 0x103   : > { %3014 = vmatprep.subr.bf16.mxu0 %v5728_v6  ;;  %3137 = vmatprep.subr.bf16.mxu1 %v5730_v7  ;;  %v5786_v6 = vcombine.high %v553_v0, %v557_v57  ;;  %v565_v7 = vld [vmem:[%s6905_s29 + $0x538] sm:$0xff]  ;;  %v5792_v9 = vcombine.high %v560_v3, %v564_v4 }
 0x104   : > { %v5793_v17 = vcombine.low %v561_v5, %v565_v7 }
 0x106   : > { %3015 = vmatpush1.bf16.msra.mxu0 %v5727_v13  ;;  %3138 = vmatpush1.bf16.msra.mxu1 %v5729_v14  ;;  %v569_v13 = vld [vmem:[%s6905_s29 + $0x558] sm:$0xff]  ;;  %v5794_v14 = vcombine.high %v561_v5, %v565_v7  ;;  %v628_v7 = vld [vmem:[%s6905_s29 + $0x730] sm:$0xff] }
 0x107   : > { %3016 = vmatprep.subr.bf16.mxu0 %v5736_v15  ;;  %3139 = vmatprep.subr.bf16.mxu1 %v5738_v16  ;;  %v573_v15 = vld [vmem:[%s6905_s29 + $0x578] sm:$0xff]  ;;  %v5791_v16 = vcombine.low %v560_v3, %v564_v4  ;;  %v5839_v3 = vcombine.low %v608_v55, %v612_v56 }
 0x108   : > { %v5801_v27 = vcombine.low %v569_v13, %v573_v15 }
 0x10a   : > { %3017 = vmatpush1.bf16.msra.mxu0 %v5735_v23  ;;  %3140 = vmatpush1.bf16.msra.mxu1 %v5737_v24  ;;  %v577_v23 = vld [vmem:[%s6905_s29 + $0x598] sm:$0xff]  ;;  %v5802_v24 = vcombine.high %v569_v13, %v573_v15  ;;  %v636_v15 = vld [vmem:[%s6905_s29 + $0x770] sm:$0xff] }
 0x10b   : > { %3018 = vmatprep.subr.bf16.mxu0 %v5744_v25  ;;  %3141 = vmatprep.subr.bf16.mxu1 %v5746_v26  ;;  %v581_v25 = vld [vmem:[%s6905_s29 + $0x5b8] sm:$0xff]  ;;  %v5799_v26 = vcombine.low %v568_v10, %v572_v11 }
 0x10c   : > { %v5810_v29 = vcombine.high %v577_v23, %v581_v25  ;;  %v5809_v37 = vcombine.low %v577_v23, %v581_v25  ;;  %v644_v25 = vld [vmem:[%s6905_s29 + $0x7b0] sm:$0xff] }
 0x10e   : > { %3019 = vmatpush1.bf16.msra.mxu0 %v5743_v31  ;;  %3142 = vmatpush1.bf16.msra.mxu1 %v5745_v33  ;;  %v588_v31 = vld [vmem:[%s6905_s29 + $0x5f0] sm:$0xff]  ;;  %v585_v33 = vld [vmem:[%s6905_s29 + $0x5d8] sm:$0xff] }
 0x10f   : > { %3020 = vmatprep.subr.bf16.mxu0 %v5752_v34  ;;  %3143 = vmatprep.subr.bf16.mxu1 %v5754_v35  ;;  %v589_v34 = vld [vmem:[%s6905_s29 + $0x5f8] sm:$0xff]  ;;  %v5807_v35 = vcombine.low %v576_v19, %v580_v20  ;;  %v5816_v38 = vcombine.high %v584_v30, %v588_v31 }
 0x110   : > { %v5818_v39 = vcombine.high %v585_v33, %v589_v34  ;;  %v5817_v45 = vcombine.low %v585_v33, %v589_v34  ;;  %v648_v33 = vld [vmem:[%s6905_s29 + $0x7d0] sm:$0xff] }
 0x111   : > { %v652_v34 = vld [vmem:[%s6905_s29 + $0x7f0] sm:$0xff] }
 0x112   : > { %3021 = vmatpush1.bf16.msra.mxu0 %v5751_v41  ;;  %3144 = vmatpush1.bf16.msra.mxu1 %v5753_v42  ;;  %v596_v41 = vld [vmem:[%s6905_s29 + $0x630] sm:$0xff]  ;;  %v593_v42 = vld [vmem:[%s6905_s29 + $0x618] sm:$0xff] }
 0x113   : > { %3031 = vmatprep.subr.bf16.mxu0 %v5760_v43  ;;  %3154 = vmatprep.subr.bf16.mxu1 %v5762_v44  ;;  %v597_v43 = vld [vmem:[%s6905_s29 + $0x638] sm:$0xff]  ;;  %v5815_v44 = vcombine.low %v584_v30, %v588_v31  ;;  %v5824_v46 = vcombine.high %v592_v40, %v596_v41 }
 0x114   : > { %v5826_v47 = vcombine.high %v593_v42, %v597_v43 }
 0x115   : > { %3023 = vmatmul.mubr.bf16.vlgmr.msra.gmra.mrb[4].mxu0 %v6989_v12  ;;  %3146 = vmatmul.mubr.bf16.vlgmr.msra.gmra.mrb[4].mxu1 %v6989_v12  ;;  %v5775_v12 = vcombine.low %v544_v52, %v548_v53  ;;  %v5823_v52 = vcombine.low %v592_v40, %v596_v41  ;;  %v5825_v53 = vcombine.low %v593_v42, %v597_v43  ;;  %v656_v42 = vld [vmem:[%s6905_s29 + $0x810] sm:$0xff] }
 0x116   : > { %3032 = vmatpush1.bf16.msra.mxu0 %v5759_v49  ;;  %3155 = vmatpush1.bf16.msra.mxu1 %v5761_v50  ;;  %v604_v49 = vld [vmem:[%s6905_s29 + $0x670] sm:$0xff]  ;;  %v601_v50 = vld [vmem:[%s6905_s29 + $0x658] sm:$0xff]  ;;  %v5880_v41 = vcombine.high %v648_v33, %v652_v34 }
 0x117   : > { %3033 = vmatprep.subr.bf16.mxu0 %v5768_v51  ;;  %3156 = vmatprep.subr.bf16.mxu1 %v5770_v54  ;;  %v605_v51 = vld [vmem:[%s6905_s29 + $0x678] sm:$0xff]  ;;  %v5832_v54 = vcombine.high %v600_v48, %v604_v49  ;;  %v5831_v61 = vcombine.low %v600_v48, %v604_v49  ;;  %v660_v43 = vld [vmem:[%s6905_s29 + $0x830] sm:$0xff] }
 0x118   : > { %3063 = vmatprep.mubr.bf16.mxu0 %v6996_v22  ;;  %3186 = vmatprep.mubr.bf16.mxu1 %v6996_v22  ;;  %v5785_v22 = vcombine.low %v553_v0, %v557_v57  ;;  %v5833_v62 = vcombine.low %v601_v50, %v605_v51  ;;  %v616_v0 = vld [vmem:[%s6905_s29 + $0x6d0] sm:$0xff]  ;;  %v5888_v49 = vcombine.high %v656_v42, %v660_v43 }
 0x119   : > { %v620_v57 = vld [vmem:[%s6905_s29 + $0x6f0] sm:$0xff] }
 0x11a   : > { %3034 = vmatpush1.bf16.msra.mxu0 %v5767_v58  ;;  %3157 = vmatpush1.bf16.msra.mxu1 %v5769_v59  ;;  %v609_v58 = vld [vmem:[%s6905_s29 + $0x698] sm:$0xff]  ;;  %v5834_v59 = vcombine.high %v601_v50, %v605_v51  ;;  %v5848_v5 = vcombine.high %v616_v0, %v620_v57  ;;  %v5847_v10 = vcombine.low %v616_v0, %v620_v57  ;;  %v664_v50 = vld [vmem:[%s6905_s29 + $0x850] sm:$0xff] }
 0x11b   : > { %3035 = vmatprep.subr.bf16.mxu0 %v5776_v60  ;;  %3158 = vmatprep.subr.bf16.mxu1 %v5778_v63  ;;  %v613_v60 = vld [vmem:[%s6905_s29 + $0x6b8] sm:$0xff]  ;;  %v5840_v63 = vcombine.high %v608_v55, %v612_v56  ;;  %v668_v51 = vld [vmem:[%s6905_s29 + $0x870] sm:$0xff]  ;;  %v5887_v55 = vcombine.low %v656_v42, %v660_v43 }
 0x11c   : > { %v5841_v4 = vcombine.low %v609_v58, %v613_v60  ;;  %v5895_v0 = vcombine.low %v664_v50, %v668_v51  ;;  %v720_v43 = vld [vmem:[%s6905_s29 + $0xa10] sm:$0xff] }
 0x11e   : > { %3036 = vmatpush1.bf16.msra.mxu0 %v5775_v12  ;;  %3159 = vmatpush1.bf16.msra.mxu1 %v5777_v1  ;;  %v617_v12 = vld [vmem:[%s6905_s29 + $0x6d8] sm:$0xff]  ;;  %v5842_v1 = vcombine.high %v609_v58, %v613_v60  ;;  %v5896_v58 = vcombine.high %v664_v50, %v668_v51  ;;  %v672_v60 = vld [vmem:[%s6905_s29 + $0x890] sm:$0xff] }
 0x11f   : > { %3037 = vmatprep.subr.bf16.mxu0 %v5784_v2  ;;  %3160 = vmatprep.subr.bf16.mxu1 %v5786_v6  ;;  %v621_v2 = vld [vmem:[%s6905_s29 + $0x6f8] sm:$0xff]  ;;  %v624_v6 = vld [vmem:[%s6905_s29 + $0x710] sm:$0xff] }
 0x120   : > { %v5849_v11 = vcombine.low %v617_v12, %v621_v2  ;;  %v5856_v13 = vcombine.high %v624_v6, %v628_v7  ;;  %v5855_v19 = vcombine.low %v624_v6, %v628_v7  ;;  %v728_v51 = vld [vmem:[%s6905_s29 + $0xa50] sm:$0xff] }
 0x122   : > { %3038 = vmatpush1.bf16.msra.mxu0 %v5783_v8  ;;  %3161 = vmatpush1.bf16.msra.mxu1 %v5785_v22  ;;  %v625_v8 = vld [vmem:[%s6905_s29 + $0x718] sm:$0xff]  ;;  %v5850_v22 = vcombine.high %v617_v12, %v621_v2  ;;  %v680_v2 = vld [vmem:[%s6905_s29 + $0x8d0] sm:$0xff] }
 0x123   : > { %3039 = vmatprep.subr.bf16.mxu0 %v5792_v9  ;;  %3162 = vmatprep.subr.bf16.mxu1 %v5794_v14  ;;  %v629_v9 = vld [vmem:[%s6905_s29 + $0x738] sm:$0xff]  ;;  %v632_v14 = vld [vmem:[%s6905_s29 + $0x750] sm:$0xff] }
 0x124   : > { %v5857_v20 = vcombine.low %v625_v8, %v629_v9  ;;  %v5864_v23 = vcombine.high %v632_v14, %v636_v15 }
 0x126   : > { %3040 = vmatpush1.bf16.msra.mxu0 %v5791_v16  ;;  %3163 = vmatpush1.bf16.msra.mxu1 %v5793_v17  ;;  %v633_v16 = vld [vmem:[%s6905_s29 + $0x758] sm:$0xff]  ;;  %v5858_v17 = vcombine.high %v625_v8, %v629_v9  ;;  %v688_v8 = vld [vmem:[%s6905_s29 + $0x910] sm:$0xff] }
 0x127   : > { %3041 = vmatprep.subr.bf16.mxu0 %v5800_v18  ;;  %3164 = vmatprep.subr.bf16.mxu1 %v5802_v24  ;;  %v637_v18 = vld [vmem:[%s6905_s29 + $0x778] sm:$0xff]  ;;  %v640_v24 = vld [vmem:[%s6905_s29 + $0x790] sm:$0xff] }
 0x128   : > { %v5865_v30 = vcombine.low %v633_v16, %v637_v18  ;;  %v5872_v31 = vcombine.high %v640_v24, %v644_v25  ;;  %v689_v9 = vld [vmem:[%s6905_s29 + $0x918] sm:$0xff] }
 0x12a   : > { %3042 = vmatpush1.bf16.msra.mxu0 %v5799_v26  ;;  %3165 = vmatpush1.bf16.msra.mxu1 %v5801_v27  ;;  %v641_v26 = vld [vmem:[%s6905_s29 + $0x798] sm:$0xff]  ;;  %v5866_v27 = vcombine.high %v633_v16, %v637_v18  ;;  %v700_v16 = vld [vmem:[%s6905_s29 + $0x970] sm:$0xff] }
 0x12b   : > { %3043 = vmatprep.subr.bf16.mxu0 %v5808_v28  ;;  %3166 = vmatprep.subr.bf16.mxu1 %v5810_v29  ;;  %v645_v28 = vld [vmem:[%s6905_s29 + $0x7b8] sm:$0xff]  ;;  %v5863_v29 = vcombine.low %v632_v14, %v636_v15  ;;  %v696_v15 = vld [vmem:[%s6905_s29 + $0x950] sm:$0xff] }
 0x12c   : > { %v5873_v40 = vcombine.low %v641_v26, %v645_v28 }
 0x12e   : > { %3044 = vmatpush1.bf16.msra.mxu0 %v5807_v35  ;;  %3167 = vmatpush1.bf16.msra.mxu1 %v5809_v37  ;;  %v649_v35 = vld [vmem:[%s6905_s29 + $0x7d8] sm:$0xff]  ;;  %v5874_v37 = vcombine.high %v641_v26, %v645_v28  ;;  %v708_v26 = vld [vmem:[%s6905_s29 + $0x9b0] sm:$0xff] }
 0x12f   : > { %3045 = vmatprep.subr.bf16.mxu0 %v5816_v38  ;;  %3168 = vmatprep.subr.bf16.mxu1 %v5818_v39  ;;  %v653_v38 = vld [vmem:[%s6905_s29 + $0x7f8] sm:$0xff]  ;;  %v5871_v39 = vcombine.low %v640_v24, %v644_v25  ;;  %v5928_v24 = vcombine.high %v696_v15, %v700_v16  ;;  %v704_v25 = vld [vmem:[%s6905_s29 + $0x990] sm:$0xff] }
 0x130   : > { %v5881_v48 = vcombine.low %v649_v35, %v653_v38 }
 0x132   : > { %3046 = vmatpush1.bf16.msra.mxu0 %v5815_v44  ;;  %3169 = vmatpush1.bf16.msra.mxu1 %v5817_v45  ;;  %v657_v44 = vld [vmem:[%s6905_s29 + $0x818] sm:$0xff]  ;;  %v5882_v45 = vcombine.high %v649_v35, %v653_v38  ;;  %v716_v35 = vld [vmem:[%s6905_s29 + $0x9f0] sm:$0xff] }
 0x133   : > { %3047 = vmatprep.subr.bf16.mxu0 %v5824_v46  ;;  %3170 = vmatprep.subr.bf16.mxu1 %v5826_v47  ;;  %v661_v46 = vld [vmem:[%s6905_s29 + $0x838] sm:$0xff]  ;;  %v5879_v47 = vcombine.low %v648_v33, %v652_v34  ;;  %v5936_v33 = vcombine.high %v704_v25, %v708_v26  ;;  %v712_v34 = vld [vmem:[%s6905_s29 + $0x9d0] sm:$0xff] }
 0x134   : > { %v5889_v56 = vcombine.low %v657_v44, %v661_v46  ;;  %v5944_v42 = vcombine.high %v712_v34, %v716_v35 }
 0x136   : > { %3048 = vmatpush1.bf16.msra.mxu0 %v5823_v52  ;;  %3171 = vmatpush1.bf16.msra.mxu1 %v5825_v53  ;;  %v665_v52 = vld [vmem:[%s6905_s29 + $0x858] sm:$0xff]  ;;  %v5890_v53 = vcombine.high %v657_v44, %v661_v46  ;;  %v724_v44 = vld [vmem:[%s6905_s29 + $0xa30] sm:$0xff] }
 0x137   : > { %3049 = vmatprep.subr.bf16.mxu0 %v5832_v54  ;;  %3172 = vmatprep.subr.bf16.mxu1 %v5834_v59  ;;  %v669_v54 = vld [vmem:[%s6905_s29 + $0x878] sm:$0xff]  ;;  %v5952_v50 = vcombine.high %v720_v43, %v724_v44 }
 0x138   : > { %v5898_v59 = vcombine.high %v665_v52, %v669_v54  ;;  %v5897_v57 = vcombine.low %v665_v52, %v669_v54  ;;  %v732_v52 = vld [vmem:[%s6905_s29 + $0xa70] sm:$0xff] }
 0x13a   : > { %3050 = vmatpush1.bf16.msra.mxu0 %v5831_v61  ;;  %3173 = vmatpush1.bf16.msra.mxu1 %v5833_v62  ;;  %v676_v61 = vld [vmem:[%s6905_s29 + $0x8b0] sm:$0xff]  ;;  %v673_v62 = vld [vmem:[%s6905_s29 + $0x898] sm:$0xff] }
 0x13b   : > { %3051 = vmatprep.subr.bf16.mxu0 %v5840_v63  ;;  %3174 = vmatprep.subr.bf16.mxu1 %v5842_v1  ;;  %v677_v63 = vld [vmem:[%s6905_s29 + $0x8b8] sm:$0xff]  ;;  %v5904_v12 = vcombine.high %v672_v60, %v676_v61 }
 0x13c   : > { %v5906_v1 = vcombine.high %v673_v62, %v677_v63  ;;  %v5905_v6 = vcombine.low %v673_v62, %v677_v63  ;;  %v737_v62 = vld [vmem:[%s6905_s29 + $0xa98] sm:$0xff] }
 0x13e   : > { %3052 = vmatpush1.bf16.msra.mxu0 %v5839_v3  ;;  %3175 = vmatpush1.bf16.msra.mxu1 %v5841_v4  ;;  %v684_v3 = vld [vmem:[%s6905_s29 + $0x8f0] sm:$0xff]  ;;  %v681_v4 = vld [vmem:[%s6905_s29 + $0x8d8] sm:$0xff] }
 0x13f   : > { %3053 = vmatprep.subr.bf16.mxu0 %v5848_v5  ;;  %3176 = vmatprep.subr.bf16.mxu1 %v5850_v22  ;;  %v685_v5 = vld [vmem:[%s6905_s29 + $0x8f8] sm:$0xff]  ;;  %v5912_v7 = vcombine.high %v680_v2, %v684_v3  ;;  %v692_v22 = vld [vmem:[%s6905_s29 + $0x930] sm:$0xff] }
 0x140   : > { %v5920_v14 = vcombine.high %v688_v8, %v692_v22 }
 0x142   : > { %3054 = vmatpush1.bf16.msra.mxu0 %v5847_v10  ;;  %3177 = vmatpush1.bf16.msra.mxu1 %v5849_v11  ;;  %v5914_v10 = vcombine.high %v681_v4, %v685_v5  ;;  %v693_v11 = vld [vmem:[%s6905_s29 + $0x938] sm:$0xff] }
 0x143   : > { %3055 = vmatprep.subr.bf16.mxu0 %v5856_v13  ;;  %3178 = vmatprep.subr.bf16.mxu1 %v5858_v17  ;;  %v5911_v13 = vcombine.low %v680_v2, %v684_v3  ;;  %v697_v17 = vld [vmem:[%s6905_s29 + $0x958] sm:$0xff]  ;;  %v5922_v18 = vcombine.high %v689_v9, %v693_v11  ;;  %v744_v2 = vld [vmem:[%s6905_s29 + $0xad0] sm:$0xff] }
 0x144   : > { %v748_v3 = vld [vmem:[%s6905_s29 + $0xaf0] sm:$0xff] }
 0x146   : > { %3056 = vmatpush1.bf16.msra.mxu0 %v5855_v19  ;;  %3179 = vmatpush1.bf16.msra.mxu1 %v5857_v20  ;;  %v701_v19 = vld [vmem:[%s6905_s29 + $0x978] sm:$0xff]  ;;  %v5919_v20 = vcombine.low %v688_v8, %v692_v22  ;;  %v5976_v8 = vcombine.high %v744_v2, %v748_v3  ;;  %v752_v22 = vld [vmem:[%s6905_s29 + $0xb10] sm:$0xff] }
 0x147   : > { %3057 = vmatprep.subr.bf16.mxu0 %v5864_v23  ;;  %3180 = vmatprep.subr.bf16.mxu1 %v5866_v27  ;;  %v5921_v23 = vcombine.low %v689_v9, %v693_v11  ;;  %v705_v27 = vld [vmem:[%s6905_s29 + $0x998] sm:$0xff]  ;;  %v5930_v28 = vcombine.high %v697_v17, %v701_v19  ;;  %v756_v9 = vld [vmem:[%s6905_s29 + $0xb30] sm:$0xff] }
 0x14a   : > { %3058 = vmatpush1.bf16.msra.mxu0 %v5863_v29  ;;  %3181 = vmatpush1.bf16.msra.mxu1 %v5865_v30  ;;  %v709_v29 = vld [vmem:[%s6905_s29 + $0x9b8] sm:$0xff]  ;;  %v5927_v30 = vcombine.low %v696_v15, %v700_v16  ;;  %v5984_v15 = vcombine.high %v752_v22, %v756_v9  ;;  %v760_v16 = vld [vmem:[%s6905_s29 + $0xb50] sm:$0xff] }
 0x14b   : > { %3059 = vmatprep.subr.bf16.mxu0 %v5872_v31  ;;  %3182 = vmatprep.subr.bf16.mxu1 %v5874_v37  ;;  %v5929_v31 = vcombine.low %v697_v17, %v701_v19  ;;  %v713_v37 = vld [vmem:[%s6905_s29 + $0x9d8] sm:$0xff]  ;;  %v5938_v38 = vcombine.high %v705_v27, %v709_v29  ;;  %v764_v17 = vld [vmem:[%s6905_s29 + $0xb70] sm:$0xff] }
 0x14e   : > { %3060 = vmatpush1.bf16.msra.mxu0 %v5871_v39  ;;  %3183 = vmatpush1.bf16.msra.mxu1 %v5873_v40  ;;  %v717_v39 = vld [vmem:[%s6905_s29 + $0x9f8] sm:$0xff]  ;;  %v5935_v40 = vcombine.low %v704_v25, %v708_v26  ;;  %v5992_v25 = vcombine.high %v760_v16, %v764_v17  ;;  %v768_v26 = vld [vmem:[%s6905_s29 + $0xb90] sm:$0xff] }
 0x14f   : > { %3061 = vmatprep.subr.bf16.mxu0 %v5880_v41  ;;  %3184 = vmatprep.subr.bf16.mxu1 %v5882_v45  ;;  %v5937_v41 = vcombine.low %v705_v27, %v709_v29  ;;  %v721_v45 = vld [vmem:[%s6905_s29 + $0xa18] sm:$0xff]  ;;  %v5946_v46 = vcombine.high %v713_v37, %v717_v39  ;;  %v772_v27 = vld [vmem:[%s6905_s29 + $0xbb0] sm:$0xff] }
 0x152   : > { %3062 = vmatpush1.bf16.msra.mxu0 %v5879_v47  ;;  %3185 = vmatpush1.bf16.msra.mxu1 %v5881_v48  ;;  %v725_v47 = vld [vmem:[%s6905_s29 + $0xa38] sm:$0xff]  ;;  %v5943_v48 = vcombine.low %v712_v34, %v716_v35  ;;  %v6000_v34 = vcombine.high %v768_v26, %v772_v27  ;;  %v776_v35 = vld [vmem:[%s6905_s29 + $0xbd0] sm:$0xff] }
 0x153   : > { %3072 = vmatprep.subr.bf16.mxu0 %v5888_v49  ;;  %3195 = vmatprep.subr.bf16.mxu1 %v5890_v53  ;;  %v5945_v49 = vcombine.low %v713_v37, %v717_v39  ;;  %v729_v53 = vld [vmem:[%s6905_s29 + $0xa58] sm:$0xff]  ;;  %v5954_v54 = vcombine.high %v721_v45, %v725_v47  ;;  %v780_v37 = vld [vmem:[%s6905_s29 + $0xbf0] sm:$0xff] }
 0x155   : > { %3064 = vmatmul.mubr.bf16.vlgmr.msra.gmra.mrb[4].mxu0 %v7063_v21  ;;  %3187 = vmatmul.mubr.bf16.vlgmr.msra.gmra.mrb[4].mxu1 %v7063_v21  ;;  %v5903_v21 = vcombine.low %v672_v60, %v676_v61  ;;  %v736_v60 = vld [vmem:[%s6905_s29 + $0xa90] sm:$0xff] }
 0x156   : > { %3073 = vmatpush1.bf16.msra.mxu0 %v5887_v55  ;;  %3196 = vmatpush1.bf16.msra.mxu1 %v5889_v56  ;;  %v733_v55 = vld [vmem:[%s6905_s29 + $0xa78] sm:$0xff]  ;;  %v5951_v56 = vcombine.low %v720_v43, %v724_v44  ;;  %v740_v61 = vld [vmem:[%s6905_s29 + $0xab0] sm:$0xff]  ;;  %v6008_v43 = vcombine.high %v776_v35, %v780_v37 }
 0x157   : > { %3074 = vmatprep.subr.bf16.mxu0 %v5896_v58  ;;  %3197 = vmatprep.subr.bf16.mxu1 %v5898_v59  ;;  %v5953_v58 = vcombine.low %v721_v45, %v725_v47  ;;  %v5960_v59 = vcombine.high %v728_v51, %v732_v52  ;;  %v5962_v63 = vcombine.high %v729_v53, %v733_v55  ;;  %v6428_v47 = vld [vmem:[%s7215_s14 + $0x4] ss:$16 sps:$4 sm:$0xff]  }
 0x158   : > { %3104 = vmatprep.mubr.bf16.mxu0 %v7070_v32  ;;  %3227 = vmatprep.mubr.bf16.mxu1 %v7070_v32  ;;  %v5913_v32 = vcombine.low %v681_v4, %v685_v5  ;;  %v745_v4 = vld [vmem:[%s6905_s29 + $0xad8] sm:$0xff]  ;;  %v6007_v45 = vcombine.low %v776_v35, %v780_v37  ;;  %v6480_v37 = vld [vmem:[%s7215_s14 + $0x120] ss:$16 sps:$4 sm:$0xff]  }
 0x159   : > { %v6485_v35 = vld [vmem:[%s7215_s14 + $0x12c] ss:$16 sps:$4 sm:$0xff]  }
 0x15a   : > { %3075 = vmatpush1.bf16.msra.mxu0 %v5895_v0  ;;  %3198 = vmatpush1.bf16.msra.mxu1 %v5897_v57  ;;  %v741_v0 = vld [vmem:[%s6905_s29 + $0xab8] sm:$0xff]  ;;  %v5959_v57 = vcombine.low %v728_v51, %v732_v52  ;;  %v6434_v51 = vld [vmem:[%s7215_s14 + $0x24] ss:$16 sps:$4 sm:$0xff]  }
 0x15b   : > { %3076 = vmatprep.subr.bf16.mxu0 %v5904_v12  ;;  %3199 = vmatprep.subr.bf16.mxu1 %v5906_v1  ;;  %v5961_v12 = vcombine.low %v729_v53, %v733_v55  ;;  %v5968_v1 = vcombine.high %v736_v60, %v740_v61  ;;  %v5970_v5 = vcombine.high %v737_v62, %v741_v0  ;;  %v6437_v52 = vld [vmem:[%s7215_s14 + $0x2c] ss:$16 sps:$4 sm:$0xff]   ;;  %v6432_v53 = vld [vmem:[%s7215_s14 + $0x20] ss:$16 sps:$4 sm:$0xff]   ;;  %v6440_v55 = vld [vmem:[%s7215_s14 + $0x44] ss:$16 sps:$4 sm:$0xff]  }
 0x15e   : > { %3077 = vmatpush1.bf16.msra.mxu0 %v5903_v21  ;;  %3200 = vmatpush1.bf16.msra.mxu1 %v5905_v6  ;;  %v749_v21 = vld [vmem:[%s6905_s29 + $0xaf8] sm:$0xff]  ;;  %v5967_v6 = vcombine.low %v736_v60, %v740_v61  ;;  %v6446_v60 = vld [vmem:[%s7215_s14 + $0x64] ss:$16 sps:$4 sm:$0xff]  }
 0x15f   : > { %3078 = vmatprep.subr.bf16.mxu0 %v5912_v7  ;;  %3201 = vmatprep.subr.bf16.mxu1 %v5914_v10  ;;  %v5969_v7 = vcombine.low %v737_v62, %v741_v0  ;;  %v753_v10 = vld [vmem:[%s6905_s29 + $0xb18] sm:$0xff]  ;;  %v5978_v11 = vcombine.high %v745_v4, %v749_v21  ;;  %v6444_v62 = vld [vmem:[%s7215_s14 + $0x60] ss:$16 sps:$4 sm:$0xff]  }
 0x160   : > { %v6449_v61 = vld [vmem:[%s7215_s14 + $0x6c] ss:$16 sps:$4 sm:$0xff]   ;;  %v6447_v0 = vld [vmem:[%s7215_s14 + $0x68] ss:$16 sps:$4 sm:$0xff]  }
 0x162   : > { %3079 = vmatpush1.bf16.msra.mxu0 %v5911_v13  ;;  %3202 = vmatpush1.bf16.msra.mxu1 %v5913_v32  ;;  %v757_v13 = vld [vmem:[%s6905_s29 + $0xb38] sm:$0xff]  ;;  %v5975_v32 = vcombine.low %v744_v2, %v748_v3 }
 0x163   : > { %3080 = vmatprep.subr.bf16.mxu0 %v5920_v14  ;;  %3203 = vmatprep.subr.bf16.mxu1 %v5922_v18  ;;  %v5977_v14 = vcombine.low %v745_v4, %v749_v21  ;;  %v761_v18 = vld [vmem:[%s6905_s29 + $0xb58] sm:$0xff]  ;;  %v5986_v19 = vcombine.high %v753_v10, %v757_v13  ;;  %v7377_v4 = vld [vmem:[%s7371_s18] sm:$0xff] }
 0x164   : > { %v6453_v3 = vld [vmem:[%s7215_s14 + $0x88] ss:$16 sps:$4 sm:$0xff]   ;;  %v6461_v21 = vld [vmem:[%s7215_s14 + $0xac] ss:$16 sps:$4 sm:$0xff]  }
 0x166   : > { %3081 = vmatpush1.bf16.msra.mxu0 %v5919_v20  ;;  %3204 = vmatpush1.bf16.msra.mxu1 %v5921_v23  ;;  %v765_v20 = vld [vmem:[%s6905_s29 + $0xb78] sm:$0xff]  ;;  %v5983_v23 = vcombine.low %v752_v22, %v756_v9  ;;  %v6464_v22 = vld [vmem:[%s7215_s14 + $0xc4] ss:$16 sps:$4 sm:$0xff]  }
 0x167   : > { %3082 = vmatprep.subr.bf16.mxu0 %v5928_v24  ;;  %3205 = vmatprep.subr.bf16.mxu1 %v5930_v28  ;;  %v5985_v24 = vcombine.low %v753_v10, %v757_v13  ;;  %v769_v28 = vld [vmem:[%s6905_s29 + $0xb98] sm:$0xff]  ;;  %v5994_v29 = vcombine.high %v761_v18, %v765_v20 }
 0x168   : > { %v6467_v10 = vld [vmem:[%s7215_s14 + $0xcc] ss:$16 sps:$4 sm:$0xff]  }
 0x16a   : > { %3083 = vmatpush1.bf16.msra.mxu0 %v5927_v30  ;;  %3206 = vmatpush1.bf16.msra.mxu1 %v5929_v31  ;;  %v773_v30 = vld [vmem:[%s6905_s29 + $0xbb8] sm:$0xff]  ;;  %v5991_v31 = vcombine.low %v760_v16, %v764_v17  ;;  %v6462_v16 = vld [vmem:[%s7215_s14 + $0xc0] ss:$16 sps:$4 sm:$0xff]  }
 0x16b   : > { %3084 = vmatprep.subr.bf16.mxu0 %v5936_v33  ;;  %3207 = vmatprep.subr.bf16.mxu1 %v5938_v38  ;;  %v5993_v33 = vcombine.low %v761_v18, %v765_v20  ;;  %v777_v38 = vld [vmem:[%s6905_s29 + $0xbd8] sm:$0xff]  ;;  %v6002_v39 = vcombine.high %v769_v28, %v773_v30  ;;  %v6470_v20 = vld [vmem:[%s7215_s14 + $0xe4] ss:$16 sps:$4 sm:$0xff]  }
 0x16e   : > { %3085 = vmatpush1.bf16.msra.mxu0 %v5935_v40  ;;  %3208 = vmatpush1.bf16.msra.mxu1 %v5937_v41  ;;  %v781_v40 = vld [vmem:[%s6905_s29 + $0xbf8] sm:$0xff]  ;;  %v5999_v41 = vcombine.low %v768_v26, %v772_v27  ;;  %v6468_v27 = vld [vmem:[%s7215_s14 + $0xe0] ss:$16 sps:$4 sm:$0xff]  }
 0x16f   : > { %3086 = vmatprep.subr.bf16.mxu0 %v5944_v42  ;;  %3209 = vmatprep.subr.bf16.mxu1 %v5946_v46  ;;  %v6001_v42 = vcombine.low %v769_v28, %v773_v30  ;;  %v6010_v44 = vcombine.high %v777_v38, %v781_v40  ;;  %v6009_v46 = vcombine.low %v777_v38, %v781_v40  ;;  %v6471_v28 = vld [vmem:[%s7215_s14 + $0xe8] ss:$16 sps:$4 sm:$0xff]   ;;  %v6479_v30 = vld [vmem:[%s7215_s14 + $0x10c] ss:$16 sps:$4 sm:$0xff]  }
 0x170   : > { %v6483_v38 = vld [vmem:[%s7215_s14 + $0x128] ss:$16 sps:$4 sm:$0xff]   ;;  %v6491_v40 = vld [vmem:[%s7215_s14 + $0x14c] ss:$16 sps:$4 sm:$0xff]  }
 0x172   : > { %3087 = vmatpush1.bf16.msra.mxu0 %v5943_v48  ;;  %3210 = vmatpush1.bf16.msra.mxu1 %v5945_v49  ;;  %v6426_v48 = vld [vmem:[%s7215_s14] ss:$16 sps:$4 sm:$0xff]   ;;  %v6431_v49 = vld [vmem:[%s7215_s14 + $0xc] ss:$16 sps:$4 sm:$0xff]  }
 0x173   : > { %3088 = vmatprep.subr.bf16.mxu0 %v5952_v50  ;;  %3211 = vmatprep.subr.bf16.mxu1 %v5954_v54  ;;  %v6429_v50 = vld [vmem:[%s7215_s14 + $0x8] ss:$16 sps:$4 sm:$0xff]  }
 0x174   : > { %v6435_v54 = vld [vmem:[%s7215_s14 + $0x28] ss:$16 sps:$4 sm:$0xff]  }
 0x176   : > { %3089 = vmatpush1.bf16.msra.mxu0 %v5951_v56  ;;  %3212 = vmatpush1.bf16.msra.mxu1 %v5953_v58  ;;  %v6443_v56 = vld [vmem:[%s7215_s14 + $0x4c] ss:$16 sps:$4 sm:$0xff]   ;;  %v6438_v58 = vld [vmem:[%s7215_s14 + $0x40] ss:$16 sps:$4 sm:$0xff]  }
 0x177   : > { %3090 = vmatprep.subr.bf16.mxu0 %v5960_v59  ;;  %3213 = vmatprep.subr.bf16.mxu1 %v5962_v63  ;;  %v784_v59 = vlaneseq }
 0x179   : > { %v7361_v63 = vshrl.u32 %v784_v59, 7  ;;  %v6512_v59 = vld [vmem:[%s7215_s14 + $0x1c4] ss:$16 sps:$4 sm:$0xff]  }
 0x17a   : > { %3091 = vmatpush1.bf16.msra.mxu0 %v5959_v57  ;;  %3214 = vmatpush1.bf16.msra.mxu1 %v5961_v12  ;;  %v6452_v57 = vld [vmem:[%s7215_s14 + $0x84] ss:$16 sps:$4 sm:$0xff]   ;;  %v6455_v12 = vld [vmem:[%s7215_s14 + $0x8c] ss:$16 sps:$4 sm:$0xff]  }
 0x17b   : > { %3092 = vmatprep.subr.bf16.mxu0 %v5968_v1  ;;  %3215 = vmatprep.subr.bf16.mxu1 %v5970_v5  ;;  %v6450_v1 = vld [vmem:[%s7215_s14 + $0x80] ss:$16 sps:$4 sm:$0xff]   ;;  %v790_v2 = vsub.s32 1, %v7361_v63  ;;  %v6458_v5 = vld [vmem:[%s7215_s14 + $0xa4] ss:$16 sps:$4 sm:$0xff]  }
 0x17e   : > { %3093 = vmatpush1.bf16.msra.mxu0 %v5967_v6  ;;  %3216 = vmatpush1.bf16.msra.mxu1 %v5969_v7  ;;  %v791_v6 = vrot.slane %v7377_v4, %v790_v2  ;;  %v6456_v7 = vld [vmem:[%s7215_s14 + $0xa0] ss:$16 sps:$4 sm:$0xff]  }
 0x17f   : > { %3094 = vmatprep.subr.bf16.mxu0 %v5976_v8  ;;  %3217 = vmatprep.subr.bf16.mxu1 %v5978_v11  ;;  %v6459_v8 = vld [vmem:[%s7215_s14 + $0xa8] ss:$16 sps:$4 sm:$0xff]  }
 0x182   : > { %3095 = vmatpush1.bf16.msra.mxu0 %v5975_v32  ;;  %3218 = vmatpush1.bf16.msra.mxu1 %v5977_v14 }
 0x183   : > { %3096 = vmatprep.subr.bf16.mxu0 %v5984_v15  ;;  %3219 = vmatprep.subr.bf16.mxu1 %v5986_v19  ;;  %v6465_v19 = vld [vmem:[%s7215_s14 + $0xc8] ss:$16 sps:$4 sm:$0xff]  }
 0x186   : > { %3097 = vmatpush1.bf16.msra.mxu0 %v5983_v23  ;;  %3220 = vmatpush1.bf16.msra.mxu1 %v5985_v24 }
 0x187   : > { %3098 = vmatprep.subr.bf16.mxu0 %v5992_v25  ;;  %3221 = vmatprep.subr.bf16.mxu1 %v5994_v29  ;;  %v6473_v25 = vld [vmem:[%s7215_s14 + $0xec] ss:$16 sps:$4 sm:$0xff]   ;;  %v6476_v29 = vld [vmem:[%s7215_s14 + $0x104] ss:$16 sps:$4 sm:$0xff]  }
 0x18a   : > { %3099 = vmatpush1.bf16.msra.mxu0 %v5991_v31  ;;  %3222 = vmatpush1.bf16.msra.mxu1 %v5993_v33  ;;  %v6474_v31 = vld [vmem:[%s7215_s14 + $0x100] ss:$16 sps:$4 sm:$0xff]   ;;  %v6477_v33 = vld [vmem:[%s7215_s14 + $0x108] ss:$16 sps:$4 sm:$0xff]  }
 0x18b   : > { %3100 = vmatprep.subr.bf16.mxu0 %v6000_v34  ;;  %3223 = vmatprep.subr.bf16.mxu1 %v6002_v39  ;;  %v6482_v34 = vld [vmem:[%s7215_s14 + $0x124] ss:$16 sps:$4 sm:$0xff]  }
 0x18c   : > { %v6488_v39 = vld [vmem:[%s7215_s14 + $0x144] ss:$16 sps:$4 sm:$0xff]  }
 0x18e   : > { %3101 = vmatpush1.bf16.msra.mxu0 %v5999_v41  ;;  %3224 = vmatpush1.bf16.msra.mxu1 %v6001_v42  ;;  %v6486_v41 = vld [vmem:[%s7215_s14 + $0x140] ss:$16 sps:$4 sm:$0xff]   ;;  %v6489_v42 = vld [vmem:[%s7215_s14 + $0x148] ss:$16 sps:$4 sm:$0xff]  }
 0x18f   : > { %3102 = vmatprep.subr.bf16.mxu0 %v6008_v43  ;;  %3225 = vmatprep.subr.bf16.mxu1 %v6010_v44  ;;  %v6494_v43 = vld [vmem:[%s7215_s14 + $0x164] ss:$16 sps:$4 sm:$0xff]   ;;  %v6497_v44 = vld [vmem:[%s7215_s14 + $0x16c] ss:$16 sps:$4 sm:$0xff]  }
 0x192   : > { %3103 = vmatpush1.bf16.msra.mxu0 %v6007_v45  ;;  %3226 = vmatpush1.bf16.msra.mxu1 %v6009_v46  ;;  %v6492_v45 = vld [vmem:[%s7215_s14 + $0x160] ss:$16 sps:$4 sm:$0xff]   ;;  %v6495_v46 = vld [vmem:[%s7215_s14 + $0x168] ss:$16 sps:$4 sm:$0xff]  }
 0x193   : > { %4810 = vmatprep.subr.bf16.mxu0 %v6428_v47  ;;  %4974 = vmatprep.subr.bf16.mxu1 %v6431_v49  ;;  %v6500_v47 = vld [vmem:[%s7215_s14 + $0x184] ss:$16 sps:$4 sm:$0xff]   ;;  %v6498_v49 = vld [vmem:[%s7215_s14 + $0x180] ss:$16 sps:$4 sm:$0xff]  }
 0x195   : > { %3105 = vmatmul.mubr.bf16.vlgmr.msra.gmra.mrb[4].mxu0 %v7137_v36  ;;  %3228 = vmatmul.mubr.bf16.vlgmr.msra.gmra.mrb[4].mxu1 %v7137_v36  ;;  %v6441_v36 = vld [vmem:[%s7215_s14 + $0x48] ss:$16 sps:$4 sm:$0xff]  }
 0x196   : > { %4811 = vmatpush1.bf16.msra.mxu0 %v6426_v48  ;;  %4975 = vmatpush1.bf16.msra.mxu1 %v6429_v50  ;;  %v6503_v48 = vld [vmem:[%s7215_s14 + $0x18c] ss:$16 sps:$4 sm:$0xff]   ;;  %v786_v50 = vsub.s32 0, %v7361_v63 }
 0x197   : > { %4812 = vmatprep.subr.bf16.mxu0 %v6434_v51  ;;  %4976 = vmatprep.subr.bf16.mxu1 %v6437_v52  ;;  %v6501_v51 = vld [vmem:[%s7215_s14 + $0x188] ss:$16 sps:$4 sm:$0xff]   ;;  %v6506_v52 = vld [vmem:[%s7215_s14 + $0x1a4] ss:$16 sps:$4 sm:$0xff]  }
 0x19a   : > { %4813 = vmatpush1.bf16.msra.mxu0 %v6432_v53  ;;  %4977 = vmatpush1.bf16.msra.mxu1 %v6435_v54  ;;  %v6509_v53 = vld [vmem:[%s7215_s14 + $0x1ac] ss:$16 sps:$4 sm:$0xff]   ;;  %v798_v54 = vsub.s32 3, %v7361_v63 }
 0x19b   : > { %4814 = vmatprep.subr.bf16.mxu0 %v6440_v55  ;;  %4978 = vmatprep.subr.bf16.mxu1 %v6443_v56  ;;  %v6504_v55 = vld [vmem:[%s7215_s14 + $0x1a0] ss:$16 sps:$4 sm:$0xff]   ;;  %v787_v56 = vrot.slane %v7377_v4, %v786_v50 }
 0x19e   : > { %4815 = vmatpush1.bf16.msra.mxu0 %v6438_v58  ;;  %4979 = vmatpush1.bf16.msra.mxu1 %v6441_v36  ;;  %v6507_v58 = vld [vmem:[%s7215_s14 + $0x1a8] ss:$16 sps:$4 sm:$0xff]   ;;  %v6515_v36 = vld [vmem:[%s7215_s14 + $0x1cc] ss:$16 sps:$4 sm:$0xff]  }
 0x19f   : > { %4816 = vmatprep.subr.bf16.mxu0 %v6446_v60  ;;  %4980 = vmatprep.subr.bf16.mxu1 %v6449_v61  ;;  %v799_v60 = vrot.slane %v7377_v4, %v798_v54  ;;  %v6510_v61 = vld [vmem:[%s7215_s14 + $0x1c0] ss:$16 sps:$4 sm:$0xff]  }
 0x1a2   : > { %4817 = vmatpush1.bf16.msra.mxu0 %v6444_v62  ;;  %4981 = vmatpush1.bf16.msra.mxu1 %v6447_v0  ;;  %v6513_v0 = vld [vmem:[%s7215_s14 + $0x1c8] ss:$16 sps:$4 sm:$0xff]  }
 0x1a3   : > { %4818 = vmatprep.subr.bf16.mxu0 %v6452_v57  ;;  %4982 = vmatprep.subr.bf16.mxu1 %v6455_v12  ;;  %v6518_v57 = vld [vmem:[%s7215_s14 + $0x1e4] ss:$16 sps:$4 sm:$0xff]   ;;  %v6521_v12 = vld [vmem:[%s7215_s14 + $0x1ec] ss:$16 sps:$4 sm:$0xff]  }
 0x1a6   : > { %4819 = vmatpush1.bf16.msra.mxu0 %v6450_v1  ;;  %4983 = vmatpush1.bf16.msra.mxu1 %v6453_v3  ;;  %v6516_v3 = vld [vmem:[%s7215_s14 + $0x1e0] ss:$16 sps:$4 sm:$0xff]  }
 0x1a7   : > { %4820 = vmatprep.subr.bf16.mxu0 %v6458_v5  ;;  %4984 = vmatprep.subr.bf16.mxu1 %v6461_v21  ;;  %v6519_v21 = vld [vmem:[%s7215_s14 + $0x1e8] ss:$16 sps:$4 sm:$0xff]  }
 0x1a8   : > { %v7387_v9 = vpop.f32.mrb[0].mxu0  ;;  %v7390_v11 = vpop.f32.mrb[0].mxu1 }
 0x1a9   : > { %v2862_v13 = vpop.f32.mrb[1].mxu0  ;;  %v7392_v14 = vpop.f32.mrb[1].mxu1  ;;  %v6348_v62 = vadd.f32 %v7387_v9, %v787_v56  ;;  %v6587_v56 = vld [vmem:[%s7215_s14 + $0x34c] ss:$16 sps:$4 sm:$0xff]  }
 0x1aa   : > { %v6349_v32 = vadd.f32 %v2862_v13, %v791_v6  ;;  %v2864_v15 = vpop.f32.mrb[2].mxu0  ;;  %4821 = vmatpush1.bf16.msra.mxu0 %v6456_v7  ;;  %v2987_v17 = vpop.f32.mrb[2].mxu1  ;;  %4985 = vmatpush1.bf16.msra.mxu1 %v6459_v8  ;;  %v6351_v1 = vadd.f32 %v7392_v14, %v799_v60  ;;  %v6524_v6 = vld [vmem:[%s7215_s14 + $0x204] ss:$16 sps:$4 sm:$0xff]   ;;  %v6527_v7 = vld [vmem:[%s7215_s14 + $0x20c] ss:$16 sps:$4 sm:$0xff]  }
 0x1ab   : > { %v2865_v18 = vpop.f32.mrb[3].mxu0  ;;  %4822 = vmatprep.subr.bf16.mxu0 %v6464_v22  ;;  %v2988_v24 = vpop.f32.mrb[3].mxu1  ;;  %4986 = vmatprep.subr.bf16.mxu1 %v6467_v10  ;;  %v3236_v5 = vmax.f32 %v6348_v62, 0.0  ;;  %v6522_v22 = vld [vmem:[%s7215_s14 + $0x200] ss:$16 sps:$4 sm:$0xff]  }
 0x1ac   : > { %v3237_v23 = vmax.f32 %v6349_v32, 0.0  ;;  %v3239_v8 = vmax.f32 %v6351_v1, 0.0  ;;  %v6525_v10 = vld [vmem:[%s7215_s14 + $0x208] ss:$16 sps:$4 sm:$0xff]   ;;  %v6530_v13 = vld [vmem:[%s7215_s14 + $0x224] ss:$16 sps:$4 sm:$0xff]  }
 0x1ad   : > { %v3244_v9 = vpack.c.bf16 %v3236_v5, %v3236_v5  ;;  %v6533_v14 = vld [vmem:[%s7215_s14 + $0x22c] ss:$16 sps:$4 sm:$0xff]   ;;  %v6528_v15 = vld [vmem:[%s7215_s14 + $0x220] ss:$16 sps:$4 sm:$0xff]   ;;  %v6536_v17 = vld [vmem:[%s7215_s14 + $0x244] ss:$16 sps:$4 sm:$0xff]  }
 0x1ae   : > { %v3245_v26 = vpack.c.bf16 %v3237_v23, %v3237_v23  ;;  %4823 = vmatpush1.bf16.msra.mxu0 %v6462_v16  ;;  %4987 = vmatpush1.bf16.msra.mxu1 %v6465_v19  ;;  %v3247_v32 = vpack.c.bf16 %v3239_v8, %v3239_v8  ;;  %v6531_v16 = vld [vmem:[%s7215_s14 + $0x228] ss:$16 sps:$4 sm:$0xff]   ;;  %v6539_v18 = vld [vmem:[%s7215_s14 + $0x24c] ss:$16 sps:$4 sm:$0xff]   ;;  %v6534_v19 = vld [vmem:[%s7215_s14 + $0x240] ss:$16 sps:$4 sm:$0xff]  }
 0x1af   : > { %4824 = vmatprep.subr.bf16.mxu0 %v6470_v20  ;;  %4988 = vmatprep.subr.bf16.mxu1 %v6473_v25  ;;  %v6537_v20 = vld [vmem:[%s7215_s14 + $0x248] ss:$16 sps:$4 sm:$0xff]   ;;  %v6542_v23 = vld [vmem:[%s7215_s14 + $0x264] ss:$16 sps:$4 sm:$0xff]   ;;  %v6545_v24 = vld [vmem:[%s7215_s14 + $0x26c] ss:$16 sps:$4 sm:$0xff]  }
 0x1b0   : > { %4842 = vmatprep.mubr.bf16.mxu0 %v3245_v26  ;;  %5006 = vmatprep.mubr.bf16.mxu1 %v3245_v26  ;;  %v6540_v25 = vld [vmem:[%s7215_s14 + $0x260] ss:$16 sps:$4 sm:$0xff]   ;;  %v6543_v26 = vld [vmem:[%s7215_s14 + $0x268] ss:$16 sps:$4 sm:$0xff]   ;;  %v6593_v60 = vld [vmem:[%s7215_s14 + $0x36c] ss:$16 sps:$4 sm:$0xff]  }
 0x1b1   : > { %v6591_v62 = vld [vmem:[%s7215_s14 + $0x368] ss:$16 sps:$4 sm:$0xff]   ;;  %v794_v1 = vsub.s32 2, %v7361_v63  ;;  %v6602_v5 = vld [vmem:[%s7215_s14 + $0x3a4] ss:$16 sps:$4 sm:$0xff]  }
 0x1b2   : > { %4825 = vmatpush1.bf16.msra.mxu0 %v6468_v27  ;;  %4989 = vmatpush1.bf16.msra.mxu1 %v6471_v28  ;;  %v6548_v27 = vld [vmem:[%s7215_s14 + $0x284] ss:$16 sps:$4 sm:$0xff]   ;;  %v6551_v28 = vld [vmem:[%s7215_s14 + $0x28c] ss:$16 sps:$4 sm:$0xff]   ;;  %v6603_v8 = vld [vmem:[%s7215_s14 + $0x3a8] ss:$16 sps:$4 sm:$0xff]  }
 0x1b3   : > { %4826 = vmatprep.subr.bf16.mxu0 %v6476_v29  ;;  %4990 = vmatprep.subr.bf16.mxu1 %v6479_v30  ;;  %v6546_v29 = vld [vmem:[%s7215_s14 + $0x280] ss:$16 sps:$4 sm:$0xff]   ;;  %v6549_v30 = vld [vmem:[%s7215_s14 + $0x288] ss:$16 sps:$4 sm:$0xff]  }
 0x1b6   : > { %4827 = vmatpush1.bf16.msra.mxu0 %v6474_v31  ;;  %4991 = vmatpush1.bf16.msra.mxu1 %v6477_v33  ;;  %v6554_v31 = vld [vmem:[%s7215_s14 + $0x2a4] ss:$16 sps:$4 sm:$0xff]   ;;  %v6557_v33 = vld [vmem:[%s7215_s14 + $0x2ac] ss:$16 sps:$4 sm:$0xff]  }
 0x1b7   : > { %4828 = vmatprep.subr.bf16.mxu0 %v6482_v34  ;;  %4992 = vmatprep.subr.bf16.mxu1 %v6485_v35  ;;  %v6552_v34 = vld [vmem:[%s7215_s14 + $0x2a0] ss:$16 sps:$4 sm:$0xff]   ;;  %v6555_v35 = vld [vmem:[%s7215_s14 + $0x2a8] ss:$16 sps:$4 sm:$0xff]  }
 0x1ba   : > { %4829 = vmatpush1.bf16.msra.mxu0 %v6480_v37  ;;  %4993 = vmatpush1.bf16.msra.mxu1 %v6483_v38  ;;  %v6560_v37 = vld [vmem:[%s7215_s14 + $0x2c4] ss:$16 sps:$4 sm:$0xff]   ;;  %v6563_v38 = vld [vmem:[%s7215_s14 + $0x2cc] ss:$16 sps:$4 sm:$0xff]  }
 0x1bb   : > { %4830 = vmatprep.subr.bf16.mxu0 %v6488_v39  ;;  %4994 = vmatprep.subr.bf16.mxu1 %v6491_v40  ;;  %v6558_v39 = vld [vmem:[%s7215_s14 + $0x2c0] ss:$16 sps:$4 sm:$0xff]   ;;  %v6561_v40 = vld [vmem:[%s7215_s14 + $0x2c8] ss:$16 sps:$4 sm:$0xff]  }
 0x1be   : > { %4831 = vmatpush1.bf16.msra.mxu0 %v6486_v41  ;;  %4995 = vmatpush1.bf16.msra.mxu1 %v6489_v42  ;;  %v6566_v41 = vld [vmem:[%s7215_s14 + $0x2e4] ss:$16 sps:$4 sm:$0xff]   ;;  %v6569_v42 = vld [vmem:[%s7215_s14 + $0x2ec] ss:$16 sps:$4 sm:$0xff]  }
 0x1bf   : > { %4832 = vmatprep.subr.bf16.mxu0 %v6494_v43  ;;  %4996 = vmatprep.subr.bf16.mxu1 %v6497_v44  ;;  %v6564_v43 = vld [vmem:[%s7215_s14 + $0x2e0] ss:$16 sps:$4 sm:$0xff]   ;;  %v6567_v44 = vld [vmem:[%s7215_s14 + $0x2e8] ss:$16 sps:$4 sm:$0xff]  }
 0x1c2   : > { %4833 = vmatpush1.bf16.msra.mxu0 %v6492_v45  ;;  %4997 = vmatpush1.bf16.msra.mxu1 %v6495_v46  ;;  %v6572_v45 = vld [vmem:[%s7215_s14 + $0x304] ss:$16 sps:$4 sm:$0xff]   ;;  %v6575_v46 = vld [vmem:[%s7215_s14 + $0x30c] ss:$16 sps:$4 sm:$0xff]  }
 0x1c3   : > { %4834 = vmatprep.subr.bf16.mxu0 %v6500_v47  ;;  %4998 = vmatprep.subr.bf16.mxu1 %v6503_v48  ;;  %v6570_v47 = vld [vmem:[%s7215_s14 + $0x300] ss:$16 sps:$4 sm:$0xff]   ;;  %v6573_v48 = vld [vmem:[%s7215_s14 + $0x308] ss:$16 sps:$4 sm:$0xff]  }
 0x1c6   : > { %4835 = vmatpush1.bf16.msra.mxu0 %v6498_v49  ;;  %4999 = vmatpush1.bf16.msra.mxu1 %v6501_v51  ;;  %v6578_v49 = vld [vmem:[%s7215_s14 + $0x324] ss:$16 sps:$4 sm:$0xff]   ;;  %v6581_v51 = vld [vmem:[%s7215_s14 + $0x32c] ss:$16 sps:$4 sm:$0xff]  }
 0x1c7   : > { %4836 = vmatprep.subr.bf16.mxu0 %v6506_v52  ;;  %5000 = vmatprep.subr.bf16.mxu1 %v6509_v53  ;;  %v6576_v52 = vld [vmem:[%s7215_s14 + $0x320] ss:$16 sps:$4 sm:$0xff]   ;;  %v6579_v53 = vld [vmem:[%s7215_s14 + $0x328] ss:$16 sps:$4 sm:$0xff]  }
 0x1ca   : > { %4837 = vmatpush1.bf16.msra.mxu0 %v6504_v55  ;;  %5001 = vmatpush1.bf16.msra.mxu1 %v6507_v58  ;;  %v6584_v55 = vld [vmem:[%s7215_s14 + $0x344] ss:$16 sps:$4 sm:$0xff]   ;;  %v6582_v58 = vld [vmem:[%s7215_s14 + $0x340] ss:$16 sps:$4 sm:$0xff]  }
 0x1cb   : > { %4838 = vmatprep.subr.bf16.mxu0 %v6512_v59  ;;  %5002 = vmatprep.subr.bf16.mxu1 %v6515_v36  ;;  %v6585_v59 = vld [vmem:[%s7215_s14 + $0x348] ss:$16 sps:$4 sm:$0xff]   ;;  %v6590_v36 = vld [vmem:[%s7215_s14 + $0x364] ss:$16 sps:$4 sm:$0xff]  }
 0x1ce   : > { %4839 = vmatpush1.bf16.msra.mxu0 %v6510_v61  ;;  %5003 = vmatpush1.bf16.msra.mxu1 %v6513_v0  ;;  %v6588_v61 = vld [vmem:[%s7215_s14 + $0x360] ss:$16 sps:$4 sm:$0xff]   ;;  %v6596_v0 = vld [vmem:[%s7215_s14 + $0x384] ss:$16 sps:$4 sm:$0xff]  }
 0x1cf   : > { %4840 = vmatprep.subr.bf16.mxu0 %v6518_v57  ;;  %5004 = vmatprep.subr.bf16.mxu1 %v6521_v12  ;;  %v6599_v57 = vld [vmem:[%s7215_s14 + $0x38c] ss:$16 sps:$4 sm:$0xff]   ;;  %v6594_v12 = vld [vmem:[%s7215_s14 + $0x380] ss:$16 sps:$4 sm:$0xff]  }
 0x1d2   : > { %4841 = vmatpush1.bf16.msra.mxu0 %v6516_v3  ;;  %5005 = vmatpush1.bf16.msra.mxu1 %v6519_v21  ;;  %v6597_v3 = vld [vmem:[%s7215_s14 + $0x388] ss:$16 sps:$4 sm:$0xff]   ;;  %v6605_v21 = vld [vmem:[%s7215_s14 + $0x3ac] ss:$16 sps:$4 sm:$0xff]  }
 0x1d3   : > { %4851 = vmatprep.subr.bf16.mxu0 %v6524_v6  ;;  %5015 = vmatprep.subr.bf16.mxu1 %v6527_v7  ;;  %v6600_v6 = vld [vmem:[%s7215_s14 + $0x3a0] ss:$16 sps:$4 sm:$0xff]   ;;  %v795_v7 = vrot.slane %v7377_v4, %v794_v1 }
 0x1d5   : > { %4843 = vmatmul.mubr.bf16.vlgmr.msra.gmra.mrb[8].mxu0 %v3244_v9  ;;  %5007 = vmatmul.mubr.bf16.vlgmr.msra.gmra.mrb[8].mxu1 %v3244_v9  ;;  %v6611_v9 = vld [vmem:[%s7215_s14 + $0x3cc] ss:$16 sps:$4 sm:$0xff]  }
 0x1d6   : > { %4852 = vmatpush1.bf16.msra.mxu0 %v6522_v22  ;;  %4883 = vmatprep.mubr.bf16.mxu0 %v3247_v32  ;;  %v6608_v22 = vld [vmem:[%s7215_s14 + $0x3c4] ss:$16 sps:$4 sm:$0xff]  }
 0x1d7   : > { %5016 = vmatpush1.bf16.msra.mxu1 %v6525_v10  ;;  %5047 = vmatprep.mubr.bf16.mxu1 %v3247_v32  ;;  %v6606_v10 = vld [vmem:[%s7215_s14 + $0x3c0] ss:$16 sps:$4 sm:$0xff]   ;;  %v6609_v32 = vld [vmem:[%s7215_s14 + $0x3c8] ss:$16 sps:$4 sm:$0xff]  }
 0x1d8   : > { %4853 = vmatprep.subr.bf16.mxu0 %v6530_v13  ;;  %5017 = vmatprep.subr.bf16.mxu1 %v6533_v14  ;;  %v6350_v13 = vadd.f32 %v7390_v11, %v795_v7  ;;  %v6614_v14 = vld [vmem:[%s7215_s14 + $0x3e4] ss:$16 sps:$4 sm:$0xff]   ;;  %v6623_v11 = vld [vmem:[%s7215_s14 + $0x40c] ss:$16 sps:$4 sm:$0xff]  }
 0x1d9   : > { %v6689_v7 = vld [vmem:[%s7215_s14 + $0x56c] ss:$16 sps:$4 sm:$0xff]  }
 0x1da   : > { %4854 = vmatpush1.bf16.msra.mxu0 %v6528_v15  ;;  %v6617_v15 = vld [vmem:[%s7215_s14 + $0x3ec] ss:$16 sps:$4 sm:$0xff]  }
 0x1db   : > { %5018 = vmatpush1.bf16.msra.mxu1 %v6531_v16  ;;  %4855 = vmatprep.subr.bf16.mxu0 %v6536_v17  ;;  %v6612_v16 = vld [vmem:[%s7215_s14 + $0x3e0] ss:$16 sps:$4 sm:$0xff]   ;;  %v3238_v17 = vmax.f32 %v6350_v13, 0.0 }
 0x1dc   : > { %5019 = vmatprep.subr.bf16.mxu1 %v6539_v18  ;;  %v6615_v18 = vld [vmem:[%s7215_s14 + $0x3e8] ss:$16 sps:$4 sm:$0xff]   ;;  %v6690_v13 = vld [vmem:[%s7215_s14 + $0x580] ss:$16 sps:$4 sm:$0xff]  }
 0x1de   : > { %4856 = vmatpush1.bf16.msra.mxu0 %v6534_v19  ;;  %v6620_v19 = vld [vmem:[%s7215_s14 + $0x404] ss:$16 sps:$4 sm:$0xff]  }
 0x1df   : > { %5020 = vmatpush1.bf16.msra.mxu1 %v6537_v20  ;;  %4857 = vmatprep.subr.bf16.mxu0 %v6542_v23  ;;  %v6618_v20 = vld [vmem:[%s7215_s14 + $0x400] ss:$16 sps:$4 sm:$0xff]   ;;  %v3246_v23 = vpack.c.bf16 %v3238_v17, %v3238_v17  ;;  %v6699_v17 = vld [vmem:[%s7215_s14 + $0x5a8] ss:$16 sps:$4 sm:$0xff]  }
 0x1e0   : > { %5021 = vmatprep.subr.bf16.mxu1 %v6545_v24  ;;  %v6621_v24 = vld [vmem:[%s7215_s14 + $0x408] ss:$16 sps:$4 sm:$0xff]  }
 0x1e2   : > { %4858 = vmatpush1.bf16.msra.mxu0 %v6540_v25  ;;  %v6626_v25 = vld [vmem:[%s7215_s14 + $0x424] ss:$16 sps:$4 sm:$0xff]  }
 0x1e3   : > { %5022 = vmatpush1.bf16.msra.mxu1 %v6543_v26  ;;  %4859 = vmatprep.subr.bf16.mxu0 %v6548_v27  ;;  %v6629_v26 = vld [vmem:[%s7215_s14 + $0x42c] ss:$16 sps:$4 sm:$0xff]   ;;  %v6624_v27 = vld [vmem:[%s7215_s14 + $0x420] ss:$16 sps:$4 sm:$0xff]  }
 0x1e4   : > { %5023 = vmatprep.subr.bf16.mxu1 %v6551_v28  ;;  %v6627_v28 = vld [vmem:[%s7215_s14 + $0x428] ss:$16 sps:$4 sm:$0xff]  }
 0x1e6   : > { %4860 = vmatpush1.bf16.msra.mxu0 %v6546_v29  ;;  %v6632_v29 = vld [vmem:[%s7215_s14 + $0x444] ss:$16 sps:$4 sm:$0xff]  }
 0x1e7   : > { %5024 = vmatpush1.bf16.msra.mxu1 %v6549_v30  ;;  %4861 = vmatprep.subr.bf16.mxu0 %v6554_v31  ;;  %v6635_v30 = vld [vmem:[%s7215_s14 + $0x44c] ss:$16 sps:$4 sm:$0xff]   ;;  %v6630_v31 = vld [vmem:[%s7215_s14 + $0x440] ss:$16 sps:$4 sm:$0xff]  }
 0x1e8   : > { %5025 = vmatprep.subr.bf16.mxu1 %v6557_v33  ;;  %v6633_v33 = vld [vmem:[%s7215_s14 + $0x448] ss:$16 sps:$4 sm:$0xff]  }
 0x1ea   : > { %4862 = vmatpush1.bf16.msra.mxu0 %v6552_v34  ;;  %v6638_v34 = vld [vmem:[%s7215_s14 + $0x464] ss:$16 sps:$4 sm:$0xff]  }
 0x1eb   : > { %5026 = vmatpush1.bf16.msra.mxu1 %v6555_v35  ;;  %4863 = vmatprep.subr.bf16.mxu0 %v6560_v37  ;;  %v6641_v35 = vld [vmem:[%s7215_s14 + $0x46c] ss:$16 sps:$4 sm:$0xff]   ;;  %v6636_v37 = vld [vmem:[%s7215_s14 + $0x460] ss:$16 sps:$4 sm:$0xff]  }
 0x1ec   : > { %5027 = vmatprep.subr.bf16.mxu1 %v6563_v38  ;;  %v6639_v38 = vld [vmem:[%s7215_s14 + $0x468] ss:$16 sps:$4 sm:$0xff]  }
 0x1ee   : > { %4864 = vmatpush1.bf16.msra.mxu0 %v6558_v39  ;;  %v6644_v39 = vld [vmem:[%s7215_s14 + $0x484] ss:$16 sps:$4 sm:$0xff]  }
 0x1ef   : > { %5028 = vmatpush1.bf16.msra.mxu1 %v6561_v40  ;;  %4865 = vmatprep.subr.bf16.mxu0 %v6566_v41  ;;  %v6647_v40 = vld [vmem:[%s7215_s14 + $0x48c] ss:$16 sps:$4 sm:$0xff]   ;;  %v6642_v41 = vld [vmem:[%s7215_s14 + $0x480] ss:$16 sps:$4 sm:$0xff]  }
 0x1f0   : > { %5029 = vmatprep.subr.bf16.mxu1 %v6569_v42  ;;  %v6645_v42 = vld [vmem:[%s7215_s14 + $0x488] ss:$16 sps:$4 sm:$0xff]  }
 0x1f2   : > { %4866 = vmatpush1.bf16.msra.mxu0 %v6564_v43  ;;  %v6650_v43 = vld [vmem:[%s7215_s14 + $0x4a4] ss:$16 sps:$4 sm:$0xff]  }
 0x1f3   : > { %5030 = vmatpush1.bf16.msra.mxu1 %v6567_v44  ;;  %4867 = vmatprep.subr.bf16.mxu0 %v6572_v45  ;;  %v6653_v44 = vld [vmem:[%s7215_s14 + $0x4ac] ss:$16 sps:$4 sm:$0xff]   ;;  %v6648_v45 = vld [vmem:[%s7215_s14 + $0x4a0] ss:$16 sps:$4 sm:$0xff]  }
 0x1f4   : > { %5031 = vmatprep.subr.bf16.mxu1 %v6575_v46  ;;  %v6651_v46 = vld [vmem:[%s7215_s14 + $0x4a8] ss:$16 sps:$4 sm:$0xff]  }
 0x1f6   : > { %4868 = vmatpush1.bf16.msra.mxu0 %v6570_v47  ;;  %v6656_v47 = vld [vmem:[%s7215_s14 + $0x4c4] ss:$16 sps:$4 sm:$0xff]  }
 0x1f7   : > { %5032 = vmatpush1.bf16.msra.mxu1 %v6573_v48  ;;  %4869 = vmatprep.subr.bf16.mxu0 %v6578_v49  ;;  %v6659_v48 = vld [vmem:[%s7215_s14 + $0x4cc] ss:$16 sps:$4 sm:$0xff]   ;;  %v6654_v49 = vld [vmem:[%s7215_s14 + $0x4c0] ss:$16 sps:$4 sm:$0xff]  }
 0x1f8   : > { %5033 = vmatprep.subr.bf16.mxu1 %v6581_v51  ;;  %v6657_v51 = vld [vmem:[%s7215_s14 + $0x4c8] ss:$16 sps:$4 sm:$0xff]  }
 0x1fa   : > { %4870 = vmatpush1.bf16.msra.mxu0 %v6576_v52  ;;  %v6662_v52 = vld [vmem:[%s7215_s14 + $0x4e4] ss:$16 sps:$4 sm:$0xff]  }
 0x1fb   : > { %5034 = vmatpush1.bf16.msra.mxu1 %v6579_v53  ;;  %4871 = vmatprep.subr.bf16.mxu0 %v6584_v55  ;;  %v6665_v53 = vld [vmem:[%s7215_s14 + $0x4ec] ss:$16 sps:$4 sm:$0xff]   ;;  %v6660_v55 = vld [vmem:[%s7215_s14 + $0x4e0] ss:$16 sps:$4 sm:$0xff]  }
 0x1fc   : > { %5035 = vmatprep.subr.bf16.mxu1 %v6587_v56  ;;  %v6663_v56 = vld [vmem:[%s7215_s14 + $0x4e8] ss:$16 sps:$4 sm:$0xff]  }
 0x1fe   : > { %4872 = vmatpush1.bf16.msra.mxu0 %v6582_v58  ;;  %v6668_v58 = vld [vmem:[%s7215_s14 + $0x504] ss:$16 sps:$4 sm:$0xff]  }
 0x1ff   : > { %5036 = vmatpush1.bf16.msra.mxu1 %v6585_v59  ;;  %4873 = vmatprep.subr.bf16.mxu0 %v6590_v36  ;;  %v6671_v59 = vld [vmem:[%s7215_s14 + $0x50c] ss:$16 sps:$4 sm:$0xff]   ;;  %v6666_v36 = vld [vmem:[%s7215_s14 + $0x500] ss:$16 sps:$4 sm:$0xff]  }
 0x200   : > { %5037 = vmatprep.subr.bf16.mxu1 %v6593_v60  ;;  %v6669_v60 = vld [vmem:[%s7215_s14 + $0x508] ss:$16 sps:$4 sm:$0xff]  }
 0x202   : > { %4874 = vmatpush1.bf16.msra.mxu0 %v6588_v61  ;;  %v6674_v61 = vld [vmem:[%s7215_s14 + $0x524] ss:$16 sps:$4 sm:$0xff]  }
 0x203   : > { %5038 = vmatpush1.bf16.msra.mxu1 %v6591_v62  ;;  %4875 = vmatprep.subr.bf16.mxu0 %v6596_v0  ;;  %v6677_v62 = vld [vmem:[%s7215_s14 + $0x52c] ss:$16 sps:$4 sm:$0xff]   ;;  %v6672_v0 = vld [vmem:[%s7215_s14 + $0x520] ss:$16 sps:$4 sm:$0xff]  }
 0x204   : > { %5039 = vmatprep.subr.bf16.mxu1 %v6599_v57  ;;  %v6675_v57 = vld [vmem:[%s7215_s14 + $0x528] ss:$16 sps:$4 sm:$0xff]  }
 0x206   : > { %4876 = vmatpush1.bf16.msra.mxu0 %v6594_v12  ;;  %v6680_v12 = vld [vmem:[%s7215_s14 + $0x544] ss:$16 sps:$4 sm:$0xff]  }
 0x207   : > { %5040 = vmatpush1.bf16.msra.mxu1 %v6597_v3  ;;  %4877 = vmatprep.subr.bf16.mxu0 %v6602_v5  ;;  %v6683_v3 = vld [vmem:[%s7215_s14 + $0x54c] ss:$16 sps:$4 sm:$0xff]   ;;  %v6678_v5 = vld [vmem:[%s7215_s14 + $0x540] ss:$16 sps:$4 sm:$0xff]  }
 0x208   : > { %5041 = vmatprep.subr.bf16.mxu1 %v6605_v21  ;;  %v6681_v21 = vld [vmem:[%s7215_s14 + $0x548] ss:$16 sps:$4 sm:$0xff]  }
 0x20a   : > { %4878 = vmatpush1.bf16.msra.mxu0 %v6600_v6  ;;  %v6686_v6 = vld [vmem:[%s7215_s14 + $0x564] ss:$16 sps:$4 sm:$0xff]  }
 0x20b   : > { %5042 = vmatpush1.bf16.msra.mxu1 %v6603_v8  ;;  %4879 = vmatprep.subr.bf16.mxu0 %v6608_v22  ;;  %v6684_v8 = vld [vmem:[%s7215_s14 + $0x560] ss:$16 sps:$4 sm:$0xff]   ;;  %v6687_v22 = vld [vmem:[%s7215_s14 + $0x568] ss:$16 sps:$4 sm:$0xff]  }
 0x20c   : > { %5043 = vmatprep.subr.bf16.mxu1 %v6611_v9  ;;  %v6692_v9 = vld [vmem:[%s7215_s14 + $0x584] ss:$16 sps:$4 sm:$0xff]  }
 0x20e   : > { %4880 = vmatpush1.bf16.msra.mxu0 %v6606_v10  ;;  %v6695_v10 = vld [vmem:[%s7215_s14 + $0x58c] ss:$16 sps:$4 sm:$0xff]  }
 0x20f   : > { %5044 = vmatpush1.bf16.msra.mxu1 %v6609_v32  ;;  %4881 = vmatprep.subr.bf16.mxu0 %v6614_v14  ;;  %v6693_v32 = vld [vmem:[%s7215_s14 + $0x588] ss:$16 sps:$4 sm:$0xff]   ;;  %v6698_v14 = vld [vmem:[%s7215_s14 + $0x5a4] ss:$16 sps:$4 sm:$0xff]  }
 0x210   : > { %5045 = vmatprep.subr.bf16.mxu1 %v6617_v15  ;;  %v6696_v15 = vld [vmem:[%s7215_s14 + $0x5a0] ss:$16 sps:$4 sm:$0xff]  }
 0x212   : > { %4882 = vmatpush1.bf16.msra.mxu0 %v6612_v16  ;;  %v6701_v16 = vld [vmem:[%s7215_s14 + $0x5ac] ss:$16 sps:$4 sm:$0xff]  }
 0x213   : > { %5046 = vmatpush1.bf16.msra.mxu1 %v6615_v18  ;;  %4892 = vmatprep.subr.bf16.mxu0 %v6620_v19  ;;  %v6704_v18 = vld [vmem:[%s7215_s14 + $0x5c4] ss:$16 sps:$4 sm:$0xff]   ;;  %v6707_v19 = vld [vmem:[%s7215_s14 + $0x5cc] ss:$16 sps:$4 sm:$0xff]  }
 0x214   : > { %5056 = vmatprep.subr.bf16.mxu1 %v6623_v11  ;;  %v6702_v11 = vld [vmem:[%s7215_s14 + $0x5c0] ss:$16 sps:$4 sm:$0xff]  }
 0x215   : > { %4884 = vmatmul.mubr.bf16.vlgmr.msra.gmra.mrb[8].mxu0 %v3246_v23 }
 0x216   : > { %5048 = vmatmul.mubr.bf16.vlgmr.msra.gmra.mrb[8].mxu1 %v3246_v23  ;;  %4893 = vmatpush1.bf16.msra.mxu0 %v6618_v20  ;;  %v6705_v20 = vld [vmem:[%s7215_s14 + $0x5c8] ss:$16 sps:$4 sm:$0xff]   ;;  %v6710_v23 = vld [vmem:[%s7215_s14 + $0x5e4] ss:$16 sps:$4 sm:$0xff]  }
 0x217   : > { %5057 = vmatpush1.bf16.msra.mxu1 %v6621_v24  ;;  %4894 = vmatprep.subr.bf16.mxu0 %v6626_v25  ;;  %v6713_v24 = vld [vmem:[%s7215_s14 + $0x5ec] ss:$16 sps:$4 sm:$0xff]   ;;  %v6708_v25 = vld [vmem:[%s7215_s14 + $0x5e0] ss:$16 sps:$4 sm:$0xff]  }
 0x218   : > { %5058 = vmatprep.subr.bf16.mxu1 %v6629_v26  ;;  %v6711_v26 = vld [vmem:[%s7215_s14 + $0x5e8] ss:$16 sps:$4 sm:$0xff]  }
 0x21a   : > { %4895 = vmatpush1.bf16.msra.mxu0 %v6624_v27  ;;  %v6716_v27 = vld [vmem:[%s7215_s14 + $0x604] ss:$16 sps:$4 sm:$0xff]  }
 0x21b   : > { %5059 = vmatpush1.bf16.msra.mxu1 %v6627_v28  ;;  %4896 = vmatprep.subr.bf16.mxu0 %v6632_v29  ;;  %v6719_v28 = vld [vmem:[%s7215_s14 + $0x60c] ss:$16 sps:$4 sm:$0xff]   ;;  %v802_v29 = vsub.s32 4, %v7361_v63 }
 0x21c   : > { %5060 = vmatprep.subr.bf16.mxu1 %v6635_v30  ;;  %v806_v30 = vsub.s32 5, %v7361_v63 }
 0x21e   : > { %4897 = vmatpush1.bf16.msra.mxu0 %v6630_v31  ;;  %v814_v31 = vsub.s32 7, %v7361_v63 }
 0x21f   : > { %5061 = vmatpush1.bf16.msra.mxu1 %v6633_v33  ;;  %4898 = vmatprep.subr.bf16.mxu0 %v6638_v34  ;;  %v803_v33 = vrot.slane %v7377_v4, %v802_v29  ;;  %v807_v34 = vrot.slane %v7377_v4, %v806_v30  ;;  %v6768_v29 = vld [vmem:[%s7215_s14 + $0x720] ss:$16 sps:$4 sm:$0xff]   ;;  %v6771_v30 = vld [vmem:[%s7215_s14 + $0x728] ss:$16 sps:$4 sm:$0xff]  }
 0x220   : > { %5062 = vmatprep.subr.bf16.mxu1 %v6641_v35  ;;  %v815_v35 = vrot.slane %v7377_v4, %v814_v31  ;;  %v6776_v31 = vld [vmem:[%s7215_s14 + $0x744] ss:$16 sps:$4 sm:$0xff]  }
 0x222   : > { %4899 = vmatpush1.bf16.msra.mxu0 %v6636_v37 }
 0x223   : > { %5063 = vmatpush1.bf16.msra.mxu1 %v6639_v38  ;;  %4900 = vmatprep.subr.bf16.mxu0 %v6644_v39 }
 0x224   : > { %5064 = vmatprep.subr.bf16.mxu1 %v6647_v40 }
 0x226   : > { %4901 = vmatpush1.bf16.msra.mxu0 %v6642_v41 }
 0x227   : > { %5065 = vmatpush1.bf16.msra.mxu1 %v6645_v42  ;;  %4902 = vmatprep.subr.bf16.mxu0 %v6650_v43 }
 0x228   : > { %5066 = vmatprep.subr.bf16.mxu1 %v6653_v44 }
 0x22a   : > { %4903 = vmatpush1.bf16.msra.mxu0 %v6648_v45 }
 0x22b   : > { %5067 = vmatpush1.bf16.msra.mxu1 %v6651_v46  ;;  %4904 = vmatprep.subr.bf16.mxu0 %v6656_v47 }
 0x22c   : > { %5068 = vmatprep.subr.bf16.mxu1 %v6659_v48 }
 0x22e   : > { %4905 = vmatpush1.bf16.msra.mxu0 %v6654_v49 }
 0x22f   : > { %5069 = vmatpush1.bf16.msra.mxu1 %v6657_v51  ;;  %4906 = vmatprep.subr.bf16.mxu0 %v6662_v52  ;;  %v6714_v52 = vld [vmem:[%s7215_s14 + $0x600] ss:$16 sps:$4 sm:$0xff]  }
 0x230   : > { %5070 = vmatprep.subr.bf16.mxu1 %v6665_v53  ;;  %v6717_v53 = vld [vmem:[%s7215_s14 + $0x608] ss:$16 sps:$4 sm:$0xff]  }
 0x232   : > { %4907 = vmatpush1.bf16.msra.mxu0 %v6660_v55 }
 0x233   : > { %5071 = vmatpush1.bf16.msra.mxu1 %v6663_v56  ;;  %4908 = vmatprep.subr.bf16.mxu0 %v6668_v58  ;;  %v6722_v56 = vld [vmem:[%s7215_s14 + $0x624] ss:$16 sps:$4 sm:$0xff]   ;;  %v6725_v58 = vld [vmem:[%s7215_s14 + $0x62c] ss:$16 sps:$4 sm:$0xff]  }
 0x234   : > { %5072 = vmatprep.subr.bf16.mxu1 %v6671_v59 }
 0x236   : > { %4909 = vmatpush1.bf16.msra.mxu0 %v6666_v36  ;;  %v6720_v36 = vld [vmem:[%s7215_s14 + $0x620] ss:$16 sps:$4 sm:$0xff]  }
 0x237   : > { %5073 = vmatpush1.bf16.msra.mxu1 %v6669_v60  ;;  %4910 = vmatprep.subr.bf16.mxu0 %v6674_v61  ;;  %v6723_v60 = vld [vmem:[%s7215_s14 + $0x628] ss:$16 sps:$4 sm:$0xff]   ;;  %v6728_v61 = vld [vmem:[%s7215_s14 + $0x644] ss:$16 sps:$4 sm:$0xff]  }
 0x238   : > { %5074 = vmatprep.subr.bf16.mxu1 %v6677_v62  ;;  %v6731_v62 = vld [vmem:[%s7215_s14 + $0x64c] ss:$16 sps:$4 sm:$0xff]  }
 0x23a   : > { %4911 = vmatpush1.bf16.msra.mxu0 %v6672_v0  ;;  %v6726_v0 = vld [vmem:[%s7215_s14 + $0x640] ss:$16 sps:$4 sm:$0xff]  }
 0x23b   : > { %5075 = vmatpush1.bf16.msra.mxu1 %v6675_v57  ;;  %4912 = vmatprep.subr.bf16.mxu0 %v6680_v12  ;;  %v6729_v57 = vld [vmem:[%s7215_s14 + $0x648] ss:$16 sps:$4 sm:$0xff]   ;;  %v6734_v12 = vld [vmem:[%s7215_s14 + $0x664] ss:$16 sps:$4 sm:$0xff]  }
 0x23c   : > { %5076 = vmatprep.subr.bf16.mxu1 %v6683_v3  ;;  %v6737_v3 = vld [vmem:[%s7215_s14 + $0x66c] ss:$16 sps:$4 sm:$0xff]  }
 0x23e   : > { %4913 = vmatpush1.bf16.msra.mxu0 %v6678_v5  ;;  %v6732_v5 = vld [vmem:[%s7215_s14 + $0x660] ss:$16 sps:$4 sm:$0xff]  }
 0x23f   : > { %5077 = vmatpush1.bf16.msra.mxu1 %v6681_v21  ;;  %4914 = vmatprep.subr.bf16.mxu0 %v6686_v6  ;;  %v6735_v21 = vld [vmem:[%s7215_s14 + $0x668] ss:$16 sps:$4 sm:$0xff]   ;;  %v6740_v6 = vld [vmem:[%s7215_s14 + $0x684] ss:$16 sps:$4 sm:$0xff]  }
 0x240   : > { %5078 = vmatprep.subr.bf16.mxu1 %v6689_v7  ;;  %v6743_v7 = vld [vmem:[%s7215_s14 + $0x68c] ss:$16 sps:$4 sm:$0xff]  }
 0x242   : > { %4915 = vmatpush1.bf16.msra.mxu0 %v6684_v8  ;;  %v6738_v8 = vld [vmem:[%s7215_s14 + $0x680] ss:$16 sps:$4 sm:$0xff]  }
 0x243   : > { %5079 = vmatpush1.bf16.msra.mxu1 %v6687_v22  ;;  %4916 = vmatprep.subr.bf16.mxu0 %v6692_v9  ;;  %v6741_v22 = vld [vmem:[%s7215_s14 + $0x688] ss:$16 sps:$4 sm:$0xff]   ;;  %v6746_v9 = vld [vmem:[%s7215_s14 + $0x6a4] ss:$16 sps:$4 sm:$0xff]  }
 0x244   : > { %5080 = vmatprep.subr.bf16.mxu1 %v6695_v10  ;;  %v6749_v10 = vld [vmem:[%s7215_s14 + $0x6ac] ss:$16 sps:$4 sm:$0xff]  }
 0x246   : > { %4917 = vmatpush1.bf16.msra.mxu0 %v6690_v13  ;;  %v6744_v13 = vld [vmem:[%s7215_s14 + $0x6a0] ss:$16 sps:$4 sm:$0xff]  }
 0x247   : > { %5081 = vmatpush1.bf16.msra.mxu1 %v6693_v32  ;;  %4918 = vmatprep.subr.bf16.mxu0 %v6698_v14  ;;  %v6747_v32 = vld [vmem:[%s7215_s14 + $0x6a8] ss:$16 sps:$4 sm:$0xff]   ;;  %v6752_v14 = vld [vmem:[%s7215_s14 + $0x6c4] ss:$16 sps:$4 sm:$0xff]  }
 0x248   : > { %5082 = vmatprep.subr.bf16.mxu1 %v6701_v16  ;;  %v6750_v16 = vld [vmem:[%s7215_s14 + $0x6c0] ss:$16 sps:$4 sm:$0xff]  }
 0x24a   : > { %4919 = vmatpush1.bf16.msra.mxu0 %v6696_v15  ;;  %v6755_v15 = vld [vmem:[%s7215_s14 + $0x6cc] ss:$16 sps:$4 sm:$0xff]  }
 0x24b   : > { %5083 = vmatpush1.bf16.msra.mxu1 %v6699_v17  ;;  %4920 = vmatprep.subr.bf16.mxu0 %v6704_v18  ;;  %v6753_v17 = vld [vmem:[%s7215_s14 + $0x6c8] ss:$16 sps:$4 sm:$0xff]   ;;  %v6758_v18 = vld [vmem:[%s7215_s14 + $0x6e4] ss:$16 sps:$4 sm:$0xff]  }
 0x24c   : > { %5084 = vmatprep.subr.bf16.mxu1 %v6707_v19  ;;  %v6761_v19 = vld [vmem:[%s7215_s14 + $0x6ec] ss:$16 sps:$4 sm:$0xff]  }
 0x24e   : > { %4921 = vmatpush1.bf16.msra.mxu0 %v6702_v11  ;;  %v6756_v11 = vld [vmem:[%s7215_s14 + $0x6e0] ss:$16 sps:$4 sm:$0xff]  }
 0x24f   : > { %5085 = vmatpush1.bf16.msra.mxu1 %v6705_v20  ;;  %4922 = vmatprep.subr.bf16.mxu0 %v6710_v23  ;;  %v6759_v20 = vld [vmem:[%s7215_s14 + $0x6e8] ss:$16 sps:$4 sm:$0xff]   ;;  %v6764_v23 = vld [vmem:[%s7215_s14 + $0x704] ss:$16 sps:$4 sm:$0xff]  }
 0x250   : > { %5086 = vmatprep.subr.bf16.mxu1 %v6713_v24  ;;  %v6767_v24 = vld [vmem:[%s7215_s14 + $0x70c] ss:$16 sps:$4 sm:$0xff]  }
 0x252   : > { %4923 = vmatpush1.bf16.msra.mxu0 %v6708_v25  ;;  %v6762_v25 = vld [vmem:[%s7215_s14 + $0x700] ss:$16 sps:$4 sm:$0xff]  }
 0x253   : > { %5087 = vmatpush1.bf16.msra.mxu1 %v6711_v26  ;;  %4933 = vmatprep.subr.bf16.mxu0 %v6716_v27  ;;  %v6765_v26 = vld [vmem:[%s7215_s14 + $0x708] ss:$16 sps:$4 sm:$0xff]   ;;  %v6770_v27 = vld [vmem:[%s7215_s14 + $0x724] ss:$16 sps:$4 sm:$0xff]  }
 0x254   : > { %5097 = vmatprep.subr.bf16.mxu1 %v6719_v28  ;;  %v6773_v28 = vld [vmem:[%s7215_s14 + $0x72c] ss:$16 sps:$4 sm:$0xff]  }
 0x268   : > { %v3106_v37 = vpop.f32.mrb[4].mxu0  ;;  %v7589_v39 = vpop.f32.mrb[4].mxu1 }
 0x269   : > { %v6352_v38 = vadd.f32 %v3106_v37, %v803_v33  ;;  %v3108_v40 = vpop.f32.mrb[5].mxu0  ;;  %v3231_v42 = vpop.f32.mrb[5].mxu1  ;;  %v6779_v33 = vld [vmem:[%s7215_s14 + $0x74c] ss:$16 sps:$4 sm:$0xff]   ;;  %v6782_v37 = vld [vmem:[%s7215_s14 + $0x764] ss:$16 sps:$4 sm:$0xff]  }
 0x26a   : > { %v6353_v41 = vadd.f32 %v3108_v40, %v807_v34  ;;  %v3110_v43 = vpop.f32.mrb[6].mxu0  ;;  %v6355_v45 = vadd.f32 %v3231_v42, %v815_v35  ;;  %v3233_v46 = vpop.f32.mrb[6].mxu1  ;;  %v6774_v34 = vld [vmem:[%s7215_s14 + $0x740] ss:$16 sps:$4 sm:$0xff]   ;;  %v6777_v35 = vld [vmem:[%s7215_s14 + $0x748] ss:$16 sps:$4 sm:$0xff]  }
 0x26b   : > { %v3240_v44 = vmax.f32 %v6352_v38, 0.0  ;;  %v3111_v47 = vpop.f32.mrb[7].mxu0  ;;  %v3234_v49 = vpop.f32.mrb[7].mxu1  ;;  %v6785_v38 = vld [vmem:[%s7215_s14 + $0x76c] ss:$16 sps:$4 sm:$0xff]   ;;  %v810_v46 = vsub.s32 6, %v7361_v63 }
 0x26c   : > { %v3241_v48 = vmax.f32 %v6353_v41, 0.0  ;;  %v3243_v4 = vmax.f32 %v6355_v45, 0.0  ;;  %v6780_v40 = vld [vmem:[%s7215_s14 + $0x760] ss:$16 sps:$4 sm:$0xff]   ;;  %v6783_v41 = vld [vmem:[%s7215_s14 + $0x768] ss:$16 sps:$4 sm:$0xff]  }
 0x26d   : > { %v3248_v55 = vpack.c.bf16 %v3240_v44, %v3240_v44  ;;  %v6788_v42 = vld [vmem:[%s7215_s14 + $0x784] ss:$16 sps:$4 sm:$0xff]   ;;  %v6791_v43 = vld [vmem:[%s7215_s14 + $0x78c] ss:$16 sps:$4 sm:$0xff]   ;;  %v6786_v44 = vld [vmem:[%s7215_s14 + $0x780] ss:$16 sps:$4 sm:$0xff]  }
 0x26e   : > { %v3249_v51 = vpack.c.bf16 %v3241_v48, %v3241_v48  ;;  %v3251_v59 = vpack.c.bf16 %v3243_v4, %v3243_v4  ;;  %v6789_v45 = vld [vmem:[%s7215_s14 + $0x788] ss:$16 sps:$4 sm:$0xff]   ;;  %v6794_v47 = vld [vmem:[%s7215_s14 + $0x7a4] ss:$16 sps:$4 sm:$0xff]   ;;  %v6797_v48 = vld [vmem:[%s7215_s14 + $0x7ac] ss:$16 sps:$4 sm:$0xff]  }
 0x26f   : > { %v6792_v49 = vld [vmem:[%s7215_s14 + $0x7a0] ss:$16 sps:$4 sm:$0xff]   ;;  %v6795_v4 = vld [vmem:[%s7215_s14 + $0x7a8] ss:$16 sps:$4 sm:$0xff]  }
 0x270   : > { %4924 = vmatprep.mubr.bf16.mxu0 %v3249_v51  ;;  %5088 = vmatprep.mubr.bf16.mxu1 %v3249_v51  ;;  %v6842_v51 = vld [vmem:[%s7371_s18] sm:$0xff] }
 0x271   : > { %4925 = vmatmul.mubr.bf16.vlgmr.msra.gmra.mrb[8].mxu0 %v3248_v55  ;;  %5089 = vmatmul.mubr.bf16.vlgmr.msra.gmra.mrb[8].mxu1 %v3248_v55  ;;  %v6803_v55 = vld [vmem:[%s7215_s14 + $0x7cc] ss:$16 sps:$4 sm:$0xff]  }
 0x272   : > { %4934 = vmatpush1.bf16.msra.mxu0 %v6714_v52  ;;  %5098 = vmatpush1.bf16.msra.mxu1 %v6717_v53  ;;  %v811_v52 = vrot.slane %v6842_v51, %v810_v46  ;;  %v6800_v53 = vld [vmem:[%s7215_s14 + $0x7c4] ss:$16 sps:$4 sm:$0xff]  }
 0x273   : > { %4965 = vmatprep.mubr.bf16.mxu0 %v3251_v59  ;;  %5129 = vmatprep.mubr.bf16.mxu1 %v3251_v59 }
 0x274   : > { %4935 = vmatprep.subr.bf16.mxu0 %v6722_v56  ;;  %5099 = vmatprep.subr.bf16.mxu1 %v6725_v58  ;;  %v6798_v56 = vld [vmem:[%s7215_s14 + $0x7c0] ss:$16 sps:$4 sm:$0xff]   ;;  %v6801_v58 = vld [vmem:[%s7215_s14 + $0x7c8] ss:$16 sps:$4 sm:$0xff]   ;;  %v6354_v59 = vadd.f32 %v7589_v39, %v811_v52 }
 0x275   : > { %v6812_v39 = vld [vmem:[%s7551_s22] sm:$0xff]  }
 0x276   : > { %4936 = vmatpush1.bf16.msra.mxu0 %v6720_v36  ;;  %5100 = vmatpush1.bf16.msra.mxu1 %v6723_v60  ;;  %v6806_v36 = vld [vmem:[%s7215_s14 + $0x7e4] ss:$16 sps:$4 sm:$0xff]   ;;  %v6809_v60 = vld [vmem:[%s7215_s14 + $0x7ec] ss:$16 sps:$4 sm:$0xff]  }
 0x277   : > { %4937 = vmatprep.subr.bf16.mxu0 %v6728_v61  ;;  %5101 = vmatprep.subr.bf16.mxu1 %v6731_v62  ;;  %v6804_v61 = vld [vmem:[%s7215_s14 + $0x7e0] ss:$16 sps:$4 sm:$0xff]   ;;  %v6807_v62 = vld [vmem:[%s7215_s14 + $0x7e8] ss:$16 sps:$4 sm:$0xff]  }
 0x27a   : > { %4938 = vmatpush1.bf16.msra.mxu0 %v6726_v0  ;;  %5102 = vmatpush1.bf16.msra.mxu1 %v6729_v57  ;;  %v3242_v0 = vmax.f32 %v6354_v59, 0.0  ;;  %v6810_v57 = vld [vmem:[%s7551_s22 + $0x40] sm:$0xff]  }
 0x27b   : > { %4939 = vmatprep.subr.bf16.mxu0 %v6734_v12  ;;  %5103 = vmatprep.subr.bf16.mxu1 %v6737_v3  ;;  %v6811_v12 = vld [vmem:[%s7551_s22 + $0xc0] sm:$0xff]  }
 0x27c   : > { %v6813_v3 = vld [vmem:[%s7551_s22 + $0x80] sm:$0xff]  }
 0x27e   : > { %4940 = vmatpush1.bf16.msra.mxu0 %v6732_v5  ;;  %5104 = vmatpush1.bf16.msra.mxu1 %v6735_v21  ;;  %v3250_v5 = vpack.c.bf16 %v3242_v0, %v3242_v0  ;;  %v6814_v21 = vld [vmem:[%s7551_s22 + $0x48] sm:$0xff]  }
 0x27f   : > { %4941 = vmatprep.subr.bf16.mxu0 %v6740_v6  ;;  %5105 = vmatprep.subr.bf16.mxu1 %v6743_v7  ;;  %v6815_v6 = vld [vmem:[%s7551_s22 + $0xc8] sm:$0xff]  }
 0x280   : > { %v6816_v7 = vld [vmem:[%s7551_s22 + $0x8] sm:$0xff]  }
 0x282   : > { %4942 = vmatpush1.bf16.msra.mxu0 %v6738_v8  ;;  %5106 = vmatpush1.bf16.msra.mxu1 %v6741_v22  ;;  %v6817_v8 = vld [vmem:[%s7551_s22 + $0x88] sm:$0xff]   ;;  %v6818_v22 = vld [vmem:[%s7551_s22 + $0x50] sm:$0xff]  }
 0x283   : > { %4943 = vmatprep.subr.bf16.mxu0 %v6746_v9  ;;  %5107 = vmatprep.subr.bf16.mxu1 %v6749_v10  ;;  %v6819_v9 = vld [vmem:[%s7551_s22 + $0xd0] sm:$0xff]  }
 0x284   : > { %v6820_v10 = vld [vmem:[%s7551_s22 + $0x10] sm:$0xff]  }
 0x286   : > { %4944 = vmatpush1.bf16.msra.mxu0 %v6744_v13  ;;  %5108 = vmatpush1.bf16.msra.mxu1 %v6747_v32  ;;  %v6821_v13 = vld [vmem:[%s7551_s22 + $0x90] sm:$0xff]   ;;  %v6822_v32 = vld [vmem:[%s7551_s22 + $0x58] sm:$0xff]  }
 0x287   : > { %4945 = vmatprep.subr.bf16.mxu0 %v6752_v14  ;;  %5109 = vmatprep.subr.bf16.mxu1 %v6755_v15  ;;  %v6823_v14 = vld [vmem:[%s7551_s22 + $0xd8] sm:$0xff]  }
 0x288   : > { %v6824_v15 = vld [vmem:[%s7551_s22 + $0x18] sm:$0xff]  }
 0x28a   : > { %4946 = vmatpush1.bf16.msra.mxu0 %v6750_v16  ;;  %5110 = vmatpush1.bf16.msra.mxu1 %v6753_v17  ;;  %v6825_v16 = vld [vmem:[%s7551_s22 + $0x98] sm:$0xff]   ;;  %v6826_v17 = vld [vmem:[%s7551_s22 + $0x60] sm:$0xff]  }
 0x28b   : > { %4947 = vmatprep.subr.bf16.mxu0 %v6758_v18  ;;  %5111 = vmatprep.subr.bf16.mxu1 %v6761_v19  ;;  %v6827_v18 = vld [vmem:[%s7551_s22 + $0xe0] sm:$0xff]  }
 0x28c   : > { %v6828_v19 = vld [vmem:[%s7551_s22 + $0x20] sm:$0xff]  }
 0x28e   : > { %4948 = vmatpush1.bf16.msra.mxu0 %v6756_v11  ;;  %5112 = vmatpush1.bf16.msra.mxu1 %v6759_v20  ;;  %v6829_v11 = vld [vmem:[%s7551_s22 + $0xa0] sm:$0xff]   ;;  %v6830_v20 = vld [vmem:[%s7551_s22 + $0x68] sm:$0xff]  }
 0x28f   : > { %4949 = vmatprep.subr.bf16.mxu0 %v6764_v23  ;;  %5113 = vmatprep.subr.bf16.mxu1 %v6767_v24  ;;  %v6831_v23 = vld [vmem:[%s7551_s22 + $0xe8] sm:$0xff]  }
 0x290   : > { %v6832_v24 = vld [vmem:[%s7551_s22 + $0x28] sm:$0xff]  }
 0x292   : > { %4950 = vmatpush1.bf16.msra.mxu0 %v6762_v25  ;;  %5114 = vmatpush1.bf16.msra.mxu1 %v6765_v26  ;;  %v6833_v25 = vld [vmem:[%s7551_s22 + $0xa8] sm:$0xff]   ;;  %v6834_v26 = vld [vmem:[%s7551_s22 + $0x70] sm:$0xff]  }
 0x293   : > { %4951 = vmatprep.subr.bf16.mxu0 %v6770_v27  ;;  %5115 = vmatprep.subr.bf16.mxu1 %v6773_v28  ;;  %v6835_v27 = vld [vmem:[%s7551_s22 + $0xf0] sm:$0xff]  }
 0x294   : > { %v6836_v28 = vld [vmem:[%s7551_s22 + $0x30] sm:$0xff]  }
 0x296   : > { %4952 = vmatpush1.bf16.msra.mxu0 %v6768_v29  ;;  %5116 = vmatpush1.bf16.msra.mxu1 %v6771_v30  ;;  %v6837_v29 = vld [vmem:[%s7551_s22 + $0xb0] sm:$0xff]   ;;  %v6838_v30 = vld [vmem:[%s7551_s22 + $0x78] sm:$0xff]  }
 0x297   : > { %4953 = vmatprep.subr.bf16.mxu0 %v6776_v31  ;;  %5117 = vmatprep.subr.bf16.mxu1 %v6779_v33  ;;  %v6839_v31 = vld [vmem:[%s7551_s22 + $0xf8] sm:$0xff]  }
 0x298   : > { %v6840_v33 = vld [vmem:[%s7551_s22 + $0x38] sm:$0xff]  }
 0x29a   : > { %4954 = vmatpush1.bf16.msra.mxu0 %v6774_v34  ;;  %5118 = vmatpush1.bf16.msra.mxu1 %v6777_v35  ;;  %v6841_v34 = vld [vmem:[%s7551_s22 + $0xb8] sm:$0xff]   ;;  %v3508_v35 = vld [vmem:[%s372_s28] sm:$0xf] }
 0x29b   : > { %4955 = vmatprep.subr.bf16.mxu0 %v6782_v37  ;;  %5119 = vmatprep.subr.bf16.mxu1 %v6785_v38  ;;  %v3513_v37 = vrot.slane %v3508_v35, %v786_v50  ;;  %v3521_v38 = vrot.slane %v3508_v35, %v794_v1 }
 0x29e   : > { %4956 = vmatpush1.bf16.msra.mxu0 %v6780_v40  ;;  %5120 = vmatpush1.bf16.msra.mxu1 %v6783_v41  ;;  %v3517_v40 = vrot.slane %v3508_v35, %v790_v2  ;;  %v3525_v41 = vrot.slane %v3508_v35, %v798_v54 }
 0x29f   : > { %4957 = vmatprep.subr.bf16.mxu0 %v6788_v42  ;;  %5121 = vmatprep.subr.bf16.mxu1 %v6791_v43 }
 0x2a2   : > { %4958 = vmatpush1.bf16.msra.mxu0 %v6786_v44  ;;  %5122 = vmatpush1.bf16.msra.mxu1 %v6789_v45 }
 0x2a3   : > { %4959 = vmatprep.subr.bf16.mxu0 %v6794_v47  ;;  %5123 = vmatprep.subr.bf16.mxu1 %v6797_v48 }
 0x2a6   : > { %4960 = vmatpush1.bf16.msra.mxu0 %v6792_v49  ;;  %5124 = vmatpush1.bf16.msra.mxu1 %v6795_v4 }
 0x2a7   : > { %4961 = vmatprep.subr.bf16.mxu0 %v6800_v53  ;;  %5125 = vmatprep.subr.bf16.mxu1 %v6803_v55 }
 0x2aa   : > { %4962 = vmatpush1.bf16.msra.mxu0 %v6798_v56  ;;  %5126 = vmatpush1.bf16.msra.mxu1 %v6801_v58 }
 0x2ab   : > { %4963 = vmatprep.subr.bf16.mxu0 %v6806_v36  ;;  %5127 = vmatprep.subr.bf16.mxu1 %v6809_v60  ;;  %v6267_v60 = vld [vmem:[%s380_s8] ss:$0 sm:$0xff] }
 0x2ae   : > { %4964 = vmatpush1.bf16.msra.mxu0 %v6804_v61  ;;  %5128 = vmatpush1.bf16.msra.mxu1 %v6807_v62 }
 0x2af   : > { %6304 = vmatprep.subr.bf16.mxu0 %v6810_v57  ;;  %6326 = vmatprep.subr.bf16.mxu1 %v6811_v12 }
 0x2b1   : > { %4966 = vmatmul.mubr.bf16.vlgmr.msra.gmra.mrb[8].mxu0 %v3250_v5  ;;  %5130 = vmatmul.mubr.bf16.vlgmr.msra.gmra.mrb[8].mxu1 %v3250_v5 }
 0x2b2   : > { %6305 = vmatpush3.bf16.msra.mxu0 %v6812_v39  ;;  %6327 = vmatpush3.bf16.msra.mxu1 %v6813_v3 }
 0x2b3   : > { %6306 = vmatprep.subr.bf16.mxu0 %v6814_v21  ;;  %6328 = vmatprep.subr.bf16.mxu1 %v6815_v6 }
 0x2b6   : > { %6307 = vmatpush3.bf16.msra.mxu0 %v6816_v7  ;;  %6329 = vmatpush3.bf16.msra.mxu1 %v6817_v8 }
 0x2b7   : > { %6308 = vmatprep.subr.bf16.mxu0 %v6818_v22  ;;  %6330 = vmatprep.subr.bf16.mxu1 %v6819_v9 }
 0x2ba   : > { %6309 = vmatpush3.bf16.msra.mxu0 %v6820_v10  ;;  %6331 = vmatpush3.bf16.msra.mxu1 %v6821_v13 }
 0x2bb   : > { %6310 = vmatprep.subr.bf16.mxu0 %v6822_v32  ;;  %6332 = vmatprep.subr.bf16.mxu1 %v6823_v14 }
 0x2be   : > { %6311 = vmatpush3.bf16.msra.mxu0 %v6824_v15  ;;  %6333 = vmatpush3.bf16.msra.mxu1 %v6825_v16 }
 0x2bf   : > { %6312 = vmatprep.subr.bf16.mxu0 %v6826_v17  ;;  %6334 = vmatprep.subr.bf16.mxu1 %v6827_v18 }
 0x2c2   : > { %6313 = vmatpush3.bf16.msra.mxu0 %v6828_v19  ;;  %6335 = vmatpush3.bf16.msra.mxu1 %v6829_v11 }
 0x2c3   : > { %6314 = vmatprep.subr.bf16.mxu0 %v6830_v20  ;;  %6336 = vmatprep.subr.bf16.mxu1 %v6831_v23 }
 0x2c6   : > { %6315 = vmatpush3.bf16.msra.mxu0 %v6832_v24  ;;  %6337 = vmatpush3.bf16.msra.mxu1 %v6833_v25 }
 0x2c7   : > { %6316 = vmatprep.subr.bf16.mxu0 %v6834_v26  ;;  %6338 = vmatprep.subr.bf16.mxu1 %v6835_v27 }
 0x2ca   : > { %6317 = vmatpush3.bf16.msra.mxu0 %v6836_v28  ;;  %6339 = vmatpush3.bf16.msra.mxu1 %v6837_v29 }
 0x2cb   : > { %6318 = vmatprep.subr.bf16.mxu0 %v6838_v30  ;;  %6340 = vmatprep.subr.bf16.mxu1 %v6839_v31 }
 0x2ce   : > { %6319 = vmatpush3.bf16.msra.mxu0 %v6840_v33  ;;  %6341 = vmatpush3.bf16.msra.mxu1 %v6841_v34 }
 0x384   : > { %v4967_v42 = vpop.f32.mrb[8].mxu0  ;;  %v5131_v43 = vpop.f32.mrb[8].mxu1 }
 0x385   : > { %v6356_v44 = vadd.f32 %v4967_v42, %v3513_v37  ;;  %v6358_v45 = vadd.f32 %v5131_v43, %v3521_v38  ;;  %v4969_v46 = vpop.f32.mrb[9].mxu0  ;;  %v5133_v47 = vpop.f32.mrb[9].mxu1 }
 0x386   : > { %v6357_v48 = vadd.f32 %v4969_v46, %v3517_v40  ;;  %v6359_v49 = vadd.f32 %v5133_v47, %v3525_v41  ;;  %v4971_v4 = vpop.f32.mrb[10].mxu0  ;;  %v5135_v50 = vpop.f32.mrb[10].mxu1 }
 0x387   : > { %v5138_v51 = vmax.f32 %v6356_v44, 0.0  ;;  %v5140_v52 = vmax.f32 %v6358_v45, 0.0  ;;  %v4972_v1 = vpop.f32.mrb[11].mxu0  ;;  %v5136_v53 = vpop.f32.mrb[11].mxu1 }
 0x388   : > { %v5139_v55 = vmax.f32 %v6357_v48, 0.0  ;;  %v5141_v2 = vmax.f32 %v6359_v49, 0.0 }
 0x389   : > { %v5142_v54 = vpack.c.bf16 %v5138_v51, %v5138_v51  ;;  %v5144_v58 = vpack.c.bf16 %v5140_v52, %v5140_v52 }
 0x38a   : > { %v5143_v56 = vpack.c.bf16 %v5139_v55, %v5139_v55  ;;  %v5145_v63 = vpack.c.bf16 %v5141_v2, %v5141_v2 }
 0x38c   : > { %5441 = vmatprep.mubr.bf16.mxu0 %v5143_v56  ;;  %5481 = vmatprep.mubr.bf16.mxu1 %v5145_v63 }
 0x38d   : > { %5442 = vmatmul.mubr.bf16.vlgmr.msra.gmra.mrb[12].mxu0 %v5142_v54  ;;  %5482 = vmatmul.mubr.bf16.vlgmr.msra.gmra.mrb[12].mxu1 %v5144_v58 }
 0x460   : > { %v6320_v59 = vpop.f32.mrb[12].mxu0  ;;  %v6342_v36 = vpop.f32.mrb[12].mxu1 }
 0x461   : > { %v6321_v61 = vpop.f32.mrb[13].mxu0  ;;  %v6343_v62 = vpop.f32.mrb[13].mxu1 }
 0x462   : > { %v6322_v0 = vadd.f32 %v6321_v61, %v6320_v59  ;;  %v6344_v57 = vadd.f32 %v6343_v62, %v6342_v36  ;;  %v6323_v12 = vpop.f32.mrb[14].mxu0  ;;  %v6345_v39 = vpop.f32.mrb[14].mxu1 }
 0x463   : > { %v6324_v3 = vpop.f32.mrb[15].mxu0  ;;  %v6346_v5 = vpop.f32.mrb[15].mxu1 }
 0x464   : > { %v5444_v21 = vadd.f32 %v6322_v0, %v6267_v60 }
 0x466   : > { %v5484_v6 = vadd.f32 %v6344_v57, %v5444_v21 }
 0x468   : > { %5490 = vst.msk [vmem:[%s384_s11] sm:$0xff] %vm5489_vm0, %v5484_v6 }
 0x469 PF: > { %s17_s24 = sadd.s32 1, %s6849_s24  }
 0x46a   : > { %p14_p4 = scmp.ge.s32.totalorder %s17_s24, 4  }
 0x46c   :  { %16 = sbr.rel (!%p14_p4) target bundleno = 1 (0x1), region = 96 }

</bundles_post_ra>
